<compile_context>
chip_gen: v7x
topology: tpu7x:2x2x1
jax: 0.10.0
libtpu: 0.0.40
codegen_flags: <defaults>
</compile_context>

<pallas_src>
import functools

import jax
import jax.numpy as jnp
from jax import lax
from jax.experimental import pallas as pl
from jax.experimental.pallas import tpu as pltpu


# ----------------------------------------------------------------------------
# in-kernel helpers (pure jnp/lax, guaranteed Mosaic-lowerable)
# ----------------------------------------------------------------------------
def _erf(x):
    # Abramowitz & Stegun 7.1.26 (max abs err ~1.5e-7): exact-GELU erf without
    # relying on a lax.erf lowering; only VPU mul/add/select + EUP exp.
    a1, a2, a3, a4, a5 = (0.254829592, -0.284496736, 1.421413741,
                          -1.453152027, 1.061405429)
    p = 0.3275911
    ax = jnp.abs(x)
    t = 1.0 / (1.0 + p * ax)
    poly = ((((a5 * t + a4) * t + a3) * t + a2) * t + a1) * t
    y = 1.0 - poly * jnp.exp(-ax * ax)
    return jnp.where(x < 0.0, -y, y)


def _gelu_exact(x):
    # torch.nn.GELU default (erf form), not the tanh approximation.
    return 0.5 * x * (1.0 + _erf(x * 0.7071067811865475))


def _layernorm(x, g, b, eps):
    mu = jnp.mean(x, axis=-1, keepdims=True)
    xc = x - mu
    var = jnp.mean(xc * xc, axis=-1, keepdims=True)
    return xc * lax.rsqrt(var + eps) * g + b


# ----------------------------------------------------------------------------
# fused ViT-encoder kernel: one grid step == Bb batch elements
# ----------------------------------------------------------------------------
def _encoder_kernel(
    tok_ref, patch_w_ref, patch_b_ref, pos_ref,
    ln1_g_ref, ln1_b_ref,
    q_w_ref, q_b_ref, k_w_ref, k_b_ref, v_w_ref, v_b_ref,
    proj_w_ref, proj_b_ref,
    ln2_g_ref, ln2_b_ref,
    mlp_w1_ref, mlp_b1_ref, mlp_w2_ref, mlp_b2_ref,
    fin_g_ref, fin_b_ref,
    out_ref,
    *, n_blocks, n_heads, batch_block, n_tokens, eps,
):
    f32 = jnp.float32
    Bb = batch_block
    T = n_tokens
    M = Bb * T                           # per-token row count fed to the MXU
    P = tok_ref.shape[2]
    D = patch_w_ref.shape[1]
    Dh = D // n_heads

    # ---- patch embedding + positional embedding (fused, whole Bb*T slab) ----
    tok = tok_ref[...].reshape(M, P).astype(f32)                       # (M, P)
    h = jnp.dot(tok, patch_w_ref[...], preferred_element_type=f32)     # (M, D)
    pos = pos_ref[...] + patch_b_ref[...]                              # (T, D), once
    h = (h.reshape(Bb, T, D) + pos).reshape(M, D)

    # ---- transformer blocks, statically unrolled, resident in VMEM ----------
    for l in range(n_blocks):
        # pre-norm multi-head self-attention
        hn = _layernorm(h, ln1_g_ref[l], ln1_b_ref[l], eps)            # (M, D)
        attn = jnp.zeros((M, D), f32)
        for hh in range(n_heads):                                      # static unroll
            w = l * n_heads + hh
            # per-(layer, head) weights -> zero in-kernel lane slicing.
            # Q weights already carry the 1/sqrt(Dh) softmax scale.
            q = jnp.dot(hn, q_w_ref[w], preferred_element_type=f32) + q_b_ref[w]
            k = jnp.dot(hn, k_w_ref[w], preferred_element_type=f32) + k_b_ref[w]
            v = jnp.dot(hn, v_w_ref[w], preferred_element_type=f32) + v_b_ref[w]
            q3 = q.reshape(Bb, T, Dh)                                  # sample-major
            k3 = k.reshape(Bb, T, Dh)
            v3 = v.reshape(Bb, T, Dh)
            # per-sample scores / PV via a single batched einsum (no K transpose)
            s = jnp.einsum("bqd,bkd->bqk", q3, k3,
                           preferred_element_type=f32)                 # (Bb, T, T)
            m = jnp.max(s, axis=-1, keepdims=True)
            p = jnp.exp(s - m)
            denom = jnp.sum(p, axis=-1, keepdims=True)
            p = p * pl.reciprocal(denom, approx=True)
            o = jnp.einsum("bqk,bkd->bqd", p, v3,
                           preferred_element_type=f32)                 # (Bb, T, Dh)
            # head merge fused into the output projection (no concat):
            attn = attn + jnp.dot(o.reshape(M, Dh), proj_w_ref[w],
                                  preferred_element_type=f32)
        h = h + attn + proj_b_ref[l]                                   # residual

        # pre-norm MLP with exact GELU
        hn = _layernorm(h, ln2_g_ref[l], ln2_b_ref[l], eps)
        m1 = jnp.dot(hn, mlp_w1_ref[l],
                     preferred_element_type=f32) + mlp_b1_ref[l]
        m1 = _gelu_exact(m1)
        h = h + jnp.dot(m1, mlp_w2_ref[l],
                        preferred_element_type=f32) + mlp_b2_ref[l]

    # ---- final LayerNorm; emit lane-dense (Bb, T, D) -------------------------
    h = _layernorm(h, fin_g_ref[...], fin_b_ref[...], eps)
    out_ref[...] = h.reshape(Bb, T, D).astype(out_ref.dtype)


# ----------------------------------------------------------------------------
# I-JEPA forward (ViT encoder) wrapper with deterministically built parameters
# ----------------------------------------------------------------------------
class IJEPAPallas:
    def __init__(
        self,
        *,
        in_channels=4,
        image_size=(16, 16),
        patch_size=(4, 4),
        n_encoder_features=32,
        n_heads=4,
        mlp_dim=64,
        n_blocks=2,
        target_rows=256,     # MXU M target: 128 for v5e, 256 for v6e/v7x
        seed=42,
    ):
        self.in_channels = in_channels
        self.image_size = image_size
        self.patch_size = patch_size
        self.dim = n_encoder_features
        self.n_heads = n_heads
        self.head_dim = self.dim // n_heads
        self.mlp_dim = mlp_dim
        self.n_blocks = n_blocks
        self.target_rows = target_rows

        gh = image_size[0] // patch_size[0]
        gw = image_size[1] // patch_size[1]
        self.n_tokens = gh * gw
        self.patch_dim = in_channels * patch_size[0] * patch_size[1]

        key = jax.random.PRNGKey(seed)
        keys = jax.random.split(key, 9)

        def nrm(k, shape, scale=0.02):
            return (scale * jax.random.normal(k, shape)).astype(jnp.float32)

        D, Dm, L, T, P = self.dim, self.mlp_dim, n_blocks, self.n_tokens, self.patch_dim
        nH, Dh = n_heads, self.head_dim
        attn_scale = 1.0 / (Dh ** 0.5)

        # Block weights stacked along a leading axis so the fused kernel can
        # statically index them.  Q/K/V/proj are stored per-(layer, head) so
        # the kernel never slices lanes; the softmax scale is folded into Q.
        self.params = {
            "patch_w": nrm(keys[0], (P, D)),
            "patch_b": jnp.zeros((1, D), jnp.float32),
            "pos": nrm(keys[1], (T, D)),
            "ln1_g": jnp.ones((L, 1, D), jnp.float32),
            "ln1_b": jnp.zeros((L, 1, D), jnp.float32),
            "q_w": (nrm(keys[2], (L * nH, D, Dh)) * attn_scale).astype(jnp.float32),
            "q_b": jnp.zeros((L * nH, 1, Dh), jnp.float32),
            "k_w": nrm(keys[3], (L * nH, D, Dh)),
            "k_b": jnp.zeros((L * nH, 1, Dh), jnp.float32),
            "v_w": nrm(keys[4], (L * nH, D, Dh)),
            "v_b": jnp.zeros((L * nH, 1, Dh), jnp.float32),
            "proj_w": nrm(keys[5], (L * nH, Dh, D)),
            "proj_b": jnp.zeros((L, 1, D), jnp.float32),
            "ln2_g": jnp.ones((L, 1, D), jnp.float32),
            "ln2_b": jnp.zeros((L, 1, D), jnp.float32),
            "mlp_w1": nrm(keys[6], (L, D, Dm)),
            "mlp_b1": jnp.zeros((L, 1, Dm), jnp.float32),
            "mlp_w2": nrm(keys[7], (L, Dm, D)),
            "mlp_b2": jnp.zeros((L, 1, D), jnp.float32),
            "final_ln_g": jnp.ones((1, D), jnp.float32),
            "final_ln_b": jnp.zeros((1, D), jnp.float32),
            # exists in the module but unused by forward():
            "mask_token": jax.random.uniform(keys[8], (D,), jnp.float32),
        }

    # ---- glue: NCHW -> (B, T, patch_dim), row-major patch grid ---------------
    def _patchify(self, x):
        B, C, H, W = x.shape
        ph, pw = self.patch_size
        gh, gw = H // ph, W // pw
        x = x.reshape(B, C, gh, ph, gw, pw)
        x = x.transpose(0, 2, 4, 1, 3, 5)            # (B, gh, gw, C, ph, pw)
        return x.reshape(B, gh * gw, C * ph * pw)

    @staticmethod
    def _pick_batch_block(batch, n_tokens, target_rows):
        # largest divisor of `batch` with Bb * T <= target_rows
        bb = 1
        for cand in range(1, batch + 1):
            if batch % cand == 0 and cand * n_tokens <= target_rows:
                bb = cand
        return bb

    def __call__(self, x):
        """x: (B, C, H, W) float32 -> (B, n_encoder_features, n_tokens)."""
        B = x.shape[0]
        T, D, P, Dm, L = self.n_tokens, self.dim, self.patch_dim, self.mlp_dim, self.n_blocks
        nH, Dh = self.n_heads, self.head_dim
        p = self.params

        tokens = self._patchify(x)                    # (B, T, P) — XLA layout glue only

        Bb = self._pick_batch_block(B, T, self.target_rows)
        grid = (B // Bb,)

        kernel = functools.partial(
            _encoder_kernel, n_blocks=L, n_heads=nH,
            batch_block=Bb, n_tokens=T, eps=1e-5)

        def full(shape):
            # weights keep the same block index across grid steps -> no re-DMA
            return pl.BlockSpec(shape, lambda b, _n=len(shape): (0,) * _n)

        # advisory cost hint so XLA schedules neighbours around the custom call
        per_block_flops = (6 * T * D * D                    # Q, K, V
                           + 4 * nH * T * T * Dh            # scores + PV
                           + 2 * nH * T * Dh * D            # per-head output proj
                           + 4 * T * D * Dm)                # MLP
        flops = B * (2 * T * P * D + L * per_block_flops)
        transcendentals = B * L * (nH * T * T + T * Dm)
        param_bytes = sum(int(v.size) * 4 for k, v in p.items() if k != "mask_token")
        bytes_accessed = int(tokens.size * 4 + B * T * D * 4 + param_bytes)

        out = pl.pallas_call(
            kernel,
            out_shape=jax.ShapeDtypeStruct((B, T, D), x.dtype),
            grid=grid,
            in_specs=[
                pl.BlockSpec((Bb, T, P), lambda b: (b, 0, 0)),   # tokens
                full((P, D)), full((1, D)), full((T, D)),        # patch_w/b, pos
                full((L, 1, D)), full((L, 1, D)),                # ln1 g/b
                full((L * nH, D, Dh)), full((L * nH, 1, Dh)),    # q w/b (pre-scaled)
                full((L * nH, D, Dh)), full((L * nH, 1, Dh)),    # k w/b
                full((L * nH, D, Dh)), full((L * nH, 1, Dh)),    # v w/b
                full((L * nH, Dh, D)), full((L, 1, D)),          # proj w/b
                full((L, 1, D)), full((L, 1, D)),                # ln2 g/b
                full((L, D, Dm)), full((L, 1, Dm)),              # mlp1 w/b
                full((L, Dm, D)), full((L, 1, D)),               # mlp2 w/b
                full((1, D)), full((1, D)),                      # final ln g/b
            ],
            out_specs=pl.BlockSpec((Bb, T, D), lambda b: (b, 0, 0)),
            compiler_params=pltpu.CompilerParams(
                dimension_semantics=("parallel",)),
            cost_estimate=pl.CostEstimate(
                flops=int(flops),
                transcendentals=int(transcendentals),
                bytes_accessed=bytes_accessed),
        )(tokens, p["patch_w"], p["patch_b"], p["pos"],
          p["ln1_g"], p["ln1_b"],
          p["q_w"], p["q_b"], p["k_w"], p["k_b"], p["v_w"], p["v_b"],
          p["proj_w"], p["proj_b"],
          p["ln2_g"], p["ln2_b"],
          p["mlp_w1"], p["mlp_b1"], p["mlp_w2"], p["mlp_b2"],
          p["final_ln_g"], p["final_ln_b"])

        # forward_representation: encoder_(X)[0].permute(0, 2, 1).  The kernel
        # writes lane-dense (B, T, D); this few-KB transpose stays in XLA
        # instead of an in-kernel MXU identity matmul.
        return jnp.transpose(out, (0, 2, 1))


# ----------------------------------------------------------------------------
if __name__ == "__main__":
    key = jax.random.PRNGKey(0)
    B, C, H, W = 2, 4, 16, 16
    x = jax.random.normal(key, (B, C, H, W), dtype=jnp.float32)

    model = IJEPAPallas(
        in_channels=C,
        image_size=(H, W),
        patch_size=(4, 4),
        n_encoder_features=32,
        n_heads=4,
        mlp_dim=64,
        n_blocks=2,
        target_rows=256,
        seed=42,
    )

    out = model(x)
    out = jax.block_until_ready(out)
    assert out.shape == (B, 32, model.n_tokens), out.shape
    assert jnp.all(jnp.isfinite(out))
    print("KERNEL_OK")
</pallas_src>

<mosaic_0001>
module attributes {stable_mosaic.version = 11 : i64} {
  func.func @_encoder_kernel(%arg0: i32, %arg1: memref<2x16x64xf32, #tpu.memory_space<vmem>>, %arg2: memref<64x32xf32, #tpu.memory_space<vmem>>, %arg3: memref<1x32xf32, #tpu.memory_space<vmem>>, %arg4: memref<16x32xf32, #tpu.memory_space<vmem>>, %arg5: memref<2x1x32xf32, #tpu.memory_space<vmem>>, %arg6: memref<2x1x32xf32, #tpu.memory_space<vmem>>, %arg7: memref<8x32x8xf32, #tpu.memory_space<vmem>>, %arg8: memref<8x1x8xf32, #tpu.memory_space<vmem>>, %arg9: memref<8x32x8xf32, #tpu.memory_space<vmem>>, %arg10: memref<8x1x8xf32, #tpu.memory_space<vmem>>, %arg11: memref<8x32x8xf32, #tpu.memory_space<vmem>>, %arg12: memref<8x1x8xf32, #tpu.memory_space<vmem>>, %arg13: memref<8x8x32xf32, #tpu.memory_space<vmem>>, %arg14: memref<2x1x32xf32, #tpu.memory_space<vmem>>, %arg15: memref<2x1x32xf32, #tpu.memory_space<vmem>>, %arg16: memref<2x1x32xf32, #tpu.memory_space<vmem>>, %arg17: memref<2x32x64xf32, #tpu.memory_space<vmem>>, %arg18: memref<2x1x64xf32, #tpu.memory_space<vmem>>, %arg19: memref<2x64x32xf32, #tpu.memory_space<vmem>>, %arg20: memref<2x1x32xf32, #tpu.memory_space<vmem>>, %arg21: memref<1x32xf32, #tpu.memory_space<vmem>>, %arg22: memref<1x32xf32, #tpu.memory_space<vmem>>, %arg23: memref<2x16x32xf32, #tpu.memory_space<vmem>>) attributes {dimension_semantics = [#tpu.dimension_semantics<parallel>], iteration_bounds = array<i64: 1>, scalar_prefetch = 0 : i64, scratch_operands = 0 : i64, tpu.core_type = #tpu.core_type<tc>, window_params = [{transform_indices = @transform_0, window_bounds = array<i64: 2, 16, 64>}, {pipeline_mode = #tpu.pipeline_mode<synchronous>, transform_indices = @transform_1, window_bounds = array<i64: 64, 32>}, {pipeline_mode = #tpu.pipeline_mode<synchronous>, transform_indices = @transform_2, window_bounds = array<i64: 1, 32>}, {pipeline_mode = #tpu.pipeline_mode<synchronous>, transform_indices = @transform_3, window_bounds = array<i64: 16, 32>}, {pipeline_mode = #tpu.pipeline_mode<synchronous>, transform_indices = @transform_4, window_bounds = array<i64: 2, 1, 32>}, {pipeline_mode = #tpu.pipeline_mode<synchronous>, transform_indices = @transform_5, window_bounds = array<i64: 2, 1, 32>}, {pipeline_mode = #tpu.pipeline_mode<synchronous>, transform_indices = @transform_6, window_bounds = array<i64: 8, 32, 8>}, {pipeline_mode = #tpu.pipeline_mode<synchronous>, transform_indices = @transform_7, window_bounds = array<i64: 8, 1, 8>}, {pipeline_mode = #tpu.pipeline_mode<synchronous>, transform_indices = @transform_8, window_bounds = array<i64: 8, 32, 8>}, {pipeline_mode = #tpu.pipeline_mode<synchronous>, transform_indices = @transform_9, window_bounds = array<i64: 8, 1, 8>}, {pipeline_mode = #tpu.pipeline_mode<synchronous>, transform_indices = @transform_10, window_bounds = array<i64: 8, 32, 8>}, {pipeline_mode = #tpu.pipeline_mode<synchronous>, transform_indices = @transform_11, window_bounds = array<i64: 8, 1, 8>}, {pipeline_mode = #tpu.pipeline_mode<synchronous>, transform_indices = @transform_12, window_bounds = array<i64: 8, 8, 32>}, {pipeline_mode = #tpu.pipeline_mode<synchronous>, transform_indices = @transform_13, window_bounds = array<i64: 2, 1, 32>}, {pipeline_mode = #tpu.pipeline_mode<synchronous>, transform_indices = @transform_14, window_bounds = array<i64: 2, 1, 32>}, {pipeline_mode = #tpu.pipeline_mode<synchronous>, transform_indices = @transform_15, window_bounds = array<i64: 2, 1, 32>}, {pipeline_mode = #tpu.pipeline_mode<synchronous>, transform_indices = @transform_16, window_bounds = array<i64: 2, 32, 64>}, {pipeline_mode = #tpu.pipeline_mode<synchronous>, transform_indices = @transform_17, window_bounds = array<i64: 2, 1, 64>}, {pipeline_mode = #tpu.pipeline_mode<synchronous>, transform_indices = @transform_18, window_bounds = array<i64: 2, 64, 32>}, {pipeline_mode = #tpu.pipeline_mode<synchronous>, transform_indices = @transform_19, window_bounds = array<i64: 2, 1, 32>}, {pipeline_mode = #tpu.pipeline_mode<synchronous>, transform_indices = @transform_20, window_bounds = array<i64: 1, 32>}, {pipeline_mode = #tpu.pipeline_mode<synchronous>, transform_indices = @transform_21, window_bounds = array<i64: 1, 32>}, {transform_indices = @transform_22, window_bounds = array<i64: 2, 16, 32>}]} {
    %c0 = arith.constant 0 : index
    %c0_0 = arith.constant 0 : index
    %c0_1 = arith.constant 0 : index
    %0 = vector.load %arg1[%c0, %c0_0, %c0_1] : memref<2x16x64xf32, #tpu.memory_space<vmem>>, vector<2x16x64xf32>
    %1 = vector.shape_cast %0 : vector<2x16x64xf32> to vector<32x64xf32>
    %c0_2 = arith.constant 0 : index
    %c0_3 = arith.constant 0 : index
    %2 = vector.load %arg2[%c0_2, %c0_3] : memref<64x32xf32, #tpu.memory_space<vmem>>, vector<64x32xf32>
    %cst = arith.constant dense<0.000000e+00> : vector<32x32xf32>
    %3 = tpu.matmul %1, %2, %cst {dimension_numbers = #tpu.dot_dimension_numbers<[1], [0], [0], [1], [0, 0, 1, 1], [], []>} : vector<32x64xf32>, vector<64x32xf32>, vector<32x32xf32> -> vector<32x32xf32>
    %c0_4 = arith.constant 0 : index
    %c0_5 = arith.constant 0 : index
    %4 = vector.load %arg4[%c0_4, %c0_5] : memref<16x32xf32, #tpu.memory_space<vmem>>, vector<16x32xf32>
    %c0_6 = arith.constant 0 : index
    %c0_7 = arith.constant 0 : index
    %5 = vector.load %arg3[%c0_6, %c0_7] : memref<1x32xf32, #tpu.memory_space<vmem>>, vector<1x32xf32>
    %6 = vector.broadcast %5 : vector<1x32xf32> to vector<16x32xf32>
    %7 = arith.addf %4, %6 : vector<16x32xf32>
    %8 = vector.shape_cast %3 : vector<32x32xf32> to vector<2x16x32xf32>
    %9 = vector.shape_cast %7 : vector<16x32xf32> to vector<1x16x32xf32>
    %10 = vector.broadcast %9 : vector<1x16x32xf32> to vector<2x16x32xf32>
    %11 = arith.addf %8, %10 : vector<2x16x32xf32>
    %12 = vector.shape_cast %11 : vector<2x16x32xf32> to vector<32x32xf32>
    %c0_8 = arith.constant 0 : index
    %c0_9 = arith.constant 0 : index
    %c0_10 = arith.constant 0 : index
    %13 = vector.load %arg5[%c0_8, %c0_9, %c0_10] : memref<2x1x32xf32, #tpu.memory_space<vmem>>, vector<1x1x32xf32>
    %14 = vector.shape_cast %13 : vector<1x1x32xf32> to vector<1x32xf32>
    %c0_11 = arith.constant 0 : index
    %c0_12 = arith.constant 0 : index
    %c0_13 = arith.constant 0 : index
    %15 = vector.load %arg6[%c0_11, %c0_12, %c0_13] : memref<2x1x32xf32, #tpu.memory_space<vmem>>, vector<1x1x32xf32>
    %16 = vector.shape_cast %15 : vector<1x1x32xf32> to vector<1x32xf32>
    %cst_14 = arith.constant dense<0.000000e+00> : vector<32xf32>
    %17 = vector.multi_reduction <add>, %12, %cst_14 [1] : vector<32x32xf32> to vector<32xf32>
    %18 = vector.shape_cast %17 : vector<32xf32> to vector<32x1xf32>
    %cst_15 = arith.constant 3.200000e+01 : f32
    %19 = vector.broadcast %cst_15 : f32 to vector<32x1xf32>
    %20 = arith.divf %18, %19 : vector<32x1xf32>
    %21 = vector.broadcast %20 : vector<32x1xf32> to vector<32x32xf32>
    %22 = arith.subf %12, %21 : vector<32x32xf32>
    %23 = arith.mulf %22, %22 : vector<32x32xf32>
    %cst_16 = arith.constant dense<0.000000e+00> : vector<32xf32>
    %24 = vector.multi_reduction <add>, %23, %cst_16 [1] : vector<32x32xf32> to vector<32xf32>
    %25 = vector.shape_cast %24 : vector<32xf32> to vector<32x1xf32>
    %cst_17 = arith.constant 3.200000e+01 : f32
    %26 = vector.broadcast %cst_17 : f32 to vector<32x1xf32>
    %27 = arith.divf %25, %26 : vector<32x1xf32>
    %cst_18 = arith.constant 9.99999974E-6 : f32
    %28 = vector.broadcast %cst_18 : f32 to vector<32x1xf32>
    %29 = arith.addf %27, %28 : vector<32x1xf32>
    %30 = math.rsqrt %29 : vector<32x1xf32>
    %31 = vector.broadcast %30 : vector<32x1xf32> to vector<32x32xf32>
    %32 = arith.mulf %22, %31 : vector<32x32xf32>
    %33 = vector.broadcast %14 : vector<1x32xf32> to vector<32x32xf32>
    %34 = arith.mulf %32, %33 : vector<32x32xf32>
    %35 = vector.broadcast %16 : vector<1x32xf32> to vector<32x32xf32>
    %36 = arith.addf %34, %35 : vector<32x32xf32>
    %cst_19 = arith.constant 0.000000e+00 : f32
    %37 = vector.broadcast %cst_19 : f32 to vector<32x32xf32>
    %c0_20 = arith.constant 0 : index
    %c0_21 = arith.constant 0 : index
    %c0_22 = arith.constant 0 : index
    %38 = vector.load %arg7[%c0_20, %c0_21, %c0_22] : memref<8x32x8xf32, #tpu.memory_space<vmem>>, vector<1x32x8xf32>
    %39 = vector.shape_cast %38 : vector<1x32x8xf32> to vector<32x8xf32>
    %cst_23 = arith.constant dense<0.000000e+00> : vector<32x8xf32>
    %40 = tpu.matmul %36, %39, %cst_23 {dimension_numbers = #tpu.dot_dimension_numbers<[1], [0], [0], [1], [0, 0, 1, 1], [], []>} : vector<32x32xf32>, vector<32x8xf32>, vector<32x8xf32> -> vector<32x8xf32>
    %c0_24 = arith.constant 0 : index
    %c0_25 = arith.constant 0 : index
    %c0_26 = arith.constant 0 : index
    %41 = vector.load %arg8[%c0_24, %c0_25, %c0_26] : memref<8x1x8xf32, #tpu.memory_space<vmem>>, vector<1x1x8xf32>
    %42 = vector.shape_cast %41 : vector<1x1x8xf32> to vector<1x8xf32>
    %43 = vector.broadcast %42 : vector<1x8xf32> to vector<32x8xf32>
    %44 = arith.addf %40, %43 : vector<32x8xf32>
    %c0_27 = arith.constant 0 : index
    %c0_28 = arith.constant 0 : index
    %c0_29 = arith.constant 0 : index
    %45 = vector.load %arg9[%c0_27, %c0_28, %c0_29] : memref<8x32x8xf32, #tpu.memory_space<vmem>>, vector<1x32x8xf32>
    %46 = vector.shape_cast %45 : vector<1x32x8xf32> to vector<32x8xf32>
    %cst_30 = arith.constant dense<0.000000e+00> : vector<32x8xf32>
    %47 = tpu.matmul %36, %46, %cst_30 {dimension_numbers = #tpu.dot_dimension_numbers<[1], [0], [0], [1], [0, 0, 1, 1], [], []>} : vector<32x32xf32>, vector<32x8xf32>, vector<32x8xf32> -> vector<32x8xf32>
    %c0_31 = arith.constant 0 : index
    %c0_32 = arith.constant 0 : index
    %c0_33 = arith.constant 0 : index
    %48 = vector.load %arg10[%c0_31, %c0_32, %c0_33] : memref<8x1x8xf32, #tpu.memory_space<vmem>>, vector<1x1x8xf32>
    %49 = vector.shape_cast %48 : vector<1x1x8xf32> to vector<1x8xf32>
    %50 = vector.broadcast %49 : vector<1x8xf32> to vector<32x8xf32>
    %51 = arith.addf %47, %50 : vector<32x8xf32>
    %c0_34 = arith.constant 0 : index
    %c0_35 = arith.constant 0 : index
    %c0_36 = arith.constant 0 : index
    %52 = vector.load %arg11[%c0_34, %c0_35, %c0_36] : memref<8x32x8xf32, #tpu.memory_space<vmem>>, vector<1x32x8xf32>
    %53 = vector.shape_cast %52 : vector<1x32x8xf32> to vector<32x8xf32>
    %cst_37 = arith.constant dense<0.000000e+00> : vector<32x8xf32>
    %54 = tpu.matmul %36, %53, %cst_37 {dimension_numbers = #tpu.dot_dimension_numbers<[1], [0], [0], [1], [0, 0, 1, 1], [], []>} : vector<32x32xf32>, vector<32x8xf32>, vector<32x8xf32> -> vector<32x8xf32>
    %c0_38 = arith.constant 0 : index
    %c0_39 = arith.constant 0 : index
    %c0_40 = arith.constant 0 : index
    %55 = vector.load %arg12[%c0_38, %c0_39, %c0_40] : memref<8x1x8xf32, #tpu.memory_space<vmem>>, vector<1x1x8xf32>
    %56 = vector.shape_cast %55 : vector<1x1x8xf32> to vector<1x8xf32>
    %57 = vector.broadcast %56 : vector<1x8xf32> to vector<32x8xf32>
    %58 = arith.addf %54, %57 : vector<32x8xf32>
    %59 = vector.shape_cast %44 : vector<32x8xf32> to vector<2x16x8xf32>
    %60 = vector.shape_cast %51 : vector<32x8xf32> to vector<2x16x8xf32>
    %61 = vector.shape_cast %58 : vector<32x8xf32> to vector<2x16x8xf32>
    "tpu.trace_start"() <{level = 10 : i32, message = "bqd,bkd->bqk"}> : () -> ()
    %cst_41 = arith.constant dense<0.000000e+00> : vector<2x16x16xf32>
    %62 = tpu.matmul %59, %60, %cst_41 {dimension_numbers = #tpu.dot_dimension_numbers<[2], [2], [1], [1], [0, 0, 0, 1, 1, 1], [0], [0]>} : vector<2x16x8xf32>, vector<2x16x8xf32>, vector<2x16x16xf32> -> vector<2x16x16xf32>
    "tpu.trace_stop"() : () -> ()
    %cst_42 = arith.constant dense<0xFF800000> : vector<2x16xf32>
    %63 = vector.multi_reduction <maximumf>, %62, %cst_42 [2] : vector<2x16x16xf32> to vector<2x16xf32>
    %64 = vector.shape_cast %63 : vector<2x16xf32> to vector<2x16x1xf32>
    %65 = vector.broadcast %64 : vector<2x16x1xf32> to vector<2x16x16xf32>
    %66 = arith.subf %62, %65 : vector<2x16x16xf32>
    %67 = math.exp %66 : vector<2x16x16xf32>
    %cst_43 = arith.constant dense<0.000000e+00> : vector<2x16xf32>
    %68 = vector.multi_reduction <add>, %67, %cst_43 [2] : vector<2x16x16xf32> to vector<2x16xf32>
    %69 = vector.shape_cast %68 : vector<2x16xf32> to vector<2x16x1xf32>
    %70 = tpu.reciprocal %69 {approx = true} : vector<2x16x1xf32> -> vector<2x16x1xf32>
    %71 = vector.broadcast %70 : vector<2x16x1xf32> to vector<2x16x16xf32>
    %72 = arith.mulf %67, %71 : vector<2x16x16xf32>
    "tpu.trace_start"() <{level = 10 : i32, message = "bqk,bkd->bqd"}> : () -> ()
    %cst_44 = arith.constant dense<0.000000e+00> : vector<2x16x8xf32>
    %73 = tpu.matmul %72, %61, %cst_44 {dimension_numbers = #tpu.dot_dimension_numbers<[2], [1], [1], [2], [0, 0, 0, 1, 1, 2], [0], [0]>} : vector<2x16x16xf32>, vector<2x16x8xf32>, vector<2x16x8xf32> -> vector<2x16x8xf32>
    "tpu.trace_stop"() : () -> ()
    %74 = vector.shape_cast %73 : vector<2x16x8xf32> to vector<32x8xf32>
    %c0_45 = arith.constant 0 : index
    %c0_46 = arith.constant 0 : index
    %c0_47 = arith.constant 0 : index
    %75 = vector.load %arg13[%c0_45, %c0_46, %c0_47] : memref<8x8x32xf32, #tpu.memory_space<vmem>>, vector<1x8x32xf32>
    %76 = vector.shape_cast %75 : vector<1x8x32xf32> to vector<8x32xf32>
    %cst_48 = arith.constant dense<0.000000e+00> : vector<32x32xf32>
    %77 = tpu.matmul %74, %76, %cst_48 {dimension_numbers = #tpu.dot_dimension_numbers<[1], [0], [0], [1], [0, 0, 1, 1], [], []>} : vector<32x8xf32>, vector<8x32xf32>, vector<32x32xf32> -> vector<32x32xf32>
    %78 = arith.addf %37, %77 : vector<32x32xf32>
    %c1 = arith.constant 1 : index
    %c0_49 = arith.constant 0 : index
    %c0_50 = arith.constant 0 : index
    %79 = vector.load %arg7[%c1, %c0_49, %c0_50] : memref<8x32x8xf32, #tpu.memory_space<vmem>>, vector<1x32x8xf32>
    %80 = vector.shape_cast %79 : vector<1x32x8xf32> to vector<32x8xf32>
    %cst_51 = arith.constant dense<0.000000e+00> : vector<32x8xf32>
    %81 = tpu.matmul %36, %80, %cst_51 {dimension_numbers = #tpu.dot_dimension_numbers<[1], [0], [0], [1], [0, 0, 1, 1], [], []>} : vector<32x32xf32>, vector<32x8xf32>, vector<32x8xf32> -> vector<32x8xf32>
    %c1_52 = arith.constant 1 : index
    %c0_53 = arith.constant 0 : index
    %c0_54 = arith.constant 0 : index
    %82 = vector.load %arg8[%c1_52, %c0_53, %c0_54] : memref<8x1x8xf32, #tpu.memory_space<vmem>>, vector<1x1x8xf32>
    %83 = vector.shape_cast %82 : vector<1x1x8xf32> to vector<1x8xf32>
    %84 = vector.broadcast %83 : vector<1x8xf32> to vector<32x8xf32>
    %85 = arith.addf %81, %84 : vector<32x8xf32>
    %c1_55 = arith.constant 1 : index
    %c0_56 = arith.constant 0 : index
    %c0_57 = arith.constant 0 : index
    %86 = vector.load %arg9[%c1_55, %c0_56, %c0_57] : memref<8x32x8xf32, #tpu.memory_space<vmem>>, vector<1x32x8xf32>
    %87 = vector.shape_cast %86 : vector<1x32x8xf32> to vector<32x8xf32>
    %cst_58 = arith.constant dense<0.000000e+00> : vector<32x8xf32>
    %88 = tpu.matmul %36, %87, %cst_58 {dimension_numbers = #tpu.dot_dimension_numbers<[1], [0], [0], [1], [0, 0, 1, 1], [], []>} : vector<32x32xf32>, vector<32x8xf32>, vector<32x8xf32> -> vector<32x8xf32>
    %c1_59 = arith.constant 1 : index
    %c0_60 = arith.constant 0 : index
    %c0_61 = arith.constant 0 : index
    %89 = vector.load %arg10[%c1_59, %c0_60, %c0_61] : memref<8x1x8xf32, #tpu.memory_space<vmem>>, vector<1x1x8xf32>
    %90 = vector.shape_cast %89 : vector<1x1x8xf32> to vector<1x8xf32>
    %91 = vector.broadcast %90 : vector<1x8xf32> to vector<32x8xf32>
    %92 = arith.addf %88, %91 : vector<32x8xf32>
    %c1_62 = arith.constant 1 : index
    %c0_63 = arith.constant 0 : index
    %c0_64 = arith.constant 0 : index
    %93 = vector.load %arg11[%c1_62, %c0_63, %c0_64] : memref<8x32x8xf32, #tpu.memory_space<vmem>>, vector<1x32x8xf32>
    %94 = vector.shape_cast %93 : vector<1x32x8xf32> to vector<32x8xf32>
    %cst_65 = arith.constant dense<0.000000e+00> : vector<32x8xf32>
    %95 = tpu.matmul %36, %94, %cst_65 {dimension_numbers = #tpu.dot_dimension_numbers<[1], [0], [0], [1], [0, 0, 1, 1], [], []>} : vector<32x32xf32>, vector<32x8xf32>, vector<32x8xf32> -> vector<32x8xf32>
    %c1_66 = arith.constant 1 : index
    %c0_67 = arith.constant 0 : index
    %c0_68 = arith.constant 0 : index
    %96 = vector.load %arg12[%c1_66, %c0_67, %c0_68] : memref<8x1x8xf32, #tpu.memory_space<vmem>>, vector<1x1x8xf32>
    %97 = vector.shape_cast %96 : vector<1x1x8xf32> to vector<1x8xf32>
    %98 = vector.broadcast %97 : vector<1x8xf32> to vector<32x8xf32>
    %99 = arith.addf %95, %98 : vector<32x8xf32>
    %100 = vector.shape_cast %85 : vector<32x8xf32> to vector<2x16x8xf32>
    %101 = vector.shape_cast %92 : vector<32x8xf32> to vector<2x16x8xf32>
    %102 = vector.shape_cast %99 : vector<32x8xf32> to vector<2x16x8xf32>
    "tpu.trace_start"() <{level = 10 : i32, message = "bqd,bkd->bqk"}> : () -> ()
    %cst_69 = arith.constant dense<0.000000e+00> : vector<2x16x16xf32>
    %103 = tpu.matmul %100, %101, %cst_69 {dimension_numbers = #tpu.dot_dimension_numbers<[2], [2], [1], [1], [0, 0, 0, 1, 1, 1], [0], [0]>} : vector<2x16x8xf32>, vector<2x16x8xf32>, vector<2x16x16xf32> -> vector<2x16x16xf32>
    "tpu.trace_stop"() : () -> ()
    %cst_70 = arith.constant dense<0xFF800000> : vector<2x16xf32>
    %104 = vector.multi_reduction <maximumf>, %103, %cst_70 [2] : vector<2x16x16xf32> to vector<2x16xf32>
    %105 = vector.shape_cast %104 : vector<2x16xf32> to vector<2x16x1xf32>
    %106 = vector.broadcast %105 : vector<2x16x1xf32> to vector<2x16x16xf32>
    %107 = arith.subf %103, %106 : vector<2x16x16xf32>
    %108 = math.exp %107 : vector<2x16x16xf32>
    %cst_71 = arith.constant dense<0.000000e+00> : vector<2x16xf32>
    %109 = vector.multi_reduction <add>, %108, %cst_71 [2] : vector<2x16x16xf32> to vector<2x16xf32>
    %110 = vector.shape_cast %109 : vector<2x16xf32> to vector<2x16x1xf32>
    %111 = tpu.reciprocal %110 {approx = true} : vector<2x16x1xf32> -> vector<2x16x1xf32>
    %112 = vector.broadcast %111 : vector<2x16x1xf32> to vector<2x16x16xf32>
    %113 = arith.mulf %108, %112 : vector<2x16x16xf32>
    "tpu.trace_start"() <{level = 10 : i32, message = "bqk,bkd->bqd"}> : () -> ()
    %cst_72 = arith.constant dense<0.000000e+00> : vector<2x16x8xf32>
    %114 = tpu.matmul %113, %102, %cst_72 {dimension_numbers = #tpu.dot_dimension_numbers<[2], [1], [1], [2], [0, 0, 0, 1, 1, 2], [0], [0]>} : vector<2x16x16xf32>, vector<2x16x8xf32>, vector<2x16x8xf32> -> vector<2x16x8xf32>
    "tpu.trace_stop"() : () -> ()
    %115 = vector.shape_cast %114 : vector<2x16x8xf32> to vector<32x8xf32>
    %c1_73 = arith.constant 1 : index
    %c0_74 = arith.constant 0 : index
    %c0_75 = arith.constant 0 : index
    %116 = vector.load %arg13[%c1_73, %c0_74, %c0_75] : memref<8x8x32xf32, #tpu.memory_space<vmem>>, vector<1x8x32xf32>
    %117 = vector.shape_cast %116 : vector<1x8x32xf32> to vector<8x32xf32>
    %cst_76 = arith.constant dense<0.000000e+00> : vector<32x32xf32>
    %118 = tpu.matmul %115, %117, %cst_76 {dimension_numbers = #tpu.dot_dimension_numbers<[1], [0], [0], [1], [0, 0, 1, 1], [], []>} : vector<32x8xf32>, vector<8x32xf32>, vector<32x32xf32> -> vector<32x32xf32>
    %119 = arith.addf %78, %118 : vector<32x32xf32>
    %c2 = arith.constant 2 : index
    %c0_77 = arith.constant 0 : index
    %c0_78 = arith.constant 0 : index
    %120 = vector.load %arg7[%c2, %c0_77, %c0_78] : memref<8x32x8xf32, #tpu.memory_space<vmem>>, vector<1x32x8xf32>
    %121 = vector.shape_cast %120 : vector<1x32x8xf32> to vector<32x8xf32>
    %cst_79 = arith.constant dense<0.000000e+00> : vector<32x8xf32>
    %122 = tpu.matmul %36, %121, %cst_79 {dimension_numbers = #tpu.dot_dimension_numbers<[1], [0], [0], [1], [0, 0, 1, 1], [], []>} : vector<32x32xf32>, vector<32x8xf32>, vector<32x8xf32> -> vector<32x8xf32>
    %c2_80 = arith.constant 2 : index
    %c0_81 = arith.constant 0 : index
    %c0_82 = arith.constant 0 : index
    %123 = vector.load %arg8[%c2_80, %c0_81, %c0_82] : memref<8x1x8xf32, #tpu.memory_space<vmem>>, vector<1x1x8xf32>
    %124 = vector.shape_cast %123 : vector<1x1x8xf32> to vector<1x8xf32>
    %125 = vector.broadcast %124 : vector<1x8xf32> to vector<32x8xf32>
    %126 = arith.addf %122, %125 : vector<32x8xf32>
    %c2_83 = arith.constant 2 : index
    %c0_84 = arith.constant 0 : index
    %c0_85 = arith.constant 0 : index
    %127 = vector.load %arg9[%c2_83, %c0_84, %c0_85] : memref<8x32x8xf32, #tpu.memory_space<vmem>>, vector<1x32x8xf32>
    %128 = vector.shape_cast %127 : vector<1x32x8xf32> to vector<32x8xf32>
    %cst_86 = arith.constant dense<0.000000e+00> : vector<32x8xf32>
    %129 = tpu.matmul %36, %128, %cst_86 {dimension_numbers = #tpu.dot_dimension_numbers<[1], [0], [0], [1], [0, 0, 1, 1], [], []>} : vector<32x32xf32>, vector<32x8xf32>, vector<32x8xf32> -> vector<32x8xf32>
    %c2_87 = arith.constant 2 : index
    %c0_88 = arith.constant 0 : index
    %c0_89 = arith.constant 0 : index
    %130 = vector.load %arg10[%c2_87, %c0_88, %c0_89] : memref<8x1x8xf32, #tpu.memory_space<vmem>>, vector<1x1x8xf32>
    %131 = vector.shape_cast %130 : vector<1x1x8xf32> to vector<1x8xf32>
    %132 = vector.broadcast %131 : vector<1x8xf32> to vector<32x8xf32>
    %133 = arith.addf %129, %132 : vector<32x8xf32>
    %c2_90 = arith.constant 2 : index
    %c0_91 = arith.constant 0 : index
    %c0_92 = arith.constant 0 : index
    %134 = vector.load %arg11[%c2_90, %c0_91, %c0_92] : memref<8x32x8xf32, #tpu.memory_space<vmem>>, vector<1x32x8xf32>
    %135 = vector.shape_cast %134 : vector<1x32x8xf32> to vector<32x8xf32>
    %cst_93 = arith.constant dense<0.000000e+00> : vector<32x8xf32>
    %136 = tpu.matmul %36, %135, %cst_93 {dimension_numbers = #tpu.dot_dimension_numbers<[1], [0], [0], [1], [0, 0, 1, 1], [], []>} : vector<32x32xf32>, vector<32x8xf32>, vector<32x8xf32> -> vector<32x8xf32>
    %c2_94 = arith.constant 2 : index
    %c0_95 = arith.constant 0 : index
    %c0_96 = arith.constant 0 : index
    %137 = vector.load %arg12[%c2_94, %c0_95, %c0_96] : memref<8x1x8xf32, #tpu.memory_space<vmem>>, vector<1x1x8xf32>
    %138 = vector.shape_cast %137 : vector<1x1x8xf32> to vector<1x8xf32>
    %139 = vector.broadcast %138 : vector<1x8xf32> to vector<32x8xf32>
    %140 = arith.addf %136, %139 : vector<32x8xf32>
    %141 = vector.shape_cast %126 : vector<32x8xf32> to vector<2x16x8xf32>
    %142 = vector.shape_cast %133 : vector<32x8xf32> to vector<2x16x8xf32>
    %143 = vector.shape_cast %140 : vector<32x8xf32> to vector<2x16x8xf32>
    "tpu.trace_start"() <{level = 10 : i32, message = "bqd,bkd->bqk"}> : () -> ()
    %cst_97 = arith.constant dense<0.000000e+00> : vector<2x16x16xf32>
    %144 = tpu.matmul %141, %142, %cst_97 {dimension_numbers = #tpu.dot_dimension_numbers<[2], [2], [1], [1], [0, 0, 0, 1, 1, 1], [0], [0]>} : vector<2x16x8xf32>, vector<2x16x8xf32>, vector<2x16x16xf32> -> vector<2x16x16xf32>
    "tpu.trace_stop"() : () -> ()
    %cst_98 = arith.constant dense<0xFF800000> : vector<2x16xf32>
    %145 = vector.multi_reduction <maximumf>, %144, %cst_98 [2] : vector<2x16x16xf32> to vector<2x16xf32>
    %146 = vector.shape_cast %145 : vector<2x16xf32> to vector<2x16x1xf32>
    %147 = vector.broadcast %146 : vector<2x16x1xf32> to vector<2x16x16xf32>
    %148 = arith.subf %144, %147 : vector<2x16x16xf32>
    %149 = math.exp %148 : vector<2x16x16xf32>
    %cst_99 = arith.constant dense<0.000000e+00> : vector<2x16xf32>
    %150 = vector.multi_reduction <add>, %149, %cst_99 [2] : vector<2x16x16xf32> to vector<2x16xf32>
    %151 = vector.shape_cast %150 : vector<2x16xf32> to vector<2x16x1xf32>
    %152 = tpu.reciprocal %151 {approx = true} : vector<2x16x1xf32> -> vector<2x16x1xf32>
    %153 = vector.broadcast %152 : vector<2x16x1xf32> to vector<2x16x16xf32>
    %154 = arith.mulf %149, %153 : vector<2x16x16xf32>
    "tpu.trace_start"() <{level = 10 : i32, message = "bqk,bkd->bqd"}> : () -> ()
    %cst_100 = arith.constant dense<0.000000e+00> : vector<2x16x8xf32>
    %155 = tpu.matmul %154, %143, %cst_100 {dimension_numbers = #tpu.dot_dimension_numbers<[2], [1], [1], [2], [0, 0, 0, 1, 1, 2], [0], [0]>} : vector<2x16x16xf32>, vector<2x16x8xf32>, vector<2x16x8xf32> -> vector<2x16x8xf32>
    "tpu.trace_stop"() : () -> ()
    %156 = vector.shape_cast %155 : vector<2x16x8xf32> to vector<32x8xf32>
    %c2_101 = arith.constant 2 : index
    %c0_102 = arith.constant 0 : index
    %c0_103 = arith.constant 0 : index
    %157 = vector.load %arg13[%c2_101, %c0_102, %c0_103] : memref<8x8x32xf32, #tpu.memory_space<vmem>>, vector<1x8x32xf32>
    %158 = vector.shape_cast %157 : vector<1x8x32xf32> to vector<8x32xf32>
    %cst_104 = arith.constant dense<0.000000e+00> : vector<32x32xf32>
    %159 = tpu.matmul %156, %158, %cst_104 {dimension_numbers = #tpu.dot_dimension_numbers<[1], [0], [0], [1], [0, 0, 1, 1], [], []>} : vector<32x8xf32>, vector<8x32xf32>, vector<32x32xf32> -> vector<32x32xf32>
    %160 = arith.addf %119, %159 : vector<32x32xf32>
    %c3 = arith.constant 3 : index
    %c0_105 = arith.constant 0 : index
    %c0_106 = arith.constant 0 : index
    %161 = vector.load %arg7[%c3, %c0_105, %c0_106] : memref<8x32x8xf32, #tpu.memory_space<vmem>>, vector<1x32x8xf32>
    %162 = vector.shape_cast %161 : vector<1x32x8xf32> to vector<32x8xf32>
    %cst_107 = arith.constant dense<0.000000e+00> : vector<32x8xf32>
    %163 = tpu.matmul %36, %162, %cst_107 {dimension_numbers = #tpu.dot_dimension_numbers<[1], [0], [0], [1], [0, 0, 1, 1], [], []>} : vector<32x32xf32>, vector<32x8xf32>, vector<32x8xf32> -> vector<32x8xf32>
    %c3_108 = arith.constant 3 : index
    %c0_109 = arith.constant 0 : index
    %c0_110 = arith.constant 0 : index
    %164 = vector.load %arg8[%c3_108, %c0_109, %c0_110] : memref<8x1x8xf32, #tpu.memory_space<vmem>>, vector<1x1x8xf32>
    %165 = vector.shape_cast %164 : vector<1x1x8xf32> to vector<1x8xf32>
    %166 = vector.broadcast %165 : vector<1x8xf32> to vector<32x8xf32>
    %167 = arith.addf %163, %166 : vector<32x8xf32>
    %c3_111 = arith.constant 3 : index
    %c0_112 = arith.constant 0 : index
    %c0_113 = arith.constant 0 : index
    %168 = vector.load %arg9[%c3_111, %c0_112, %c0_113] : memref<8x32x8xf32, #tpu.memory_space<vmem>>, vector<1x32x8xf32>
    %169 = vector.shape_cast %168 : vector<1x32x8xf32> to vector<32x8xf32>
    %cst_114 = arith.constant dense<0.000000e+00> : vector<32x8xf32>
    %170 = tpu.matmul %36, %169, %cst_114 {dimension_numbers = #tpu.dot_dimension_numbers<[1], [0], [0], [1], [0, 0, 1, 1], [], []>} : vector<32x32xf32>, vector<32x8xf32>, vector<32x8xf32> -> vector<32x8xf32>
    %c3_115 = arith.constant 3 : index
    %c0_116 = arith.constant 0 : index
    %c0_117 = arith.constant 0 : index
    %171 = vector.load %arg10[%c3_115, %c0_116, %c0_117] : memref<8x1x8xf32, #tpu.memory_space<vmem>>, vector<1x1x8xf32>
    %172 = vector.shape_cast %171 : vector<1x1x8xf32> to vector<1x8xf32>
    %173 = vector.broadcast %172 : vector<1x8xf32> to vector<32x8xf32>
    %174 = arith.addf %170, %173 : vector<32x8xf32>
    %c3_118 = arith.constant 3 : index
    %c0_119 = arith.constant 0 : index
    %c0_120 = arith.constant 0 : index
    %175 = vector.load %arg11[%c3_118, %c0_119, %c0_120] : memref<8x32x8xf32, #tpu.memory_space<vmem>>, vector<1x32x8xf32>
    %176 = vector.shape_cast %175 : vector<1x32x8xf32> to vector<32x8xf32>
    %cst_121 = arith.constant dense<0.000000e+00> : vector<32x8xf32>
    %177 = tpu.matmul %36, %176, %cst_121 {dimension_numbers = #tpu.dot_dimension_numbers<[1], [0], [0], [1], [0, 0, 1, 1], [], []>} : vector<32x32xf32>, vector<32x8xf32>, vector<32x8xf32> -> vector<32x8xf32>
    %c3_122 = arith.constant 3 : index
    %c0_123 = arith.constant 0 : index
    %c0_124 = arith.constant 0 : index
    %178 = vector.load %arg12[%c3_122, %c0_123, %c0_124] : memref<8x1x8xf32, #tpu.memory_space<vmem>>, vector<1x1x8xf32>
    %179 = vector.shape_cast %178 : vector<1x1x8xf32> to vector<1x8xf32>
    %180 = vector.broadcast %179 : vector<1x8xf32> to vector<32x8xf32>
    %181 = arith.addf %177, %180 : vector<32x8xf32>
    %182 = vector.shape_cast %167 : vector<32x8xf32> to vector<2x16x8xf32>
    %183 = vector.shape_cast %174 : vector<32x8xf32> to vector<2x16x8xf32>
    %184 = vector.shape_cast %181 : vector<32x8xf32> to vector<2x16x8xf32>
    "tpu.trace_start"() <{level = 10 : i32, message = "bqd,bkd->bqk"}> : () -> ()
    %cst_125 = arith.constant dense<0.000000e+00> : vector<2x16x16xf32>
    %185 = tpu.matmul %182, %183, %cst_125 {dimension_numbers = #tpu.dot_dimension_numbers<[2], [2], [1], [1], [0, 0, 0, 1, 1, 1], [0], [0]>} : vector<2x16x8xf32>, vector<2x16x8xf32>, vector<2x16x16xf32> -> vector<2x16x16xf32>
    "tpu.trace_stop"() : () -> ()
    %cst_126 = arith.constant dense<0xFF800000> : vector<2x16xf32>
    %186 = vector.multi_reduction <maximumf>, %185, %cst_126 [2] : vector<2x16x16xf32> to vector<2x16xf32>
    %187 = vector.shape_cast %186 : vector<2x16xf32> to vector<2x16x1xf32>
    %188 = vector.broadcast %187 : vector<2x16x1xf32> to vector<2x16x16xf32>
    %189 = arith.subf %185, %188 : vector<2x16x16xf32>
    %190 = math.exp %189 : vector<2x16x16xf32>
    %cst_127 = arith.constant dense<0.000000e+00> : vector<2x16xf32>
    %191 = vector.multi_reduction <add>, %190, %cst_127 [2] : vector<2x16x16xf32> to vector<2x16xf32>
    %192 = vector.shape_cast %191 : vector<2x16xf32> to vector<2x16x1xf32>
    %193 = tpu.reciprocal %192 {approx = true} : vector<2x16x1xf32> -> vector<2x16x1xf32>
    %194 = vector.broadcast %193 : vector<2x16x1xf32> to vector<2x16x16xf32>
    %195 = arith.mulf %190, %194 : vector<2x16x16xf32>
    "tpu.trace_start"() <{level = 10 : i32, message = "bqk,bkd->bqd"}> : () -> ()
    %cst_128 = arith.constant dense<0.000000e+00> : vector<2x16x8xf32>
    %196 = tpu.matmul %195, %184, %cst_128 {dimension_numbers = #tpu.dot_dimension_numbers<[2], [1], [1], [2], [0, 0, 0, 1, 1, 2], [0], [0]>} : vector<2x16x16xf32>, vector<2x16x8xf32>, vector<2x16x8xf32> -> vector<2x16x8xf32>
    "tpu.trace_stop"() : () -> ()
    %197 = vector.shape_cast %196 : vector<2x16x8xf32> to vector<32x8xf32>
    %c3_129 = arith.constant 3 : index
    %c0_130 = arith.constant 0 : index
    %c0_131 = arith.constant 0 : index
    %198 = vector.load %arg13[%c3_129, %c0_130, %c0_131] : memref<8x8x32xf32, #tpu.memory_space<vmem>>, vector<1x8x32xf32>
    %199 = vector.shape_cast %198 : vector<1x8x32xf32> to vector<8x32xf32>
    %cst_132 = arith.constant dense<0.000000e+00> : vector<32x32xf32>
    %200 = tpu.matmul %197, %199, %cst_132 {dimension_numbers = #tpu.dot_dimension_numbers<[1], [0], [0], [1], [0, 0, 1, 1], [], []>} : vector<32x8xf32>, vector<8x32xf32>, vector<32x32xf32> -> vector<32x32xf32>
    %201 = arith.addf %160, %200 : vector<32x32xf32>
    %202 = arith.addf %12, %201 : vector<32x32xf32>
    %c0_133 = arith.constant 0 : index
    %c0_134 = arith.constant 0 : index
    %c0_135 = arith.constant 0 : index
    %203 = vector.load %arg14[%c0_133, %c0_134, %c0_135] : memref<2x1x32xf32, #tpu.memory_space<vmem>>, vector<1x1x32xf32>
    %204 = vector.shape_cast %203 : vector<1x1x32xf32> to vector<1x32xf32>
    %205 = vector.broadcast %204 : vector<1x32xf32> to vector<32x32xf32>
    %206 = arith.addf %202, %205 : vector<32x32xf32>
    %c0_136 = arith.constant 0 : index
    %c0_137 = arith.constant 0 : index
    %c0_138 = arith.constant 0 : index
    %207 = vector.load %arg15[%c0_136, %c0_137, %c0_138] : memref<2x1x32xf32, #tpu.memory_space<vmem>>, vector<1x1x32xf32>
    %208 = vector.shape_cast %207 : vector<1x1x32xf32> to vector<1x32xf32>
    %c0_139 = arith.constant 0 : index
    %c0_140 = arith.constant 0 : index
    %c0_141 = arith.constant 0 : index
    %209 = vector.load %arg16[%c0_139, %c0_140, %c0_141] : memref<2x1x32xf32, #tpu.memory_space<vmem>>, vector<1x1x32xf32>
    %210 = vector.shape_cast %209 : vector<1x1x32xf32> to vector<1x32xf32>
    %cst_142 = arith.constant dense<0.000000e+00> : vector<32xf32>
    %211 = vector.multi_reduction <add>, %206, %cst_142 [1] : vector<32x32xf32> to vector<32xf32>
    %212 = vector.shape_cast %211 : vector<32xf32> to vector<32x1xf32>
    %cst_143 = arith.constant 3.200000e+01 : f32
    %213 = vector.broadcast %cst_143 : f32 to vector<32x1xf32>
    %214 = arith.divf %212, %213 : vector<32x1xf32>
    %215 = vector.broadcast %214 : vector<32x1xf32> to vector<32x32xf32>
    %216 = arith.subf %206, %215 : vector<32x32xf32>
    %217 = arith.mulf %216, %216 : vector<32x32xf32>
    %cst_144 = arith.constant dense<0.000000e+00> : vector<32xf32>
    %218 = vector.multi_reduction <add>, %217, %cst_144 [1] : vector<32x32xf32> to vector<32xf32>
    %219 = vector.shape_cast %218 : vector<32xf32> to vector<32x1xf32>
    %cst_145 = arith.constant 3.200000e+01 : f32
    %220 = vector.broadcast %cst_145 : f32 to vector<32x1xf32>
    %221 = arith.divf %219, %220 : vector<32x1xf32>
    %cst_146 = arith.constant 9.99999974E-6 : f32
    %222 = vector.broadcast %cst_146 : f32 to vector<32x1xf32>
    %223 = arith.addf %221, %222 : vector<32x1xf32>
    %224 = math.rsqrt %223 : vector<32x1xf32>
    %225 = vector.broadcast %224 : vector<32x1xf32> to vector<32x32xf32>
    %226 = arith.mulf %216, %225 : vector<32x32xf32>
    %227 = vector.broadcast %208 : vector<1x32xf32> to vector<32x32xf32>
    %228 = arith.mulf %226, %227 : vector<32x32xf32>
    %229 = vector.broadcast %210 : vector<1x32xf32> to vector<32x32xf32>
    %230 = arith.addf %228, %229 : vector<32x32xf32>
    %c0_147 = arith.constant 0 : index
    %c0_148 = arith.constant 0 : index
    %c0_149 = arith.constant 0 : index
    %231 = vector.load %arg17[%c0_147, %c0_148, %c0_149] : memref<2x32x64xf32, #tpu.memory_space<vmem>>, vector<1x32x64xf32>
    %232 = vector.shape_cast %231 : vector<1x32x64xf32> to vector<32x64xf32>
    %cst_150 = arith.constant dense<0.000000e+00> : vector<32x64xf32>
    %233 = tpu.matmul %230, %232, %cst_150 {dimension_numbers = #tpu.dot_dimension_numbers<[1], [0], [0], [1], [0, 0, 1, 1], [], []>} : vector<32x32xf32>, vector<32x64xf32>, vector<32x64xf32> -> vector<32x64xf32>
    %c0_151 = arith.constant 0 : index
    %c0_152 = arith.constant 0 : index
    %c0_153 = arith.constant 0 : index
    %234 = vector.load %arg18[%c0_151, %c0_152, %c0_153] : memref<2x1x64xf32, #tpu.memory_space<vmem>>, vector<1x1x64xf32>
    %235 = vector.shape_cast %234 : vector<1x1x64xf32> to vector<1x64xf32>
    %236 = vector.broadcast %235 : vector<1x64xf32> to vector<32x64xf32>
    %237 = arith.addf %233, %236 : vector<32x64xf32>
    %cst_154 = arith.constant 5.000000e-01 : f32
    %238 = vector.broadcast %cst_154 : f32 to vector<32x64xf32>
    %239 = arith.mulf %238, %237 : vector<32x64xf32>
    %cst_155 = arith.constant 0.707106769 : f32
    %240 = vector.broadcast %cst_155 : f32 to vector<32x64xf32>
    %241 = arith.mulf %237, %240 : vector<32x64xf32>
    %242 = math.absf %241 : vector<32x64xf32>
    %cst_156 = arith.constant 0.327591091 : f32
    %243 = vector.broadcast %cst_156 : f32 to vector<32x64xf32>
    %244 = arith.mulf %243, %242 : vector<32x64xf32>
    %cst_157 = arith.constant 1.000000e+00 : f32
    %245 = vector.broadcast %cst_157 : f32 to vector<32x64xf32>
    %246 = arith.addf %245, %244 : vector<32x64xf32>
    %cst_158 = arith.constant 1.000000e+00 : f32
    %247 = vector.broadcast %cst_158 : f32 to vector<32x64xf32>
    %248 = arith.divf %247, %246 : vector<32x64xf32>
    %cst_159 = arith.constant 1.06140542 : f32
    %249 = vector.broadcast %cst_159 : f32 to vector<32x64xf32>
    %250 = arith.mulf %249, %248 : vector<32x64xf32>
    %cst_160 = arith.constant -1.45315206 : f32
    %251 = vector.broadcast %cst_160 : f32 to vector<32x64xf32>
    %252 = arith.addf %250, %251 : vector<32x64xf32>
    %253 = arith.mulf %252, %248 : vector<32x64xf32>
    %cst_161 = arith.constant 1.42141378 : f32
    %254 = vector.broadcast %cst_161 : f32 to vector<32x64xf32>
    %255 = arith.addf %253, %254 : vector<32x64xf32>
    %256 = arith.mulf %255, %248 : vector<32x64xf32>
    %cst_162 = arith.constant -0.284496725 : f32
    %257 = vector.broadcast %cst_162 : f32 to vector<32x64xf32>
    %258 = arith.addf %256, %257 : vector<32x64xf32>
    %259 = arith.mulf %258, %248 : vector<32x64xf32>
    %cst_163 = arith.constant 0.254829586 : f32
    %260 = vector.broadcast %cst_163 : f32 to vector<32x64xf32>
    %261 = arith.addf %259, %260 : vector<32x64xf32>
    %262 = arith.mulf %261, %248 : vector<32x64xf32>
    %cst_164 = arith.constant 0.000000e+00 : f32
    %263 = vector.broadcast %cst_164 : f32 to vector<32x64xf32>
    %264 = arith.subf %263, %242 : vector<32x64xf32>
    %265 = arith.mulf %264, %242 : vector<32x64xf32>
    %266 = math.exp %265 : vector<32x64xf32>
    %267 = arith.mulf %262, %266 : vector<32x64xf32>
    %cst_165 = arith.constant 1.000000e+00 : f32
    %268 = vector.broadcast %cst_165 : f32 to vector<32x64xf32>
    %269 = arith.subf %268, %267 : vector<32x64xf32>
    %cst_166 = arith.constant 0.000000e+00 : f32
    %270 = vector.broadcast %cst_166 : f32 to vector<32x64xf32>
    %271 = arith.cmpf olt, %241, %270 : vector<32x64xf32>
    %cst_167 = arith.constant 0.000000e+00 : f32
    %272 = vector.broadcast %cst_167 : f32 to vector<32x64xf32>
    %273 = arith.subf %272, %269 : vector<32x64xf32>
    %274 = arith.select %271, %273, %269 : vector<32x64xi1>, vector<32x64xf32>
    %cst_168 = arith.constant 1.000000e+00 : f32
    %275 = vector.broadcast %cst_168 : f32 to vector<32x64xf32>
    %276 = arith.addf %275, %274 : vector<32x64xf32>
    %277 = arith.mulf %239, %276 : vector<32x64xf32>
    %c0_169 = arith.constant 0 : index
    %c0_170 = arith.constant 0 : index
    %c0_171 = arith.constant 0 : index
    %278 = vector.load %arg19[%c0_169, %c0_170, %c0_171] : memref<2x64x32xf32, #tpu.memory_space<vmem>>, vector<1x64x32xf32>
    %279 = vector.shape_cast %278 : vector<1x64x32xf32> to vector<64x32xf32>
    %cst_172 = arith.constant dense<0.000000e+00> : vector<32x32xf32>
    %280 = tpu.matmul %277, %279, %cst_172 {dimension_numbers = #tpu.dot_dimension_numbers<[1], [0], [0], [1], [0, 0, 1, 1], [], []>} : vector<32x64xf32>, vector<64x32xf32>, vector<32x32xf32> -> vector<32x32xf32>
    %281 = arith.addf %206, %280 : vector<32x32xf32>
    %c0_173 = arith.constant 0 : index
    %c0_174 = arith.constant 0 : index
    %c0_175 = arith.constant 0 : index
    %282 = vector.load %arg20[%c0_173, %c0_174, %c0_175] : memref<2x1x32xf32, #tpu.memory_space<vmem>>, vector<1x1x32xf32>
    %283 = vector.shape_cast %282 : vector<1x1x32xf32> to vector<1x32xf32>
    %284 = vector.broadcast %283 : vector<1x32xf32> to vector<32x32xf32>
    %285 = arith.addf %281, %284 : vector<32x32xf32>
    %c1_176 = arith.constant 1 : index
    %c0_177 = arith.constant 0 : index
    %c0_178 = arith.constant 0 : index
    %286 = vector.load %arg5[%c1_176, %c0_177, %c0_178] : memref<2x1x32xf32, #tpu.memory_space<vmem>>, vector<1x1x32xf32>
    %287 = vector.shape_cast %286 : vector<1x1x32xf32> to vector<1x32xf32>
    %c1_179 = arith.constant 1 : index
    %c0_180 = arith.constant 0 : index
    %c0_181 = arith.constant 0 : index
    %288 = vector.load %arg6[%c1_179, %c0_180, %c0_181] : memref<2x1x32xf32, #tpu.memory_space<vmem>>, vector<1x1x32xf32>
    %289 = vector.shape_cast %288 : vector<1x1x32xf32> to vector<1x32xf32>
    %cst_182 = arith.constant dense<0.000000e+00> : vector<32xf32>
    %290 = vector.multi_reduction <add>, %285, %cst_182 [1] : vector<32x32xf32> to vector<32xf32>
    %291 = vector.shape_cast %290 : vector<32xf32> to vector<32x1xf32>
    %cst_183 = arith.constant 3.200000e+01 : f32
    %292 = vector.broadcast %cst_183 : f32 to vector<32x1xf32>
    %293 = arith.divf %291, %292 : vector<32x1xf32>
    %294 = vector.broadcast %293 : vector<32x1xf32> to vector<32x32xf32>
    %295 = arith.subf %285, %294 : vector<32x32xf32>
    %296 = arith.mulf %295, %295 : vector<32x32xf32>
    %cst_184 = arith.constant dense<0.000000e+00> : vector<32xf32>
    %297 = vector.multi_reduction <add>, %296, %cst_184 [1] : vector<32x32xf32> to vector<32xf32>
    %298 = vector.shape_cast %297 : vector<32xf32> to vector<32x1xf32>
    %cst_185 = arith.constant 3.200000e+01 : f32
    %299 = vector.broadcast %cst_185 : f32 to vector<32x1xf32>
    %300 = arith.divf %298, %299 : vector<32x1xf32>
    %cst_186 = arith.constant 9.99999974E-6 : f32
    %301 = vector.broadcast %cst_186 : f32 to vector<32x1xf32>
    %302 = arith.addf %300, %301 : vector<32x1xf32>
    %303 = math.rsqrt %302 : vector<32x1xf32>
    %304 = vector.broadcast %303 : vector<32x1xf32> to vector<32x32xf32>
    %305 = arith.mulf %295, %304 : vector<32x32xf32>
    %306 = vector.broadcast %287 : vector<1x32xf32> to vector<32x32xf32>
    %307 = arith.mulf %305, %306 : vector<32x32xf32>
    %308 = vector.broadcast %289 : vector<1x32xf32> to vector<32x32xf32>
    %309 = arith.addf %307, %308 : vector<32x32xf32>
    %cst_187 = arith.constant 0.000000e+00 : f32
    %310 = vector.broadcast %cst_187 : f32 to vector<32x32xf32>
    %c4 = arith.constant 4 : index
    %c0_188 = arith.constant 0 : index
    %c0_189 = arith.constant 0 : index
    %311 = vector.load %arg7[%c4, %c0_188, %c0_189] : memref<8x32x8xf32, #tpu.memory_space<vmem>>, vector<1x32x8xf32>
    %312 = vector.shape_cast %311 : vector<1x32x8xf32> to vector<32x8xf32>
    %cst_190 = arith.constant dense<0.000000e+00> : vector<32x8xf32>
    %313 = tpu.matmul %309, %312, %cst_190 {dimension_numbers = #tpu.dot_dimension_numbers<[1], [0], [0], [1], [0, 0, 1, 1], [], []>} : vector<32x32xf32>, vector<32x8xf32>, vector<32x8xf32> -> vector<32x8xf32>
    %c4_191 = arith.constant 4 : index
    %c0_192 = arith.constant 0 : index
    %c0_193 = arith.constant 0 : index
    %314 = vector.load %arg8[%c4_191, %c0_192, %c0_193] : memref<8x1x8xf32, #tpu.memory_space<vmem>>, vector<1x1x8xf32>
    %315 = vector.shape_cast %314 : vector<1x1x8xf32> to vector<1x8xf32>
    %316 = vector.broadcast %315 : vector<1x8xf32> to vector<32x8xf32>
    %317 = arith.addf %313, %316 : vector<32x8xf32>
    %c4_194 = arith.constant 4 : index
    %c0_195 = arith.constant 0 : index
    %c0_196 = arith.constant 0 : index
    %318 = vector.load %arg9[%c4_194, %c0_195, %c0_196] : memref<8x32x8xf32, #tpu.memory_space<vmem>>, vector<1x32x8xf32>
    %319 = vector.shape_cast %318 : vector<1x32x8xf32> to vector<32x8xf32>
    %cst_197 = arith.constant dense<0.000000e+00> : vector<32x8xf32>
    %320 = tpu.matmul %309, %319, %cst_197 {dimension_numbers = #tpu.dot_dimension_numbers<[1], [0], [0], [1], [0, 0, 1, 1], [], []>} : vector<32x32xf32>, vector<32x8xf32>, vector<32x8xf32> -> vector<32x8xf32>
    %c4_198 = arith.constant 4 : index
    %c0_199 = arith.constant 0 : index
    %c0_200 = arith.constant 0 : index
    %321 = vector.load %arg10[%c4_198, %c0_199, %c0_200] : memref<8x1x8xf32, #tpu.memory_space<vmem>>, vector<1x1x8xf32>
    %322 = vector.shape_cast %321 : vector<1x1x8xf32> to vector<1x8xf32>
    %323 = vector.broadcast %322 : vector<1x8xf32> to vector<32x8xf32>
    %324 = arith.addf %320, %323 : vector<32x8xf32>
    %c4_201 = arith.constant 4 : index
    %c0_202 = arith.constant 0 : index
    %c0_203 = arith.constant 0 : index
    %325 = vector.load %arg11[%c4_201, %c0_202, %c0_203] : memref<8x32x8xf32, #tpu.memory_space<vmem>>, vector<1x32x8xf32>
    %326 = vector.shape_cast %325 : vector<1x32x8xf32> to vector<32x8xf32>
    %cst_204 = arith.constant dense<0.000000e+00> : vector<32x8xf32>
    %327 = tpu.matmul %309, %326, %cst_204 {dimension_numbers = #tpu.dot_dimension_numbers<[1], [0], [0], [1], [0, 0, 1, 1], [], []>} : vector<32x32xf32>, vector<32x8xf32>, vector<32x8xf32> -> vector<32x8xf32>
    %c4_205 = arith.constant 4 : index
    %c0_206 = arith.constant 0 : index
    %c0_207 = arith.constant 0 : index
    %328 = vector.load %arg12[%c4_205, %c0_206, %c0_207] : memref<8x1x8xf32, #tpu.memory_space<vmem>>, vector<1x1x8xf32>
    %329 = vector.shape_cast %328 : vector<1x1x8xf32> to vector<1x8xf32>
    %330 = vector.broadcast %329 : vector<1x8xf32> to vector<32x8xf32>
    %331 = arith.addf %327, %330 : vector<32x8xf32>
    %332 = vector.shape_cast %317 : vector<32x8xf32> to vector<2x16x8xf32>
    %333 = vector.shape_cast %324 : vector<32x8xf32> to vector<2x16x8xf32>
    %334 = vector.shape_cast %331 : vector<32x8xf32> to vector<2x16x8xf32>
    "tpu.trace_start"() <{level = 10 : i32, message = "bqd,bkd->bqk"}> : () -> ()
    %cst_208 = arith.constant dense<0.000000e+00> : vector<2x16x16xf32>
    %335 = tpu.matmul %332, %333, %cst_208 {dimension_numbers = #tpu.dot_dimension_numbers<[2], [2], [1], [1], [0, 0, 0, 1, 1, 1], [0], [0]>} : vector<2x16x8xf32>, vector<2x16x8xf32>, vector<2x16x16xf32> -> vector<2x16x16xf32>
    "tpu.trace_stop"() : () -> ()
    %cst_209 = arith.constant dense<0xFF800000> : vector<2x16xf32>
    %336 = vector.multi_reduction <maximumf>, %335, %cst_209 [2] : vector<2x16x16xf32> to vector<2x16xf32>
    %337 = vector.shape_cast %336 : vector<2x16xf32> to vector<2x16x1xf32>
    %338 = vector.broadcast %337 : vector<2x16x1xf32> to vector<2x16x16xf32>
    %339 = arith.subf %335, %338 : vector<2x16x16xf32>
    %340 = math.exp %339 : vector<2x16x16xf32>
    %cst_210 = arith.constant dense<0.000000e+00> : vector<2x16xf32>
    %341 = vector.multi_reduction <add>, %340, %cst_210 [2] : vector<2x16x16xf32> to vector<2x16xf32>
    %342 = vector.shape_cast %341 : vector<2x16xf32> to vector<2x16x1xf32>
    %343 = tpu.reciprocal %342 {approx = true} : vector<2x16x1xf32> -> vector<2x16x1xf32>
    %344 = vector.broadcast %343 : vector<2x16x1xf32> to vector<2x16x16xf32>
    %345 = arith.mulf %340, %344 : vector<2x16x16xf32>
    "tpu.trace_start"() <{level = 10 : i32, message = "bqk,bkd->bqd"}> : () -> ()
    %cst_211 = arith.constant dense<0.000000e+00> : vector<2x16x8xf32>
    %346 = tpu.matmul %345, %334, %cst_211 {dimension_numbers = #tpu.dot_dimension_numbers<[2], [1], [1], [2], [0, 0, 0, 1, 1, 2], [0], [0]>} : vector<2x16x16xf32>, vector<2x16x8xf32>, vector<2x16x8xf32> -> vector<2x16x8xf32>
    "tpu.trace_stop"() : () -> ()
    %347 = vector.shape_cast %346 : vector<2x16x8xf32> to vector<32x8xf32>
    %c4_212 = arith.constant 4 : index
    %c0_213 = arith.constant 0 : index
    %c0_214 = arith.constant 0 : index
    %348 = vector.load %arg13[%c4_212, %c0_213, %c0_214] : memref<8x8x32xf32, #tpu.memory_space<vmem>>, vector<1x8x32xf32>
    %349 = vector.shape_cast %348 : vector<1x8x32xf32> to vector<8x32xf32>
    %cst_215 = arith.constant dense<0.000000e+00> : vector<32x32xf32>
    %350 = tpu.matmul %347, %349, %cst_215 {dimension_numbers = #tpu.dot_dimension_numbers<[1], [0], [0], [1], [0, 0, 1, 1], [], []>} : vector<32x8xf32>, vector<8x32xf32>, vector<32x32xf32> -> vector<32x32xf32>
    %351 = arith.addf %310, %350 : vector<32x32xf32>
    %c5 = arith.constant 5 : index
    %c0_216 = arith.constant 0 : index
    %c0_217 = arith.constant 0 : index
    %352 = vector.load %arg7[%c5, %c0_216, %c0_217] : memref<8x32x8xf32, #tpu.memory_space<vmem>>, vector<1x32x8xf32>
    %353 = vector.shape_cast %352 : vector<1x32x8xf32> to vector<32x8xf32>
    %cst_218 = arith.constant dense<0.000000e+00> : vector<32x8xf32>
    %354 = tpu.matmul %309, %353, %cst_218 {dimension_numbers = #tpu.dot_dimension_numbers<[1], [0], [0], [1], [0, 0, 1, 1], [], []>} : vector<32x32xf32>, vector<32x8xf32>, vector<32x8xf32> -> vector<32x8xf32>
    %c5_219 = arith.constant 5 : index
    %c0_220 = arith.constant 0 : index
    %c0_221 = arith.constant 0 : index
    %355 = vector.load %arg8[%c5_219, %c0_220, %c0_221] : memref<8x1x8xf32, #tpu.memory_space<vmem>>, vector<1x1x8xf32>
    %356 = vector.shape_cast %355 : vector<1x1x8xf32> to vector<1x8xf32>
    %357 = vector.broadcast %356 : vector<1x8xf32> to vector<32x8xf32>
    %358 = arith.addf %354, %357 : vector<32x8xf32>
    %c5_222 = arith.constant 5 : index
    %c0_223 = arith.constant 0 : index
    %c0_224 = arith.constant 0 : index
    %359 = vector.load %arg9[%c5_222, %c0_223, %c0_224] : memref<8x32x8xf32, #tpu.memory_space<vmem>>, vector<1x32x8xf32>
    %360 = vector.shape_cast %359 : vector<1x32x8xf32> to vector<32x8xf32>
    %cst_225 = arith.constant dense<0.000000e+00> : vector<32x8xf32>
    %361 = tpu.matmul %309, %360, %cst_225 {dimension_numbers = #tpu.dot_dimension_numbers<[1], [0], [0], [1], [0, 0, 1, 1], [], []>} : vector<32x32xf32>, vector<32x8xf32>, vector<32x8xf32> -> vector<32x8xf32>
    %c5_226 = arith.constant 5 : index
    %c0_227 = arith.constant 0 : index
    %c0_228 = arith.constant 0 : index
    %362 = vector.load %arg10[%c5_226, %c0_227, %c0_228] : memref<8x1x8xf32, #tpu.memory_space<vmem>>, vector<1x1x8xf32>
    %363 = vector.shape_cast %362 : vector<1x1x8xf32> to vector<1x8xf32>
    %364 = vector.broadcast %363 : vector<1x8xf32> to vector<32x8xf32>
    %365 = arith.addf %361, %364 : vector<32x8xf32>
    %c5_229 = arith.constant 5 : index
    %c0_230 = arith.constant 0 : index
    %c0_231 = arith.constant 0 : index
    %366 = vector.load %arg11[%c5_229, %c0_230, %c0_231] : memref<8x32x8xf32, #tpu.memory_space<vmem>>, vector<1x32x8xf32>
    %367 = vector.shape_cast %366 : vector<1x32x8xf32> to vector<32x8xf32>
    %cst_232 = arith.constant dense<0.000000e+00> : vector<32x8xf32>
    %368 = tpu.matmul %309, %367, %cst_232 {dimension_numbers = #tpu.dot_dimension_numbers<[1], [0], [0], [1], [0, 0, 1, 1], [], []>} : vector<32x32xf32>, vector<32x8xf32>, vector<32x8xf32> -> vector<32x8xf32>
    %c5_233 = arith.constant 5 : index
    %c0_234 = arith.constant 0 : index
    %c0_235 = arith.constant 0 : index
    %369 = vector.load %arg12[%c5_233, %c0_234, %c0_235] : memref<8x1x8xf32, #tpu.memory_space<vmem>>, vector<1x1x8xf32>
    %370 = vector.shape_cast %369 : vector<1x1x8xf32> to vector<1x8xf32>
    %371 = vector.broadcast %370 : vector<1x8xf32> to vector<32x8xf32>
    %372 = arith.addf %368, %371 : vector<32x8xf32>
    %373 = vector.shape_cast %358 : vector<32x8xf32> to vector<2x16x8xf32>
    %374 = vector.shape_cast %365 : vector<32x8xf32> to vector<2x16x8xf32>
    %375 = vector.shape_cast %372 : vector<32x8xf32> to vector<2x16x8xf32>
    "tpu.trace_start"() <{level = 10 : i32, message = "bqd,bkd->bqk"}> : () -> ()
    %cst_236 = arith.constant dense<0.000000e+00> : vector<2x16x16xf32>
    %376 = tpu.matmul %373, %374, %cst_236 {dimension_numbers = #tpu.dot_dimension_numbers<[2], [2], [1], [1], [0, 0, 0, 1, 1, 1], [0], [0]>} : vector<2x16x8xf32>, vector<2x16x8xf32>, vector<2x16x16xf32> -> vector<2x16x16xf32>
    "tpu.trace_stop"() : () -> ()
    %cst_237 = arith.constant dense<0xFF800000> : vector<2x16xf32>
    %377 = vector.multi_reduction <maximumf>, %376, %cst_237 [2] : vector<2x16x16xf32> to vector<2x16xf32>
    %378 = vector.shape_cast %377 : vector<2x16xf32> to vector<2x16x1xf32>
    %379 = vector.broadcast %378 : vector<2x16x1xf32> to vector<2x16x16xf32>
    %380 = arith.subf %376, %379 : vector<2x16x16xf32>
    %381 = math.exp %380 : vector<2x16x16xf32>
    %cst_238 = arith.constant dense<0.000000e+00> : vector<2x16xf32>
    %382 = vector.multi_reduction <add>, %381, %cst_238 [2] : vector<2x16x16xf32> to vector<2x16xf32>
    %383 = vector.shape_cast %382 : vector<2x16xf32> to vector<2x16x1xf32>
    %384 = tpu.reciprocal %383 {approx = true} : vector<2x16x1xf32> -> vector<2x16x1xf32>
    %385 = vector.broadcast %384 : vector<2x16x1xf32> to vector<2x16x16xf32>
    %386 = arith.mulf %381, %385 : vector<2x16x16xf32>
    "tpu.trace_start"() <{level = 10 : i32, message = "bqk,bkd->bqd"}> : () -> ()
    %cst_239 = arith.constant dense<0.000000e+00> : vector<2x16x8xf32>
    %387 = tpu.matmul %386, %375, %cst_239 {dimension_numbers = #tpu.dot_dimension_numbers<[2], [1], [1], [2], [0, 0, 0, 1, 1, 2], [0], [0]>} : vector<2x16x16xf32>, vector<2x16x8xf32>, vector<2x16x8xf32> -> vector<2x16x8xf32>
    "tpu.trace_stop"() : () -> ()
    %388 = vector.shape_cast %387 : vector<2x16x8xf32> to vector<32x8xf32>
    %c5_240 = arith.constant 5 : index
    %c0_241 = arith.constant 0 : index
    %c0_242 = arith.constant 0 : index
    %389 = vector.load %arg13[%c5_240, %c0_241, %c0_242] : memref<8x8x32xf32, #tpu.memory_space<vmem>>, vector<1x8x32xf32>
    %390 = vector.shape_cast %389 : vector<1x8x32xf32> to vector<8x32xf32>
    %cst_243 = arith.constant dense<0.000000e+00> : vector<32x32xf32>
    %391 = tpu.matmul %388, %390, %cst_243 {dimension_numbers = #tpu.dot_dimension_numbers<[1], [0], [0], [1], [0, 0, 1, 1], [], []>} : vector<32x8xf32>, vector<8x32xf32>, vector<32x32xf32> -> vector<32x32xf32>
    %392 = arith.addf %351, %391 : vector<32x32xf32>
    %c6 = arith.constant 6 : index
    %c0_244 = arith.constant 0 : index
    %c0_245 = arith.constant 0 : index
    %393 = vector.load %arg7[%c6, %c0_244, %c0_245] : memref<8x32x8xf32, #tpu.memory_space<vmem>>, vector<1x32x8xf32>
    %394 = vector.shape_cast %393 : vector<1x32x8xf32> to vector<32x8xf32>
    %cst_246 = arith.constant dense<0.000000e+00> : vector<32x8xf32>
    %395 = tpu.matmul %309, %394, %cst_246 {dimension_numbers = #tpu.dot_dimension_numbers<[1], [0], [0], [1], [0, 0, 1, 1], [], []>} : vector<32x32xf32>, vector<32x8xf32>, vector<32x8xf32> -> vector<32x8xf32>
    %c6_247 = arith.constant 6 : index
    %c0_248 = arith.constant 0 : index
    %c0_249 = arith.constant 0 : index
    %396 = vector.load %arg8[%c6_247, %c0_248, %c0_249] : memref<8x1x8xf32, #tpu.memory_space<vmem>>, vector<1x1x8xf32>
    %397 = vector.shape_cast %396 : vector<1x1x8xf32> to vector<1x8xf32>
    %398 = vector.broadcast %397 : vector<1x8xf32> to vector<32x8xf32>
    %399 = arith.addf %395, %398 : vector<32x8xf32>
    %c6_250 = arith.constant 6 : index
    %c0_251 = arith.constant 0 : index
    %c0_252 = arith.constant 0 : index
    %400 = vector.load %arg9[%c6_250, %c0_251, %c0_252] : memref<8x32x8xf32, #tpu.memory_space<vmem>>, vector<1x32x8xf32>
    %401 = vector.shape_cast %400 : vector<1x32x8xf32> to vector<32x8xf32>
    %cst_253 = arith.constant dense<0.000000e+00> : vector<32x8xf32>
    %402 = tpu.matmul %309, %401, %cst_253 {dimension_numbers = #tpu.dot_dimension_numbers<[1], [0], [0], [1], [0, 0, 1, 1], [], []>} : vector<32x32xf32>, vector<32x8xf32>, vector<32x8xf32> -> vector<32x8xf32>
    %c6_254 = arith.constant 6 : index
    %c0_255 = arith.constant 0 : index
    %c0_256 = arith.constant 0 : index
    %403 = vector.load %arg10[%c6_254, %c0_255, %c0_256] : memref<8x1x8xf32, #tpu.memory_space<vmem>>, vector<1x1x8xf32>
    %404 = vector.shape_cast %403 : vector<1x1x8xf32> to vector<1x8xf32>
    %405 = vector.broadcast %404 : vector<1x8xf32> to vector<32x8xf32>
    %406 = arith.addf %402, %405 : vector<32x8xf32>
    %c6_257 = arith.constant 6 : index
    %c0_258 = arith.constant 0 : index
    %c0_259 = arith.constant 0 : index
    %407 = vector.load %arg11[%c6_257, %c0_258, %c0_259] : memref<8x32x8xf32, #tpu.memory_space<vmem>>, vector<1x32x8xf32>
    %408 = vector.shape_cast %407 : vector<1x32x8xf32> to vector<32x8xf32>
    %cst_260 = arith.constant dense<0.000000e+00> : vector<32x8xf32>
    %409 = tpu.matmul %309, %408, %cst_260 {dimension_numbers = #tpu.dot_dimension_numbers<[1], [0], [0], [1], [0, 0, 1, 1], [], []>} : vector<32x32xf32>, vector<32x8xf32>, vector<32x8xf32> -> vector<32x8xf32>
    %c6_261 = arith.constant 6 : index
    %c0_262 = arith.constant 0 : index
    %c0_263 = arith.constant 0 : index
    %410 = vector.load %arg12[%c6_261, %c0_262, %c0_263] : memref<8x1x8xf32, #tpu.memory_space<vmem>>, vector<1x1x8xf32>
    %411 = vector.shape_cast %410 : vector<1x1x8xf32> to vector<1x8xf32>
    %412 = vector.broadcast %411 : vector<1x8xf32> to vector<32x8xf32>
    %413 = arith.addf %409, %412 : vector<32x8xf32>
    %414 = vector.shape_cast %399 : vector<32x8xf32> to vector<2x16x8xf32>
    %415 = vector.shape_cast %406 : vector<32x8xf32> to vector<2x16x8xf32>
    %416 = vector.shape_cast %413 : vector<32x8xf32> to vector<2x16x8xf32>
    "tpu.trace_start"() <{level = 10 : i32, message = "bqd,bkd->bqk"}> : () -> ()
    %cst_264 = arith.constant dense<0.000000e+00> : vector<2x16x16xf32>
    %417 = tpu.matmul %414, %415, %cst_264 {dimension_numbers = #tpu.dot_dimension_numbers<[2], [2], [1], [1], [0, 0, 0, 1, 1, 1], [0], [0]>} : vector<2x16x8xf32>, vector<2x16x8xf32>, vector<2x16x16xf32> -> vector<2x16x16xf32>
    "tpu.trace_stop"() : () -> ()
    %cst_265 = arith.constant dense<0xFF800000> : vector<2x16xf32>
    %418 = vector.multi_reduction <maximumf>, %417, %cst_265 [2] : vector<2x16x16xf32> to vector<2x16xf32>
    %419 = vector.shape_cast %418 : vector<2x16xf32> to vector<2x16x1xf32>
    %420 = vector.broadcast %419 : vector<2x16x1xf32> to vector<2x16x16xf32>
    %421 = arith.subf %417, %420 : vector<2x16x16xf32>
    %422 = math.exp %421 : vector<2x16x16xf32>
    %cst_266 = arith.constant dense<0.000000e+00> : vector<2x16xf32>
    %423 = vector.multi_reduction <add>, %422, %cst_266 [2] : vector<2x16x16xf32> to vector<2x16xf32>
    %424 = vector.shape_cast %423 : vector<2x16xf32> to vector<2x16x1xf32>
    %425 = tpu.reciprocal %424 {approx = true} : vector<2x16x1xf32> -> vector<2x16x1xf32>
    %426 = vector.broadcast %425 : vector<2x16x1xf32> to vector<2x16x16xf32>
    %427 = arith.mulf %422, %426 : vector<2x16x16xf32>
    "tpu.trace_start"() <{level = 10 : i32, message = "bqk,bkd->bqd"}> : () -> ()
    %cst_267 = arith.constant dense<0.000000e+00> : vector<2x16x8xf32>
    %428 = tpu.matmul %427, %416, %cst_267 {dimension_numbers = #tpu.dot_dimension_numbers<[2], [1], [1], [2], [0, 0, 0, 1, 1, 2], [0], [0]>} : vector<2x16x16xf32>, vector<2x16x8xf32>, vector<2x16x8xf32> -> vector<2x16x8xf32>
    "tpu.trace_stop"() : () -> ()
    %429 = vector.shape_cast %428 : vector<2x16x8xf32> to vector<32x8xf32>
    %c6_268 = arith.constant 6 : index
    %c0_269 = arith.constant 0 : index
    %c0_270 = arith.constant 0 : index
    %430 = vector.load %arg13[%c6_268, %c0_269, %c0_270] : memref<8x8x32xf32, #tpu.memory_space<vmem>>, vector<1x8x32xf32>
    %431 = vector.shape_cast %430 : vector<1x8x32xf32> to vector<8x32xf32>
    %cst_271 = arith.constant dense<0.000000e+00> : vector<32x32xf32>
    %432 = tpu.matmul %429, %431, %cst_271 {dimension_numbers = #tpu.dot_dimension_numbers<[1], [0], [0], [1], [0, 0, 1, 1], [], []>} : vector<32x8xf32>, vector<8x32xf32>, vector<32x32xf32> -> vector<32x32xf32>
    %433 = arith.addf %392, %432 : vector<32x32xf32>
    %c7 = arith.constant 7 : index
    %c0_272 = arith.constant 0 : index
    %c0_273 = arith.constant 0 : index
    %434 = vector.load %arg7[%c7, %c0_272, %c0_273] : memref<8x32x8xf32, #tpu.memory_space<vmem>>, vector<1x32x8xf32>
    %435 = vector.shape_cast %434 : vector<1x32x8xf32> to vector<32x8xf32>
    %cst_274 = arith.constant dense<0.000000e+00> : vector<32x8xf32>
    %436 = tpu.matmul %309, %435, %cst_274 {dimension_numbers = #tpu.dot_dimension_numbers<[1], [0], [0], [1], [0, 0, 1, 1], [], []>} : vector<32x32xf32>, vector<32x8xf32>, vector<32x8xf32> -> vector<32x8xf32>
    %c7_275 = arith.constant 7 : index
    %c0_276 = arith.constant 0 : index
    %c0_277 = arith.constant 0 : index
    %437 = vector.load %arg8[%c7_275, %c0_276, %c0_277] : memref<8x1x8xf32, #tpu.memory_space<vmem>>, vector<1x1x8xf32>
    %438 = vector.shape_cast %437 : vector<1x1x8xf32> to vector<1x8xf32>
    %439 = vector.broadcast %438 : vector<1x8xf32> to vector<32x8xf32>
    %440 = arith.addf %436, %439 : vector<32x8xf32>
    %c7_278 = arith.constant 7 : index
    %c0_279 = arith.constant 0 : index
    %c0_280 = arith.constant 0 : index
    %441 = vector.load %arg9[%c7_278, %c0_279, %c0_280] : memref<8x32x8xf32, #tpu.memory_space<vmem>>, vector<1x32x8xf32>
    %442 = vector.shape_cast %441 : vector<1x32x8xf32> to vector<32x8xf32>
    %cst_281 = arith.constant dense<0.000000e+00> : vector<32x8xf32>
    %443 = tpu.matmul %309, %442, %cst_281 {dimension_numbers = #tpu.dot_dimension_numbers<[1], [0], [0], [1], [0, 0, 1, 1], [], []>} : vector<32x32xf32>, vector<32x8xf32>, vector<32x8xf32> -> vector<32x8xf32>
    %c7_282 = arith.constant 7 : index
    %c0_283 = arith.constant 0 : index
    %c0_284 = arith.constant 0 : index
    %444 = vector.load %arg10[%c7_282, %c0_283, %c0_284] : memref<8x1x8xf32, #tpu.memory_space<vmem>>, vector<1x1x8xf32>
    %445 = vector.shape_cast %444 : vector<1x1x8xf32> to vector<1x8xf32>
    %446 = vector.broadcast %445 : vector<1x8xf32> to vector<32x8xf32>
    %447 = arith.addf %443, %446 : vector<32x8xf32>
    %c7_285 = arith.constant 7 : index
    %c0_286 = arith.constant 0 : index
    %c0_287 = arith.constant 0 : index
    %448 = vector.load %arg11[%c7_285, %c0_286, %c0_287] : memref<8x32x8xf32, #tpu.memory_space<vmem>>, vector<1x32x8xf32>
    %449 = vector.shape_cast %448 : vector<1x32x8xf32> to vector<32x8xf32>
    %cst_288 = arith.constant dense<0.000000e+00> : vector<32x8xf32>
    %450 = tpu.matmul %309, %449, %cst_288 {dimension_numbers = #tpu.dot_dimension_numbers<[1], [0], [0], [1], [0, 0, 1, 1], [], []>} : vector<32x32xf32>, vector<32x8xf32>, vector<32x8xf32> -> vector<32x8xf32>
    %c7_289 = arith.constant 7 : index
    %c0_290 = arith.constant 0 : index
    %c0_291 = arith.constant 0 : index
    %451 = vector.load %arg12[%c7_289, %c0_290, %c0_291] : memref<8x1x8xf32, #tpu.memory_space<vmem>>, vector<1x1x8xf32>
    %452 = vector.shape_cast %451 : vector<1x1x8xf32> to vector<1x8xf32>
    %453 = vector.broadcast %452 : vector<1x8xf32> to vector<32x8xf32>
    %454 = arith.addf %450, %453 : vector<32x8xf32>
    %455 = vector.shape_cast %440 : vector<32x8xf32> to vector<2x16x8xf32>
    %456 = vector.shape_cast %447 : vector<32x8xf32> to vector<2x16x8xf32>
    %457 = vector.shape_cast %454 : vector<32x8xf32> to vector<2x16x8xf32>
    "tpu.trace_start"() <{level = 10 : i32, message = "bqd,bkd->bqk"}> : () -> ()
    %cst_292 = arith.constant dense<0.000000e+00> : vector<2x16x16xf32>
    %458 = tpu.matmul %455, %456, %cst_292 {dimension_numbers = #tpu.dot_dimension_numbers<[2], [2], [1], [1], [0, 0, 0, 1, 1, 1], [0], [0]>} : vector<2x16x8xf32>, vector<2x16x8xf32>, vector<2x16x16xf32> -> vector<2x16x16xf32>
    "tpu.trace_stop"() : () -> ()
    %cst_293 = arith.constant dense<0xFF800000> : vector<2x16xf32>
    %459 = vector.multi_reduction <maximumf>, %458, %cst_293 [2] : vector<2x16x16xf32> to vector<2x16xf32>
    %460 = vector.shape_cast %459 : vector<2x16xf32> to vector<2x16x1xf32>
    %461 = vector.broadcast %460 : vector<2x16x1xf32> to vector<2x16x16xf32>
    %462 = arith.subf %458, %461 : vector<2x16x16xf32>
    %463 = math.exp %462 : vector<2x16x16xf32>
    %cst_294 = arith.constant dense<0.000000e+00> : vector<2x16xf32>
    %464 = vector.multi_reduction <add>, %463, %cst_294 [2] : vector<2x16x16xf32> to vector<2x16xf32>
    %465 = vector.shape_cast %464 : vector<2x16xf32> to vector<2x16x1xf32>
    %466 = tpu.reciprocal %465 {approx = true} : vector<2x16x1xf32> -> vector<2x16x1xf32>
    %467 = vector.broadcast %466 : vector<2x16x1xf32> to vector<2x16x16xf32>
    %468 = arith.mulf %463, %467 : vector<2x16x16xf32>
    "tpu.trace_start"() <{level = 10 : i32, message = "bqk,bkd->bqd"}> : () -> ()
    %cst_295 = arith.constant dense<0.000000e+00> : vector<2x16x8xf32>
    %469 = tpu.matmul %468, %457, %cst_295 {dimension_numbers = #tpu.dot_dimension_numbers<[2], [1], [1], [2], [0, 0, 0, 1, 1, 2], [0], [0]>} : vector<2x16x16xf32>, vector<2x16x8xf32>, vector<2x16x8xf32> -> vector<2x16x8xf32>
    "tpu.trace_stop"() : () -> ()
    %470 = vector.shape_cast %469 : vector<2x16x8xf32> to vector<32x8xf32>
    %c7_296 = arith.constant 7 : index
    %c0_297 = arith.constant 0 : index
    %c0_298 = arith.constant 0 : index
    %471 = vector.load %arg13[%c7_296, %c0_297, %c0_298] : memref<8x8x32xf32, #tpu.memory_space<vmem>>, vector<1x8x32xf32>
    %472 = vector.shape_cast %471 : vector<1x8x32xf32> to vector<8x32xf32>
    %cst_299 = arith.constant dense<0.000000e+00> : vector<32x32xf32>
    %473 = tpu.matmul %470, %472, %cst_299 {dimension_numbers = #tpu.dot_dimension_numbers<[1], [0], [0], [1], [0, 0, 1, 1], [], []>} : vector<32x8xf32>, vector<8x32xf32>, vector<32x32xf32> -> vector<32x32xf32>
    %474 = arith.addf %433, %473 : vector<32x32xf32>
    %475 = arith.addf %285, %474 : vector<32x32xf32>
    %c1_300 = arith.constant 1 : index
    %c0_301 = arith.constant 0 : index
    %c0_302 = arith.constant 0 : index
    %476 = vector.load %arg14[%c1_300, %c0_301, %c0_302] : memref<2x1x32xf32, #tpu.memory_space<vmem>>, vector<1x1x32xf32>
    %477 = vector.shape_cast %476 : vector<1x1x32xf32> to vector<1x32xf32>
    %478 = vector.broadcast %477 : vector<1x32xf32> to vector<32x32xf32>
    %479 = arith.addf %475, %478 : vector<32x32xf32>
    %c1_303 = arith.constant 1 : index
    %c0_304 = arith.constant 0 : index
    %c0_305 = arith.constant 0 : index
    %480 = vector.load %arg15[%c1_303, %c0_304, %c0_305] : memref<2x1x32xf32, #tpu.memory_space<vmem>>, vector<1x1x32xf32>
    %481 = vector.shape_cast %480 : vector<1x1x32xf32> to vector<1x32xf32>
    %c1_306 = arith.constant 1 : index
    %c0_307 = arith.constant 0 : index
    %c0_308 = arith.constant 0 : index
    %482 = vector.load %arg16[%c1_306, %c0_307, %c0_308] : memref<2x1x32xf32, #tpu.memory_space<vmem>>, vector<1x1x32xf32>
    %483 = vector.shape_cast %482 : vector<1x1x32xf32> to vector<1x32xf32>
    %cst_309 = arith.constant dense<0.000000e+00> : vector<32xf32>
    %484 = vector.multi_reduction <add>, %479, %cst_309 [1] : vector<32x32xf32> to vector<32xf32>
    %485 = vector.shape_cast %484 : vector<32xf32> to vector<32x1xf32>
    %cst_310 = arith.constant 3.200000e+01 : f32
    %486 = vector.broadcast %cst_310 : f32 to vector<32x1xf32>
    %487 = arith.divf %485, %486 : vector<32x1xf32>
    %488 = vector.broadcast %487 : vector<32x1xf32> to vector<32x32xf32>
    %489 = arith.subf %479, %488 : vector<32x32xf32>
    %490 = arith.mulf %489, %489 : vector<32x32xf32>
    %cst_311 = arith.constant dense<0.000000e+00> : vector<32xf32>
    %491 = vector.multi_reduction <add>, %490, %cst_311 [1] : vector<32x32xf32> to vector<32xf32>
    %492 = vector.shape_cast %491 : vector<32xf32> to vector<32x1xf32>
    %cst_312 = arith.constant 3.200000e+01 : f32
    %493 = vector.broadcast %cst_312 : f32 to vector<32x1xf32>
    %494 = arith.divf %492, %493 : vector<32x1xf32>
    %cst_313 = arith.constant 9.99999974E-6 : f32
    %495 = vector.broadcast %cst_313 : f32 to vector<32x1xf32>
    %496 = arith.addf %494, %495 : vector<32x1xf32>
    %497 = math.rsqrt %496 : vector<32x1xf32>
    %498 = vector.broadcast %497 : vector<32x1xf32> to vector<32x32xf32>
    %499 = arith.mulf %489, %498 : vector<32x32xf32>
    %500 = vector.broadcast %481 : vector<1x32xf32> to vector<32x32xf32>
    %501 = arith.mulf %499, %500 : vector<32x32xf32>
    %502 = vector.broadcast %483 : vector<1x32xf32> to vector<32x32xf32>
    %503 = arith.addf %501, %502 : vector<32x32xf32>
    %c1_314 = arith.constant 1 : index
    %c0_315 = arith.constant 0 : index
    %c0_316 = arith.constant 0 : index
    %504 = vector.load %arg17[%c1_314, %c0_315, %c0_316] : memref<2x32x64xf32, #tpu.memory_space<vmem>>, vector<1x32x64xf32>
    %505 = vector.shape_cast %504 : vector<1x32x64xf32> to vector<32x64xf32>
    %cst_317 = arith.constant dense<0.000000e+00> : vector<32x64xf32>
    %506 = tpu.matmul %503, %505, %cst_317 {dimension_numbers = #tpu.dot_dimension_numbers<[1], [0], [0], [1], [0, 0, 1, 1], [], []>} : vector<32x32xf32>, vector<32x64xf32>, vector<32x64xf32> -> vector<32x64xf32>
    %c1_318 = arith.constant 1 : index
    %c0_319 = arith.constant 0 : index
    %c0_320 = arith.constant 0 : index
    %507 = vector.load %arg18[%c1_318, %c0_319, %c0_320] : memref<2x1x64xf32, #tpu.memory_space<vmem>>, vector<1x1x64xf32>
    %508 = vector.shape_cast %507 : vector<1x1x64xf32> to vector<1x64xf32>
    %509 = vector.broadcast %508 : vector<1x64xf32> to vector<32x64xf32>
    %510 = arith.addf %506, %509 : vector<32x64xf32>
    %cst_321 = arith.constant 5.000000e-01 : f32
    %511 = vector.broadcast %cst_321 : f32 to vector<32x64xf32>
    %512 = arith.mulf %511, %510 : vector<32x64xf32>
    %cst_322 = arith.constant 0.707106769 : f32
    %513 = vector.broadcast %cst_322 : f32 to vector<32x64xf32>
    %514 = arith.mulf %510, %513 : vector<32x64xf32>
    %515 = math.absf %514 : vector<32x64xf32>
    %cst_323 = arith.constant 0.327591091 : f32
    %516 = vector.broadcast %cst_323 : f32 to vector<32x64xf32>
    %517 = arith.mulf %516, %515 : vector<32x64xf32>
    %cst_324 = arith.constant 1.000000e+00 : f32
    %518 = vector.broadcast %cst_324 : f32 to vector<32x64xf32>
    %519 = arith.addf %518, %517 : vector<32x64xf32>
    %cst_325 = arith.constant 1.000000e+00 : f32
    %520 = vector.broadcast %cst_325 : f32 to vector<32x64xf32>
    %521 = arith.divf %520, %519 : vector<32x64xf32>
    %cst_326 = arith.constant 1.06140542 : f32
    %522 = vector.broadcast %cst_326 : f32 to vector<32x64xf32>
    %523 = arith.mulf %522, %521 : vector<32x64xf32>
    %cst_327 = arith.constant -1.45315206 : f32
    %524 = vector.broadcast %cst_327 : f32 to vector<32x64xf32>
    %525 = arith.addf %523, %524 : vector<32x64xf32>
    %526 = arith.mulf %525, %521 : vector<32x64xf32>
    %cst_328 = arith.constant 1.42141378 : f32
    %527 = vector.broadcast %cst_328 : f32 to vector<32x64xf32>
    %528 = arith.addf %526, %527 : vector<32x64xf32>
    %529 = arith.mulf %528, %521 : vector<32x64xf32>
    %cst_329 = arith.constant -0.284496725 : f32
    %530 = vector.broadcast %cst_329 : f32 to vector<32x64xf32>
    %531 = arith.addf %529, %530 : vector<32x64xf32>
    %532 = arith.mulf %531, %521 : vector<32x64xf32>
    %cst_330 = arith.constant 0.254829586 : f32
    %533 = vector.broadcast %cst_330 : f32 to vector<32x64xf32>
    %534 = arith.addf %532, %533 : vector<32x64xf32>
    %535 = arith.mulf %534, %521 : vector<32x64xf32>
    %cst_331 = arith.constant 0.000000e+00 : f32
    %536 = vector.broadcast %cst_331 : f32 to vector<32x64xf32>
    %537 = arith.subf %536, %515 : vector<32x64xf32>
    %538 = arith.mulf %537, %515 : vector<32x64xf32>
    %539 = math.exp %538 : vector<32x64xf32>
    %540 = arith.mulf %535, %539 : vector<32x64xf32>
    %cst_332 = arith.constant 1.000000e+00 : f32
    %541 = vector.broadcast %cst_332 : f32 to vector<32x64xf32>
    %542 = arith.subf %541, %540 : vector<32x64xf32>
    %cst_333 = arith.constant 0.000000e+00 : f32
    %543 = vector.broadcast %cst_333 : f32 to vector<32x64xf32>
    %544 = arith.cmpf olt, %514, %543 : vector<32x64xf32>
    %cst_334 = arith.constant 0.000000e+00 : f32
    %545 = vector.broadcast %cst_334 : f32 to vector<32x64xf32>
    %546 = arith.subf %545, %542 : vector<32x64xf32>
    %547 = arith.select %544, %546, %542 : vector<32x64xi1>, vector<32x64xf32>
    %cst_335 = arith.constant 1.000000e+00 : f32
    %548 = vector.broadcast %cst_335 : f32 to vector<32x64xf32>
    %549 = arith.addf %548, %547 : vector<32x64xf32>
    %550 = arith.mulf %512, %549 : vector<32x64xf32>
    %c1_336 = arith.constant 1 : index
    %c0_337 = arith.constant 0 : index
    %c0_338 = arith.constant 0 : index
    %551 = vector.load %arg19[%c1_336, %c0_337, %c0_338] : memref<2x64x32xf32, #tpu.memory_space<vmem>>, vector<1x64x32xf32>
    %552 = vector.shape_cast %551 : vector<1x64x32xf32> to vector<64x32xf32>
    %cst_339 = arith.constant dense<0.000000e+00> : vector<32x32xf32>
    %553 = tpu.matmul %550, %552, %cst_339 {dimension_numbers = #tpu.dot_dimension_numbers<[1], [0], [0], [1], [0, 0, 1, 1], [], []>} : vector<32x64xf32>, vector<64x32xf32>, vector<32x32xf32> -> vector<32x32xf32>
    %554 = arith.addf %479, %553 : vector<32x32xf32>
    %c1_340 = arith.constant 1 : index
    %c0_341 = arith.constant 0 : index
    %c0_342 = arith.constant 0 : index
    %555 = vector.load %arg20[%c1_340, %c0_341, %c0_342] : memref<2x1x32xf32, #tpu.memory_space<vmem>>, vector<1x1x32xf32>
    %556 = vector.shape_cast %555 : vector<1x1x32xf32> to vector<1x32xf32>
    %557 = vector.broadcast %556 : vector<1x32xf32> to vector<32x32xf32>
    %558 = arith.addf %554, %557 : vector<32x32xf32>
    %c0_343 = arith.constant 0 : index
    %c0_344 = arith.constant 0 : index
    %559 = vector.load %arg21[%c0_343, %c0_344] : memref<1x32xf32, #tpu.memory_space<vmem>>, vector<1x32xf32>
    %c0_345 = arith.constant 0 : index
    %c0_346 = arith.constant 0 : index
    %560 = vector.load %arg22[%c0_345, %c0_346] : memref<1x32xf32, #tpu.memory_space<vmem>>, vector<1x32xf32>
    %cst_347 = arith.constant dense<0.000000e+00> : vector<32xf32>
    %561 = vector.multi_reduction <add>, %558, %cst_347 [1] : vector<32x32xf32> to vector<32xf32>
    %562 = vector.shape_cast %561 : vector<32xf32> to vector<32x1xf32>
    %cst_348 = arith.constant 3.200000e+01 : f32
    %563 = vector.broadcast %cst_348 : f32 to vector<32x1xf32>
    %564 = arith.divf %562, %563 : vector<32x1xf32>
    %565 = vector.broadcast %564 : vector<32x1xf32> to vector<32x32xf32>
    %566 = arith.subf %558, %565 : vector<32x32xf32>
    %567 = arith.mulf %566, %566 : vector<32x32xf32>
    %cst_349 = arith.constant dense<0.000000e+00> : vector<32xf32>
    %568 = vector.multi_reduction <add>, %567, %cst_349 [1] : vector<32x32xf32> to vector<32xf32>
    %569 = vector.shape_cast %568 : vector<32xf32> to vector<32x1xf32>
    %cst_350 = arith.constant 3.200000e+01 : f32
    %570 = vector.broadcast %cst_350 : f32 to vector<32x1xf32>
    %571 = arith.divf %569, %570 : vector<32x1xf32>
    %cst_351 = arith.constant 9.99999974E-6 : f32
    %572 = vector.broadcast %cst_351 : f32 to vector<32x1xf32>
    %573 = arith.addf %571, %572 : vector<32x1xf32>
    %574 = math.rsqrt %573 : vector<32x1xf32>
    %575 = vector.broadcast %574 : vector<32x1xf32> to vector<32x32xf32>
    %576 = arith.mulf %566, %575 : vector<32x32xf32>
    %577 = vector.broadcast %559 : vector<1x32xf32> to vector<32x32xf32>
    %578 = arith.mulf %576, %577 : vector<32x32xf32>
    %579 = vector.broadcast %560 : vector<1x32xf32> to vector<32x32xf32>
    %580 = arith.addf %578, %579 : vector<32x32xf32>
    %581 = vector.shape_cast %580 : vector<32x32xf32> to vector<2x16x32xf32>
    %c0_352 = arith.constant 0 : index
    %c0_353 = arith.constant 0 : index
    %c0_354 = arith.constant 0 : index
    %582 = vector.load %arg23[%c0_352, %c0_353, %c0_354] : memref<2x16x32xf32, #tpu.memory_space<vmem>>, vector<2x16x32xf32>
    tpu.vector_store %arg23[%c0_352, %c0_353, %c0_354], %581 {strides = array<i32>} : memref<2x16x32xf32, #tpu.memory_space<vmem>>, vector<2x16x32xf32>,
    return
  }
  func.func @transform_0(%arg0: i32) -> (i32, i32, i32) {
    %c0_i32 = arith.constant 0 : i32
    %c0_i32_0 = arith.constant 0 : i32
    %c0_i32_1 = arith.constant 0 : i32
    return %arg0, %c0_i32, %c0_i32_0 : i32, i32, i32
  }
  func.func @transform_1(%arg0: i32) -> (i32, i32) {
    %c0_i32 = arith.constant 0 : i32
    %c0_i32_0 = arith.constant 0 : i32
    %c0_i32_1 = arith.constant 0 : i32
    return %c0_i32, %c0_i32_0 : i32, i32
  }
  func.func @transform_2(%arg0: i32) -> (i32, i32) {
    %c0_i32 = arith.constant 0 : i32
    %c0_i32_0 = arith.constant 0 : i32
    %c0_i32_1 = arith.constant 0 : i32
    return %c0_i32, %c0_i32_0 : i32, i32
  }
  func.func @transform_3(%arg0: i32) -> (i32, i32) {
    %c0_i32 = arith.constant 0 : i32
    %c0_i32_0 = arith.constant 0 : i32
    %c0_i32_1 = arith.constant 0 : i32
    return %c0_i32, %c0_i32_0 : i32, i32
  }
  func.func @transform_4(%arg0: i32) -> (i32, i32, i32) {
    %c0_i32 = arith.constant 0 : i32
    %c0_i32_0 = arith.constant 0 : i32
    %c0_i32_1 = arith.constant 0 : i32
    %c0_i32_2 = arith.constant 0 : i32
    return %c0_i32, %c0_i32_0, %c0_i32_1 : i32, i32, i32
  }
  func.func @transform_5(%arg0: i32) -> (i32, i32, i32) {
    %c0_i32 = arith.constant 0 : i32
    %c0_i32_0 = arith.constant 0 : i32
    %c0_i32_1 = arith.constant 0 : i32
    %c0_i32_2 = arith.constant 0 : i32
    return %c0_i32, %c0_i32_0, %c0_i32_1 : i32, i32, i32
  }
  func.func @transform_6(%arg0: i32) -> (i32, i32, i32) {
    %c0_i32 = arith.constant 0 : i32
    %c0_i32_0 = arith.constant 0 : i32
    %c0_i32_1 = arith.constant 0 : i32
    %c0_i32_2 = arith.constant 0 : i32
    return %c0_i32, %c0_i32_0, %c0_i32_1 : i32, i32, i32
  }
  func.func @transform_7(%arg0: i32) -> (i32, i32, i32) {
    %c0_i32 = arith.constant 0 : i32
    %c0_i32_0 = arith.constant 0 : i32
    %c0_i32_1 = arith.constant 0 : i32
    %c0_i32_2 = arith.constant 0 : i32
    return %c0_i32, %c0_i32_0, %c0_i32_1 : i32, i32, i32
  }
  func.func @transform_8(%arg0: i32) -> (i32, i32, i32) {
    %c0_i32 = arith.constant 0 : i32
    %c0_i32_0 = arith.constant 0 : i32
    %c0_i32_1 = arith.constant 0 : i32
    %c0_i32_2 = arith.constant 0 : i32
    return %c0_i32, %c0_i32_0, %c0_i32_1 : i32, i32, i32
  }
  func.func @transform_9(%arg0: i32) -> (i32, i32, i32) {
    %c0_i32 = arith.constant 0 : i32
    %c0_i32_0 = arith.constant 0 : i32
    %c0_i32_1 = arith.constant 0 : i32
    %c0_i32_2 = arith.constant 0 : i32
    return %c0_i32, %c0_i32_0, %c0_i32_1 : i32, i32, i32
  }
  func.func @transform_10(%arg0: i32) -> (i32, i32, i32) {
    %c0_i32 = arith.constant 0 : i32
    %c0_i32_0 = arith.constant 0 : i32
    %c0_i32_1 = arith.constant 0 : i32
    %c0_i32_2 = arith.constant 0 : i32
    return %c0_i32, %c0_i32_0, %c0_i32_1 : i32, i32, i32
  }
  func.func @transform_11(%arg0: i32) -> (i32, i32, i32) {
    %c0_i32 = arith.constant 0 : i32
    %c0_i32_0 = arith.constant 0 : i32
    %c0_i32_1 = arith.constant 0 : i32
    %c0_i32_2 = arith.constant 0 : i32
    return %c0_i32, %c0_i32_0, %c0_i32_1 : i32, i32, i32
  }
  func.func @transform_12(%arg0: i32) -> (i32, i32, i32) {
    %c0_i32 = arith.constant 0 : i32
    %c0_i32_0 = arith.constant 0 : i32
    %c0_i32_1 = arith.constant 0 : i32
    %c0_i32_2 = arith.constant 0 : i32
    return %c0_i32, %c0_i32_0, %c0_i32_1 : i32, i32, i32
  }
  func.func @transform_13(%arg0: i32) -> (i32, i32, i32) {
    %c0_i32 = arith.constant 0 : i32
    %c0_i32_0 = arith.constant 0 : i32
    %c0_i32_1 = arith.constant 0 : i32
    %c0_i32_2 = arith.constant 0 : i32
    return %c0_i32, %c0_i32_0, %c0_i32_1 : i32, i32, i32
  }
  func.func @transform_14(%arg0: i32) -> (i32, i32, i32) {
    %c0_i32 = arith.constant 0 : i32
    %c0_i32_0 = arith.constant 0 : i32
    %c0_i32_1 = arith.constant 0 : i32
    %c0_i32_2 = arith.constant 0 : i32
    return %c0_i32, %c0_i32_0, %c0_i32_1 : i32, i32, i32
  }
  func.func @transform_15(%arg0: i32) -> (i32, i32, i32) {
    %c0_i32 = arith.constant 0 : i32
    %c0_i32_0 = arith.constant 0 : i32
    %c0_i32_1 = arith.constant 0 : i32
    %c0_i32_2 = arith.constant 0 : i32
    return %c0_i32, %c0_i32_0, %c0_i32_1 : i32, i32, i32
  }
  func.func @transform_16(%arg0: i32) -> (i32, i32, i32) {
    %c0_i32 = arith.constant 0 : i32
    %c0_i32_0 = arith.constant 0 : i32
    %c0_i32_1 = arith.constant 0 : i32
    %c0_i32_2 = arith.constant 0 : i32
    return %c0_i32, %c0_i32_0, %c0_i32_1 : i32, i32, i32
  }
  func.func @transform_17(%arg0: i32) -> (i32, i32, i32) {
    %c0_i32 = arith.constant 0 : i32
    %c0_i32_0 = arith.constant 0 : i32
    %c0_i32_1 = arith.constant 0 : i32
    %c0_i32_2 = arith.constant 0 : i32
    return %c0_i32, %c0_i32_0, %c0_i32_1 : i32, i32, i32
  }
  func.func @transform_18(%arg0: i32) -> (i32, i32, i32) {
    %c0_i32 = arith.constant 0 : i32
    %c0_i32_0 = arith.constant 0 : i32
    %c0_i32_1 = arith.constant 0 : i32
    %c0_i32_2 = arith.constant 0 : i32
    return %c0_i32, %c0_i32_0, %c0_i32_1 : i32, i32, i32
  }
  func.func @transform_19(%arg0: i32) -> (i32, i32, i32) {
    %c0_i32 = arith.constant 0 : i32
    %c0_i32_0 = arith.constant 0 : i32
    %c0_i32_1 = arith.constant 0 : i32
    %c0_i32_2 = arith.constant 0 : i32
    return %c0_i32, %c0_i32_0, %c0_i32_1 : i32, i32, i32
  }
  func.func @transform_20(%arg0: i32) -> (i32, i32) {
    %c0_i32 = arith.constant 0 : i32
    %c0_i32_0 = arith.constant 0 : i32
    %c0_i32_1 = arith.constant 0 : i32
    return %c0_i32, %c0_i32_0 : i32, i32
  }
  func.func @transform_21(%arg0: i32) -> (i32, i32) {
    %c0_i32 = arith.constant 0 : i32
    %c0_i32_0 = arith.constant 0 : i32
    %c0_i32_1 = arith.constant 0 : i32
    return %c0_i32, %c0_i32_0 : i32, i32
  }
  func.func @transform_22(%arg0: i32) -> (i32, i32, i32) {
    %c0_i32 = arith.constant 0 : i32
    %c0_i32_0 = arith.constant 0 : i32
    %c0_i32_1 = arith.constant 0 : i32
    return %arg0, %c0_i32, %c0_i32_0 : i32, i32, i32
  }
}

</mosaic_0001>

<bundles_post_ra>
// kernel: tpu_custom_call.1
= control target key start
LH: loop header
LB: loop body
LE: loop exit
PB: predicated region body
PF: predicated region fallthrough
CT: control target
= control target key end

     0   :  { %s11129_s0 = inlined_call_operand.vmem [shape: f32[2,16,64], index: 0, kind: input, shape index: {}]   ;;  %s11130_s1 = inlined_call_operand.vmem [shape: f32[64,32], index: 1, kind: input, shape index: {}]   ;;  %s11131_s2 = inlined_call_operand.vmem [shape: f32[1,32], index: 2, kind: input, shape index: {}]   ;;  %s11132_s3 = inlined_call_operand.vmem [shape: f32[16,32], index: 3, kind: input, shape index: {}]   ;;  %s11133_s4 = inlined_call_operand.vmem [shape: f32[2,1,32], index: 4, kind: input, shape index: {}]   ;;  %s11134_s5 = inlined_call_operand.vmem [shape: f32[2,1,32], index: 5, kind: input, shape index: {}]   ;;  %s11135_s6 = inlined_call_operand.vmem [shape: f32[8,32,8], index: 6, kind: input, shape index: {}]   ;;  %s11136_s7 = inlined_call_operand.vmem [shape: f32[8,1,8], index: 7, kind: input, shape index: {}]   ;;  %s11137_s8 = inlined_call_operand.vmem [shape: f32[8,32,8], index: 8, kind: input, shape index: {}]   ;;  %s11138_s9 = inlined_call_operand.vmem [shape: f32[8,1,8], index: 9, kind: input, shape index: {}]   ;;  %s11139_s10 = inlined_call_operand.vmem [shape: f32[8,32,8], index: 10, kind: input, shape index: {}]   ;;  %s11140_s11 = inlined_call_operand.vmem [shape: f32[8,1,8], index: 11, kind: input, shape index: {}]   ;;  %s11141_s12 = inlined_call_operand.vmem [shape: f32[8,8,32], index: 12, kind: input, shape index: {}]   ;;  %s11142_s13 = inlined_call_operand.vmem [shape: f32[2,1,32], index: 13, kind: input, shape index: {}]   ;;  %s11143_s14 = inlined_call_operand.vmem [shape: f32[2,1,32], index: 14, kind: input, shape index: {}]   ;;  %s11144_s15 = inlined_call_operand.vmem [shape: f32[2,1,32], index: 15, kind: input, shape index: {}]   ;;  %s11145_s16 = inlined_call_operand.vmem [shape: f32[2,32,64], index: 16, kind: input, shape index: {}]   ;;  %s11146_s17 = inlined_call_operand.vmem [shape: f32[2,1,64], index: 17, kind: input, shape index: {}]   ;;  %s11147_s18 = inlined_call_operand.vmem [shape: f32[2,64,32], index: 18, kind: input, shape index: {}]   ;;  %s11148_s19 = inlined_call_operand.vmem [shape: f32[2,1,32], index: 19, kind: input, shape index: {}]   ;;  %s11149_s20 = inlined_call_operand.vmem [shape: f32[1,32], index: 20, kind: input, shape index: {}]   ;;  %s11150_s21 = inlined_call_operand.vmem [shape: f32[1,32], index: 21, kind: input, shape index: {}]   ;;  %s11151_s22 = inlined_call_operand.hbm [shape: f32[2,16,32], index: 22, kind: output, shape index: {}]  }
   0x1   :  { %11158 = sst [smem:[#allocation5_spill]] %s11129_s0 }
   0x2   :  { %11159 = sst [smem:[#allocation6_spill]] %s11130_s1 }
   0x3   :  { %11160 = sst [smem:[#allocation7_spill]] %s11131_s2 }
   0x4   :  { %11161 = sst [smem:[#allocation8_spill]] %s11132_s3 }
   0x5   :  { %11162 = sst [smem:[#allocation9_spill]] %s11133_s4 }
   0x6   :  { %11163 = sst [smem:[#allocation10_spill]] %s11134_s5 }
   0x7   :  { %11164 = sst [smem:[#allocation11_spill]] %s11135_s6 }
   0x8   :  { %s11165_s29 = sld [smem:[#allocation6_spill]]  ;;  %vm84_vm0 = vcmask 523264   ;;  %s11166_s3 = sld [smem:[#allocation5_spill]] }
   0xe   :  { %v76_v0 = vld [vmem:[%s11165_s29] sm:$0xff]  ;;  %v77_v1 = vld [vmem:[%s11165_s29 + $0x8] sm:$0xff]  ;;  %v78_v2 = vld [vmem:[%s11165_s29 + $0x10] sm:$0xff] }
   0xf   :  { %v9065_v3 = vpack.c.bf16 %v77_v1, %v76_v0  ;;  %v79_v4 = vld [vmem:[%s11165_s29 + $0x18] sm:$0xff]  ;;  %v80_v6 = vld [vmem:[%s11165_s29 + $0x20] sm:$0xff]  ;;  %v81_v7 = vld [vmem:[%s11165_s29 + $0x28] sm:$0xff] }
  0x10   :  { %v9069_v5 = vpack.c.bf16 %v79_v4, %v78_v2  ;;  %v72_v8 = vld [vmem:[%s11166_s3] sm:$0xff] }
  0x11   :  { %9066 = vmatprep.subr.bf16.mxu0 %v9065_v3  ;;  %8363 = vmatprep.mubr.msk.f32.mxu0 %vm84_vm0, %v72_v8 }
  0x12   :  { %9068 = vmatpush3.bf16.msra.mxu0 %v9065_v3 }
  0x13   :  { %27 = vsyncpa [#allocation3], 0  ;;  %9070 = vmatprep.subr.bf16.mxu0 %v9069_v5  ;;  %v9073_v9 = vpack.c.bf16 %v81_v7, %v80_v6  ;;  %v82_v10 = vld [vmem:[%s11165_s29 + $0x30] sm:$0xff]  ;;  %v83_v11 = vld [vmem:[%s11165_s29 + $0x38] sm:$0xff]  ;;  %s11167_s2 = sld [smem:[#allocation7_spill]]  ;;  %s11168_s30 = sld [smem:[#allocation8_spill]] }
  0x14   :  { %v9077_v12 = vpack.c.bf16 %v83_v11, %v82_v10  ;;  %v73_v13 = vld [vmem:[%s11166_s3 + $0x8] sm:$0xff]  ;;  %v74_v14 = vld [vmem:[%s11166_s3 + $0x10] sm:$0xff]  ;;  %v75_v15 = vld [vmem:[%s11166_s3 + $0x18] sm:$0xff]  ;;  %vm199_vm1 = vcmask 261120   ;;  %s11169_s1 = sld [smem:[#allocation11_spill]]  ;;  %vm573_vm2 = vcmask 64512  }
  0x15   :  { %v477_v55 = vld [vmem:[%s11139_s10] sm:$0xff]  ;;  %v478_v57 = vld [vmem:[%s11139_s10 + $0x8] sm:$0xff]  ;;  %v479_v61 = vld [vmem:[%s11139_s10 + $0x10] sm:$0xff]  ;;  %vm748_vm4 = vcmask 130048  }
  0x16   :  { %9072 = vmatpush3.bf16.msra.mxu0 %v9069_v5  ;;  %v9097_v58 = vpack.c.bf16 %v478_v57, %v477_v55  ;;  %v480_v63 = vld [vmem:[%s11139_s10 + $0x18] sm:$0xff]  ;;  %v381_v1 = vld [vmem:[%s11137_s8] sm:$0xff]  ;;  %v382_v2 = vld [vmem:[%s11137_s8 + $0x8] sm:$0xff] }
  0x17   :  { %9074 = vmatprep.subr.bf16.mxu0 %v9073_v9  ;;  %v9101_v0 = vpack.c.bf16 %v480_v63, %v479_v61  ;;  %v9089_v3 = vpack.c.bf16 %v382_v2, %v381_v1  ;;  %vm10030_vm3 = vmpackc.low %vm573_vm2, %vm573_vm2 }
  0x19   :  { %v7523_v16 = vld [vmem:[%s11167_s2] ss:$0 sm:$0xff]  ;;  %v183_v18 = vld [vmem:[%s11168_s30 + $0x8] sm:$0xff]  ;;  %s11170_s2 = sld [smem:[#allocation9_spill]] }
  0x1a   :  { %9076 = vmatpush3.bf16.msra.mxu0 %v9073_v9  ;;  %v182_v17 = vld [vmem:[%s11168_s30] sm:$0xff]  ;;  %v192_v21 = vadd.f32 %v7523_v16, %v183_v18  ;;  %v274_v54 = vld [vmem:[%s11169_s1 + $0x8] sm:$0xff]  ;;  %v275_v59 = vld [vmem:[%s11169_s1 + $0x10] sm:$0xff]  ;;  %s11171_s30 = sld [smem:[#allocation10_spill]] }
  0x1b   :  { %9078 = vmatprep.subr.bf16.mxu0 %v9077_v12  ;;  %v191_v19 = vadd.f32 %v7523_v16, %v182_v17  ;;  %v273_v53 = vld [vmem:[%s11169_s1] sm:$0xff]  ;;  %v276_v60 = vld [vmem:[%s11169_s1 + $0x18] sm:$0xff] }
  0x1c   :  { %v9081_v56 = vpack.c.bf16 %v274_v54, %v273_v53  ;;  %v9085_v62 = vpack.c.bf16 %v276_v60, %v275_v59 }
  0x1e   :  { %9080 = vmatpush3.bf16.msra.mxu0 %v9077_v12  ;;  %9082 = vmatprep.subr.bf16.mxu1 %v9081_v56 }
  0x1f   :  { %9098 = vmatprep.subr.bf16.mxu0 %v9097_v58  ;;  %9084 = vmatpush3.bf16.msra.mxu1 %v9081_v56  ;;  %v7524_v17 = vld [vmem:[%s11170_s2] ss:$0 sm:$0xff] }
  0x20   :  { %9086 = vmatprep.subr.bf16.mxu1 %v9085_v62 }
  0x21   :  { %8364 = vmatmul.mubr.msk.f32.vlgmr.msra.gmra.mrb[0].mxu0 %vm84_vm0, %v73_v13 }
  0x22   :  { %8366 = vmatprep.mubr.msk.f32.mxu0 %vm84_vm0, %v74_v14  ;;  %9100 = vmatpush3.bf16.msra.mxu0 %v9097_v58  ;;  %v7531_v58 = vld [vmem:[%s11138_s9] ss:$0 sm:$0xff] }
  0x23   :  { %9102 = vmatprep.subr.bf16.mxu0 %v9101_v0  ;;  %9088 = vmatpush3.bf16.msra.mxu1 %v9085_v62 }
  0x24   :  { %9090 = vmatprep.subr.bf16.mxu1 %v9089_v3 }
  0x25   :  { %8367 = vmatmul.mubr.msk.f32.gmra.mrb[2].mxu0 %vm84_vm0, %v75_v15 }
  0x26   :  { %9104 = vmatpush3.bf16.msra.mxu0 %v9101_v0 }
  0xf4   :  { %v8365_v20 = vpop.f32.mrb[0].mxu0 }
  0xf5   :  { %v163_v22 = vpop.f32.mrb[1].mxu0  ;;  %v9901_v24 = vadd.f32 %v8365_v20, %v192_v21 }
  0xf6   :  { %v9899_v23 = vadd.f32 %v191_v19, %v163_v22 }
  0xf7   :  { %v203_v30 = vsel %vm199_vm1, %v9901_v24, 0.0 }
  0xf8   :  { %v8368_v25 = vpop.f32.mrb[2].mxu0  ;;  %v200_v26 = vsel %vm199_vm1, %v9899_v23, 0.0 }
  0xf9   :  { %201 = vadd.xlane.f32.xlu0 %v200_v26  ;;  %v173_v27 = vpop.f32.mrb[3].mxu0  ;;  %v9907_v29 = vadd.f32 %v8368_v25, %v192_v21 }
  0xfa   :  { %v9905_v28 = vadd.f32 %v191_v19, %v173_v27  ;;  %v7525_v19 = vld [vmem:[%s11171_s30] ss:$0 sm:$0xff] }
  0xfb   :  { %v209_v32 = vsel %vm199_vm1, %v9907_v29, 0.0 }
  0xfc   :  { %v206_v31 = vsel %vm199_vm1, %v9905_v28, 0.0 }
  0xfd   :  { %204 = vadd.xlane.f32.xlu0 %v203_v30  ;;  %207 = vadd.xlane.f32.xlu1 %v206_v31  ;;  %v383_v31 = vld [vmem:[%s11137_s8 + $0x10] sm:$0xff] }
 0x101   :  { %210 = vadd.xlane.f32.xlu1 %v209_v32  ;;  %v384_v32 = vld [vmem:[%s11137_s8 + $0x18] sm:$0xff] }
 0x186   :  { %v202_v33 = vpop.xlane.xlu0 %201 }
 0x187   :  { %v213_v34 = vmul.f32 0.03125, %v202_v33 }
 0x189   :  { %v9916_v35 = vsub.f32 %v9899_v23, %v213_v34 }
 0x18a   :  { %v205_v36 = vpop.xlane.xlu0 %204  ;;  %v208_v37 = vpop.xlane.xlu1 %207 }
 0x18b   :  { %v214_v38 = vmul.f32 0.03125, %v205_v36  ;;  %v215_v39 = vmul.f32 0.03125, %v208_v37  ;;  %v221_v40 = vmul.f32 %v9916_v35, %v9916_v35 }
 0x18d   :  { %v9921_v41 = vsub.f32 %v9901_v24, %v214_v38  ;;  %v9924_v42 = vsub.f32 %v9905_v28, %v215_v39  ;;  %v225_v43 = vsel %vm199_vm1, %v221_v40, 0.0  ;;  %v9093_v38 = vpack.c.bf16 %v384_v32, %v383_v31 }
 0x18e   :  { %226 = vadd.xlane.f32.xlu0 %v225_v43  ;;  %v211_v44 = vpop.xlane.xlu1 %210 }
 0x18f   :  { %v216_v45 = vmul.f32 0.03125, %v211_v44  ;;  %v222_v46 = vmul.f32 %v9921_v41, %v9921_v41  ;;  %v223_v47 = vmul.f32 %v9924_v42, %v9924_v42 }
 0x191   :  { %v9932_v48 = vsub.f32 %v9907_v29, %v216_v45  ;;  %v228_v49 = vsel %vm199_vm1, %v222_v46, 0.0  ;;  %v231_v50 = vsel %vm199_vm1, %v223_v47, 0.0 }
 0x192   :  { %229 = vadd.xlane.f32.xlu1 %v228_v49  ;;  %232 = vadd.xlane.f32.xlu0 %v231_v50 }
 0x193   :  { %v224_v51 = vmul.f32 %v9932_v48, %v9932_v48 }
 0x195   :  { %v234_v52 = vsel %vm199_vm1, %v224_v51, 0.0 }
 0x196   :  { %235 = vadd.xlane.f32.xlu1 %v234_v52 }
 0x21b   :  { %v227_v4 = vpop.xlane.xlu0 %226 }
 0x21c   :  { %v237_v5 = vmul.f32 0.03125, %v227_v4 }
 0x21e   :  { %v241_v6 = vadd.f32 1e-05, %v237_v5 }
 0x21f   :  { %v233_v7 = vpop.xlane.xlu0 %232  ;;  %v230_v8 = vpop.xlane.xlu1 %229 }
 0x220   :  { %9508 = vrsqrt.f32 %v241_v6  ;;  %v239_v9 = vmul.f32 0.03125, %v233_v7  ;;  %v238_v10 = vmul.f32 0.03125, %v230_v8 }
 0x222   :  { %v243_v11 = vadd.f32 1e-05, %v239_v9  ;;  %v242_v12 = vadd.f32 1e-05, %v238_v10 }
 0x223   :  { %v236_v13 = vpop.xlane.xlu1 %235 }
 0x224   :  { %9510 = vrsqrt.f32 %v243_v11  ;;  %v240_v14 = vmul.f32 0.03125, %v236_v13 }
 0x225   :  { %9512 = vrsqrt.f32 %v242_v12 }
 0x226   :  { %v244_v15 = vadd.f32 1e-05, %v240_v14 }
 0x228   :  { %9514 = vrsqrt.f32 %v244_v15 }
 0x22a   :  { %v9509_v16 = vpop.eup %9508 }
 0x22b   :  { %v249_v18 = vmul.f32 %v9509_v16, %v9916_v35 }
 0x22d   :  { %v259_v20 = vmul.f32 %v7524_v17, %v249_v18 }
 0x22e   :  { %v9511_v21 = vpop.eup %9510 }
 0x22f   :  { %v9513_v22 = vpop.eup %9512  ;;  %v9976_v25 = vadd.f32 %v7525_v19, %v259_v20  ;;  %v251_v26 = vmul.f32 %v9511_v21, %v9924_v42  ;;  %v7526_v42 = vld [vmem:[%s11136_s7] ss:$0 sm:$0xff] }
 0x230   :  { %v250_v27 = vmul.f32 %v9513_v22, %v9921_v41  ;;  %v7536_v41 = vld [vmem:[%s11140_s11] ss:$0 sm:$0xff] }
 0x231   :  { %v261_v30 = vmul.f32 %v7524_v17, %v251_v26  ;;  %8377 = vmatprep.mubr.msk.f32.mxu1 %vm199_vm1, %v9976_v25  ;;  %8405 = vmatprep.mubr.msk.f32.mxu0 %vm199_vm1, %v9976_v25 }
 0x232   :  { %v9515_v33 = vpop.eup %9514  ;;  %v260_v34 = vmul.f32 %v7524_v17, %v250_v27 }
 0x233   :  { %v9990_v35 = vadd.f32 %v7525_v19, %v261_v30  ;;  %v252_v36 = vmul.f32 %v9515_v33, %v9932_v48 }
 0x234   :  { %v9993_v37 = vadd.f32 %v7525_v19, %v260_v34 }
 0x235   :  { %v262_v39 = vmul.f32 %v7524_v17, %v252_v36 }
 0x236   :  { %8378 = vmatmul.mubr.msk.f32.vlgmr.msra.gmra.mrb[0].mxu1 %vm199_vm1, %v9993_v37  ;;  %8406 = vmatmul.mubr.msk.f32.vlgmr.msra.gmra.mrb[4].mxu0 %vm199_vm1, %v9993_v37 }
 0x237   :  { %v9999_v40 = vadd.f32 %v7525_v19, %v262_v39  ;;  %8380 = vmatprep.mubr.msk.f32.mxu1 %vm199_vm1, %v9990_v35  ;;  %9092 = vmatpush3.bf16.msra.mxu1 %v9089_v3 }
 0x238   :  { %8408 = vmatprep.mubr.msk.f32.mxu0 %vm199_vm1, %v9990_v35  ;;  %9094 = vmatprep.subr.bf16.mxu1 %v9093_v38 }
 0x23a   :  { %8381 = vmatmul.mubr.msk.f32.gmra.mrb[2].mxu1 %vm199_vm1, %v9999_v40  ;;  %8409 = vmatmul.mubr.msk.f32.gmra.mrb[6].mxu0 %vm199_vm1, %v9999_v40 }
 0x23b   :  { %9096 = vmatpush3.bf16.msra.mxu1 %v9093_v38  ;;  %8391 = vmatprep.mubr.msk.f32.mxu1 %vm199_vm1, %v9976_v25 }
 0x23e   :  { %8392 = vmatmul.mubr.msk.f32.vlgmr.msra.gmra.mrb[4].mxu1 %vm199_vm1, %v9993_v37 }
 0x23f   :  { %8394 = vmatprep.mubr.msk.f32.mxu1 %vm199_vm1, %v9990_v35 }
 0x242   :  { %8395 = vmatmul.mubr.msk.f32.gmra.mrb[6].mxu1 %vm199_vm1, %v9999_v40 }
 0x309   :  { %v8379_v43 = vpop.f32.mrb[0].mxu1  ;;  %v8407_v44 = vpop.f32.mrb[4].mxu0 }
 0x30a   :  { %v560_v45 = vadd.f32 %v8407_v44, %v7536_v41  ;;  %v362_v46 = vpop.f32.mrb[1].mxu1  ;;  %v554_v47 = vpop.f32.mrb[5].mxu0  ;;  %v368_v7 = vadd.f32 %v8379_v43, %v7526_v42 }
 0x30b   :  { %v363_v48 = vadd.f32 %v7526_v42, %v362_v46  ;;  %v555_v49 = vadd.f32 %v7536_v41, %v554_v47  ;;  %v7564_v46 = vld [vmem:[%s11137_s8 + $0x28] sm:$0xff] }
 0x30d   :  { %v9117_v50 = vpack.c.bf16 %v560_v45, %v555_v49  ;;  %v8382_v51 = vpop.f32.mrb[2].mxu1  ;;  %v8410_v52 = vpop.f32.mrb[6].mxu0  ;;  %8415 = vmatprep.mubr.msk.f32.mxu1 %vm573_vm2, %v363_v48  ;;  %v7563_v45 = vld [vmem:[%s11137_s8 + $0x20] sm:$0xff]  ;;  %v7554_v49 = vld [vmem:[%s11169_s1 + $0x28] sm:$0xff] }
 0x30e   :  { %v570_v53 = vadd.f32 %v8410_v52, %v7536_v41  ;;  %v372_v54 = vpop.f32.mrb[3].mxu1  ;;  %v564_v55 = vpop.f32.mrb[7].mxu0  ;;  %v378_v8 = vadd.f32 %v8382_v51, %v7526_v42  ;;  %v9133_v47 = vpack.c.bf16 %v7564_v46, %v7563_v45  ;;  %v7553_v48 = vld [vmem:[%s11169_s1 + $0x20] sm:$0xff] }
 0x30f   :  { %v373_v56 = vadd.f32 %v7526_v42, %v372_v54  ;;  %v565_v57 = vadd.f32 %v7536_v41, %v564_v55 }
 0x311   :  { %v9121_v59 = vpack.c.bf16 %v570_v53, %v565_v57  ;;  %v8393_v60 = vpop.f32.mrb[4].mxu1  ;;  %8422 = vmatprep.mubr.msk.f32.mxu0 %vm573_vm2, %v373_v56  ;;  %v7565_v56 = vld [vmem:[%s11137_s8 + $0x30] sm:$0xff]  ;;  %v7566_v57 = vld [vmem:[%s11137_s8 + $0x38] sm:$0xff] }
 0x312   :  { %v464_v61 = vadd.f32 %v8393_v60, %v7531_v58  ;;  %v458_v62 = vpop.f32.mrb[5].mxu1 }
 0x313   :  { %v459_v63 = vadd.f32 %v7531_v58, %v458_v62 }
 0x315   :  { %v9105_v1 = vpack.c.bf16 %v464_v61, %v459_v63  ;;  %v8396_v2 = vpop.f32.mrb[6].mxu1  ;;  %v9137_v61 = vpack.c.bf16 %v7566_v57, %v7565_v56  ;;  %v7555_v63 = vld [vmem:[%s11169_s1 + $0x30] sm:$0xff] }
 0x316   :  { %v474_v3 = vadd.f32 %v8396_v2, %v7531_v58  ;;  %v468_v4 = vpop.f32.mrb[7].mxu1 }
 0x317   :  { %v469_v5 = vadd.f32 %v7531_v58, %v468_v4  ;;  %9107 = vmatprep.subr.msk.bf16.mxu1 %vm10030_vm3, %v9105_v1 }
 0x318   :  { %9110 = vmatpush3.bf16.xpose.msk.msra.mxu1 %vm10030_vm3, %v9105_v1  ;;  %v7556_v1 = vld [vmem:[%s11169_s1 + $0x38] sm:$0xff] }
 0x319   :  { %v9111_v6 = vpack.c.bf16 %v474_v3, %v469_v5  ;;  %9122 = vmatprep.subr.bf16.mxu1 %v9121_v59  ;;  %v9129_v5 = vpack.c.bf16 %v7556_v1, %v7555_v63 }
 0x31b   :  { %9113 = vmatprep.subr.msk.bf16.mxu0 %vm10030_vm3, %v9111_v6 }
 0x31c   :  { %9116 = vmatpush3.bf16.xpose.msk.msra.mxu0 %vm10030_vm3, %v9111_v6  ;;  %v7573_v6 = vld [vmem:[%s11139_s10 + $0x20] sm:$0xff] }
 0x31d   :  { %9118 = vmatprep.subr.bf16.mxu0 %v9117_v50 }
 0x31f   :  { %8416 = vmatmul.mubr.msk.f32.vlgmr.msra.gmra.mrb[8].mxu1 %vm573_vm2, %v368_v7  ;;  %v7574_v7 = vld [vmem:[%s11139_s10 + $0x28] sm:$0xff] }
 0x320   :  { %9124 = vmatpush3.bf16.msra.mxu1 %v9121_v59 }
 0x321   :  { %9134 = vmatprep.subr.bf16.mxu1 %v9133_v47 }
 0x323   :  { %8423 = vmatmul.mubr.msk.f32.vlgmr.msra.gmra.mrb[8].mxu0 %vm573_vm2, %v378_v8  ;;  %v9141_v8 = vpack.c.bf16 %v7574_v7, %v7573_v6 }
 0x324   :  { %9120 = vmatpush3.bf16.msra.mxu0 %v9117_v50  ;;  %v9125_v50 = vpack.c.bf16 %v7554_v49, %v7553_v48 }
 0x326   :  { %9126 = vmatprep.subr.bf16.mxu0 %v9125_v50 }
 0x3f2   :  { %v8417_v9 = vpop.f32.mrb[8].mxu1 }
 0x3f3   :  { %v652_v10 = vpop.f32.mrb[9].mxu1  ;;  %v752_v15 = vsel %vm748_vm4, %v8417_v9, -inf }
 0x3f4   :  { %v749_v16 = vsel %vm748_vm4, %v652_v10, -inf }
 0x3f6   :  { %v8424_v11 = vpop.f32.mrb[8].mxu0 }
 0x3f7   :  { %v739_v12 = vpop.f32.mrb[9].mxu0  ;;  %v758_v13 = vsel %vm748_vm4, %v8424_v11, -inf }
 0x3f8   :  { %759 = vmax.xlane.f32.xlu1 %v758_v13  ;;  %v755_v14 = vsel %vm748_vm4, %v739_v12, -inf }
 0x3f9   :  { %756 = vmax.xlane.f32.xlu0 %v755_v14 }
 0x3fc   :  { %753 = vmax.xlane.f32.xlu1 %v752_v15 }
 0x3fd   :  { %750 = vmax.xlane.f32.xlu0 %v749_v16  ;;  %v7568_v16 = vld [vmem:[%s11138_s9 + $0x1] ss:$0 sm:$0xff] }
 0x485   :  { %v760_v17 = vpop.xlane.xlu1 %759 }
 0x486   :  { %v764_v18 = vsub.f32 %v8424_v11, %v760_v17  ;;  %v757_v19 = vpop.xlane.xlu0 %756 }
 0x487   :  { %v763_v20 = vsub.f32 %v739_v12, %v757_v19 }
 0x488   :  { %v771_v21 = vmul.f32 1.442695, %v764_v18 }
 0x489   :  { %v769_v22 = vmul.f32 1.442695, %v763_v20  ;;  %v754_v26 = vpop.xlane.xlu1 %753 }
 0x48a   :  { %9516 = vpow2.f32 %v771_v21  ;;  %v762_v27 = vsub.f32 %v8417_v9, %v754_v26  ;;  %v751_v30 = vpop.xlane.xlu0 %750  ;;  %v7575_v9 = vld [vmem:[%s11139_s10 + $0x30] sm:$0xff]  ;;  %v7558_v21 = vld [vmem:[%s11136_s7 + $0x1] ss:$0 sm:$0xff] }
 0x48b   :  { %9518 = vpow2.f32 %v769_v22  ;;  %v761_v31 = vsub.f32 %v652_v10, %v751_v30  ;;  %v7576_v10 = vld [vmem:[%s11139_s10 + $0x38] sm:$0xff] }
 0x48c   :  { %v767_v32 = vmul.f32 1.442695, %v762_v27  ;;  %v9145_v11 = vpack.c.bf16 %v7576_v10, %v7575_v9 }
 0x48d   :  { %v765_v33 = vmul.f32 1.442695, %v761_v31 }
 0x48e   :  { %9520 = vpow2.f32 %v767_v32 }
 0x48f   :  { %9522 = vpow2.f32 %v765_v33 }
 0x494   :  { %v9517_v34 = vpop.eup %9516 }
 0x495   :  { %v9519_v36 = vpop.eup %9518  ;;  %v782_v38 = vsel %vm748_vm4, %v9517_v34, 0.0 }
 0x496   :  { %783 = vadd.xlane.f32.xlu1 %v782_v38  ;;  %v779_v39 = vsel %vm748_vm4, %v9519_v36, 0.0 }
 0x497   :  { %780 = vadd.xlane.f32.xlu0 %v779_v39 }
 0x498   :  { %v9521_v41 = vpop.eup %9520 }
 0x499   :  { %v9523_v42 = vpop.eup %9522  ;;  %v776_v43 = vsel %vm748_vm4, %v9521_v41, 0.0 }
 0x49a   :  { %777 = vadd.xlane.f32.xlu1 %v776_v43  ;;  %v773_v44 = vsel %vm748_vm4, %v9523_v42, 0.0 }
 0x49b   :  { %774 = vadd.xlane.f32.xlu0 %v773_v44 }
 0x523   :  { %v784_v51 = vpop.xlane.xlu1 %783 }
 0x524   :  { %9524 = vrcp.f32 %v784_v51  ;;  %v781_v52 = vpop.xlane.xlu0 %780 }
 0x525   :  { %9526 = vrcp.f32 %v781_v52 }
 0x527   :  { %v778_v53 = vpop.xlane.xlu1 %777 }
 0x528   :  { %9528 = vrcp.f32 %v778_v53  ;;  %v775_v54 = vpop.xlane.xlu0 %774 }
 0x529   :  { %9530 = vrcp.f32 %v775_v54 }
 0x52e   :  { %v9525_v55 = vpop.eup %9524 }
 0x52f   :  { %v9527_v58 = vpop.eup %9526  ;;  %v792_v60 = vmul.f32 %v9525_v55, %v9517_v34 }
 0x530   :  { %v791_v59 = vmul.f32 %v9527_v58, %v9519_v36 }
 0x532   :  { %v9529_v62 = vpop.eup %9528  ;;  %8436 = vmatprep.mubr.msk.f32.mxu1 %vm748_vm4, %v791_v59 }
 0x533   :  { %v9531_v2 = vpop.eup %9530  ;;  %8437 = vmatmul.mubr.msk.f32.vlgmr.msra.gmra.mrb[10].mxu1 %vm748_vm4, %v792_v60  ;;  %v790_v4 = vmul.f32 %v9529_v62, %v9521_v41 }
 0x534   :  { %9136 = vmatpush3.bf16.msra.mxu1 %v9133_v47  ;;  %8461 = vmatprep.mubr.msk.f32.mxu1 %vm199_vm1, %v9976_v25  ;;  %v789_v3 = vmul.f32 %v9531_v2, %v9523_v42  ;;  %v7578_v42 = vld [vmem:[%s11140_s11 + $0x1] ss:$0 sm:$0xff] }
 0x535   :  { %9138 = vmatprep.subr.bf16.mxu1 %v9137_v61 }
 0x536   :  { %8429 = vmatprep.mubr.msk.f32.mxu0 %vm748_vm4, %v789_v3 }
 0x537   :  { %8430 = vmatmul.mubr.msk.f32.vlgmr.msra.gmra.mrb[10].mxu0 %vm748_vm4, %v790_v4 }
 0x538   :  { %9128 = vmatpush3.bf16.msra.mxu0 %v9125_v50  ;;  %9140 = vmatpush3.bf16.msra.mxu1 %v9137_v61 }
 0x539   :  { %8447 = vmatprep.mubr.msk.f32.mxu0 %vm199_vm1, %v9976_v25  ;;  %9130 = vmatprep.subr.bf16.mxu0 %v9129_v5 }
 0x53b   :  { %8462 = vmatmul.mubr.msk.f32.vlgmr.msra.gmra.mrb[12].mxu1 %vm199_vm1, %v9993_v37 }
 0x53c   :  { %9132 = vmatpush3.bf16.msra.mxu0 %v9129_v5  ;;  %8464 = vmatprep.mubr.msk.f32.mxu1 %vm199_vm1, %v9990_v35 }
 0x53d   :  { %9142 = vmatprep.subr.bf16.mxu0 %v9141_v8 }
 0x53f   :  { %8448 = vmatmul.mubr.msk.f32.vlgmr.msra.gmra.mrb[12].mxu0 %vm199_vm1, %v9993_v37  ;;  %8465 = vmatmul.mubr.msk.f32.gmra.mrb[14].mxu1 %vm199_vm1, %v9999_v40 }
 0x540   :  { %8450 = vmatprep.mubr.msk.f32.mxu0 %vm199_vm1, %v9990_v35  ;;  %9144 = vmatpush3.bf16.msra.mxu0 %v9141_v8 }
 0x541   :  { %9146 = vmatprep.subr.bf16.mxu0 %v9145_v11 }
 0x543   :  { %8451 = vmatmul.mubr.msk.f32.gmra.mrb[14].mxu0 %vm199_vm1, %v9999_v40 }
 0x544   :  { %9148 = vmatpush3.bf16.msra.mxu0 %v9145_v11  ;;  %8475 = vmatprep.mubr.msk.f32.mxu0 %vm199_vm1, %v9976_v25 }
 0x547   :  { %8476 = vmatmul.mubr.msk.f32.vlgmr.msra.gmra.mrb[16].mxu0 %vm199_vm1, %v9993_v37 }
 0x548   :  { %8478 = vmatprep.mubr.msk.f32.mxu0 %vm199_vm1, %v9990_v35 }
 0x54b   :  { %8479 = vmatmul.mubr.msk.f32.gmra.mrb[18].mxu0 %vm199_vm1, %v9999_v40 }
 0x606   :  { %v10116_v12 = vpop.f32.mrb[10].mxu1 }
 0x607   :  { %v10118_v13 = vpop.f32.mrb[11].mxu1 }
 0x60a   :  { %v10120_v14 = vpop.f32.mrb[10].mxu0 }
 0x60b   :  { %v10122_v15 = vpop.f32.mrb[11].mxu0 }
 0x60e   :  { %v8463_v17 = vpop.f32.mrb[12].mxu1 }
 0x60f   :  { %v1139_v18 = vadd.f32 %v8463_v17, %v7568_v16  ;;  %v1133_v19 = vpop.f32.mrb[13].mxu1 }
 0x610   :  { %v1134_v20 = vadd.f32 %v7568_v16, %v1133_v19 }
 0x612   :  { %v9149_v22 = vpack.c.bf16 %v1139_v18, %v1134_v20  ;;  %v8449_v26 = vpop.f32.mrb[12].mxu0  ;;  %v8466_v27 = vpop.f32.mrb[14].mxu1 }
 0x613   :  { %v1149_v30 = vadd.f32 %v8466_v27, %v7568_v16  ;;  %v1035_v31 = vpop.f32.mrb[13].mxu0  ;;  %v1143_v32 = vpop.f32.mrb[15].mxu1  ;;  %v1041_v43 = vadd.f32 %v8449_v26, %v7558_v21 }
 0x614   :  { %v1036_v33 = vadd.f32 %v7558_v21, %v1035_v31  ;;  %v1144_v34 = vadd.f32 %v7568_v16, %v1143_v32  ;;  %9151 = vmatprep.subr.msk.bf16.mxu1 %vm10030_vm3, %v9149_v22 }
 0x615   :  { %9154 = vmatpush3.bf16.xpose.msk.msra.mxu1 %vm10030_vm3, %v9149_v22 }
 0x616   :  { %v9155_v36 = vpack.c.bf16 %v1149_v30, %v1144_v34  ;;  %v8452_v38 = vpop.f32.mrb[14].mxu0  ;;  %8485 = vmatprep.mubr.msk.f32.mxu1 %vm573_vm2, %v1036_v33  ;;  %v7604_v34 = vld [vmem:[%s11169_s1 + $0x40] sm:$0xff] }
 0x617   :  { %v1045_v39 = vpop.f32.mrb[15].mxu0  ;;  %v1051_v48 = vadd.f32 %v8452_v38, %v7558_v21 }
 0x618   :  { %v1046_v41 = vadd.f32 %v7558_v21, %v1045_v39  ;;  %9157 = vmatprep.subr.msk.bf16.mxu0 %vm10030_vm3, %v9155_v36 }
 0x619   :  { %9160 = vmatpush3.bf16.xpose.msk.msra.mxu0 %vm10030_vm3, %v9155_v36  ;;  %v7605_v36 = vld [vmem:[%s11169_s1 + $0x48] sm:$0xff] }
 0x61a   :  { %v8477_v44 = vpop.f32.mrb[16].mxu0  ;;  %8492 = vmatprep.mubr.msk.f32.mxu0 %vm573_vm2, %v1046_v41 }
 0x61b   :  { %v1237_v45 = vadd.f32 %v8477_v44, %v7578_v42  ;;  %v1231_v46 = vpop.f32.mrb[17].mxu0  ;;  %v7606_v44 = vld [vmem:[%s11169_s1 + $0x50] sm:$0xff] }
 0x61c   :  { %v1232_v47 = vadd.f32 %v7578_v42, %v1231_v46  ;;  %8486 = vmatmul.mubr.msk.f32.vlgmr.msra.gmra.mrb[16].mxu1 %vm573_vm2, %v1041_v43 }
 0x61e   :  { %v9161_v49 = vpack.c.bf16 %v1237_v45, %v1232_v47  ;;  %v8480_v50 = vpop.f32.mrb[18].mxu0  ;;  %v7607_v45 = vld [vmem:[%s11169_s1 + $0x58] sm:$0xff] }
 0x61f   :  { %v1247_v51 = vadd.f32 %v8480_v50, %v7578_v42  ;;  %v1241_v52 = vpop.f32.mrb[19].mxu0  ;;  %v7614_v50 = vld [vmem:[%s11137_s8 + $0x40] sm:$0xff] }
 0x620   :  { %v1242_v53 = vadd.f32 %v7578_v42, %v1241_v52  ;;  %8493 = vmatmul.mubr.msk.f32.vlgmr.msra.gmra.mrb[20].mxu0 %vm573_vm2, %v1051_v48  ;;  %9162 = vmatprep.subr.bf16.mxu1 %v9161_v49  ;;  %v9169_v42 = vpack.c.bf16 %v7605_v36, %v7604_v34 }
 0x621   :  { %9164 = vmatpush3.bf16.msra.mxu1 %v9161_v49  ;;  %v9173_v49 = vpack.c.bf16 %v7607_v45, %v7606_v44 }
 0x622   :  { %v10145_v54 = vpack.c.bf16 %v1247_v51, %v1242_v53  ;;  %v7615_v51 = vld [vmem:[%s11137_s8 + $0x48] sm:$0xff]  ;;  %v7616_v53 = vld [vmem:[%s11137_s8 + $0x50] sm:$0xff] }
 0x623   :  { %v9177_v52 = vpack.c.bf16 %v7615_v51, %v7614_v50 }
 0x624   :  { %9166 = vmatprep.subr.bf16.mxu1 %v10145_v54 }
 0x6ef   :  { %v8487_v55 = vpop.f32.mrb[16].mxu1 }
 0x6f0   :  { %v1328_v56 = vpop.f32.mrb[17].mxu1  ;;  %v1427_v57 = vsel %vm748_vm4, %v8487_v55, -inf }
 0x6f1   :  { %1428 = vmax.xlane.f32.xlu1 %v1427_v57  ;;  %v1424_v58 = vsel %vm748_vm4, %v1328_v56, -inf  ;;  %v955_v57 = vld [vmem:[%s11141_s12] sm:$0xff] }
 0x6f2   :  { %1425 = vmax.xlane.f32.xlu0 %v1424_v58  ;;  %v7624_v58 = vld [vmem:[%s11139_s10 + $0x40] sm:$0xff] }
 0x6f3   :  { %v8494_v59 = vpop.f32.mrb[20].mxu0 }
 0x6f4   :  { %v1415_v60 = vpop.f32.mrb[21].mxu0  ;;  %v1433_v61 = vsel %vm748_vm4, %v8494_v59, -inf }
 0x6f5   :  { %1434 = vmax.xlane.f32.xlu1 %v1433_v61  ;;  %v1430_v62 = vsel %vm748_vm4, %v1415_v60, -inf }
 0x6f6   :  { %1431 = vmax.xlane.f32.xlu0 %v1430_v62 }
 0x77e   :  { %v1429_v63 = vpop.xlane.xlu1 %1428 }
 0x77f   :  { %v1437_v1 = vsub.f32 %v8487_v55, %v1429_v63  ;;  %v1426_v2 = vpop.xlane.xlu0 %1425 }
 0x780   :  { %v1436_v3 = vsub.f32 %v1328_v56, %v1426_v2  ;;  %v7595_v56 = vld [vmem:[%s11141_s12 + $0x8] sm:$0xff]  ;;  %v7626_v2 = vld [vmem:[%s11139_s10 + $0x50] sm:$0xff] }
 0x781   :  { %v1442_v4 = vmul.f32 1.442695, %v1437_v1  ;;  %8509 = vmatprep.subr.mxu0 %v7595_v56 }
 0x782   :  { %v1440_v5 = vmul.f32 1.442695, %v1436_v3  ;;  %v1435_v6 = vpop.xlane.xlu1 %1434  ;;  %8510 = vmatpush3.msra.mxu0 %v7595_v56  ;;  %v7627_v3 = vld [vmem:[%s11139_s10 + $0x58] sm:$0xff] }
 0x783   :  { %9532 = vpow2.f32 %v1442_v4  ;;  %v1439_v7 = vsub.f32 %v8494_v59, %v1435_v6  ;;  %v1432_v8 = vpop.xlane.xlu0 %1431  ;;  %8517 = vmatprep.subr.mxu0 %v955_v57  ;;  %v7625_v59 = vld [vmem:[%s11139_s10 + $0x48] sm:$0xff]  ;;  %v9189_v4 = vpack.c.bf16 %v7627_v3, %v7626_v2 }
 0x784   :  { %9534 = vpow2.f32 %v1440_v5  ;;  %v1438_v9 = vsub.f32 %v1415_v60, %v1432_v8  ;;  %v9185_v62 = vpack.c.bf16 %v7625_v59, %v7624_v58  ;;  %v7609_v5 = vld [vmem:[%s11136_s7 + $0x2] ss:$0 sm:$0xff] }
 0x785   :  { %v1446_v10 = vmul.f32 1.442695, %v1439_v7 }
 0x786   :  { %v1444_v11 = vmul.f32 1.442695, %v1438_v9  ;;  %v7619_v9 = vld [vmem:[%s11138_s9 + $0x2] ss:$0 sm:$0xff] }
 0x787   :  { %9536 = vpow2.f32 %v1446_v10 }
 0x788   :  { %9538 = vpow2.f32 %v1444_v11 }
 0x78d   :  { %v9533_v16 = vpop.eup %9532 }
 0x78e   :  { %v9535_v17 = vpop.eup %9534  ;;  %v1451_v18 = vsel %vm748_vm4, %v9533_v16, 0.0 }
 0x78f   :  { %1452 = vadd.xlane.f32.xlu1 %v1451_v18  ;;  %v1448_v19 = vsel %vm748_vm4, %v9535_v17, 0.0 }
 0x790   :  { %1449 = vadd.xlane.f32.xlu0 %v1448_v19 }
 0x791   :  { %v9537_v20 = vpop.eup %9536 }
 0x792   :  { %v9539_v21 = vpop.eup %9538  ;;  %v1457_v22 = vsel %vm748_vm4, %v9537_v20, 0.0 }
 0x793   :  { %1458 = vadd.xlane.f32.xlu1 %v1457_v22  ;;  %v1454_v26 = vsel %vm748_vm4, %v9539_v21, 0.0 }
 0x794   :  { %1455 = vadd.xlane.f32.xlu0 %v1454_v26 }
 0x81c   :  { %v1453_v27 = vpop.xlane.xlu1 %1452 }
 0x81d   :  { %9540 = vrcp.f32 %v1453_v27  ;;  %v1450_v30 = vpop.xlane.xlu0 %1449 }
 0x81e   :  { %9542 = vrcp.f32 %v1450_v30  ;;  %v7629_v30 = vld [vmem:[%s11140_s11 + $0x2] ss:$0 sm:$0xff] }
 0x820   :  { %v1459_v31 = vpop.xlane.xlu1 %1458 }
 0x821   :  { %9544 = vrcp.f32 %v1459_v31  ;;  %v1456_v32 = vpop.xlane.xlu0 %1455 }
 0x822   :  { %9546 = vrcp.f32 %v1456_v32 }
 0x827   :  { %v9541_v33 = vpop.eup %9540 }
 0x828   :  { %v9543_v38 = vpop.eup %9542  ;;  %v1465_v41 = vmul.f32 %v9541_v33, %v9533_v16 }
 0x829   :  { %v1464_v39 = vmul.f32 %v9543_v38, %v9535_v17 }
 0x82b   :  { %v9545_v43 = vpop.eup %9544  ;;  %8499 = vmatprep.mubr.msk.f32.mxu1 %vm748_vm4, %v1464_v39 }
 0x82c   :  { %v9547_v46 = vpop.eup %9546  ;;  %8500 = vmatmul.mubr.msk.f32.vlgmr.msra.gmra.mrb[18].mxu1 %vm748_vm4, %v1465_v41  ;;  %v1467_v48 = vmul.f32 %v9545_v43, %v9537_v20 }
 0x82d   :  { %9168 = vmatpush3.bf16.msra.mxu1 %v10145_v54  ;;  %v1466_v47 = vmul.f32 %v9547_v46, %v9539_v21  ;;  %v7617_v54 = vld [vmem:[%s11137_s8 + $0x58] sm:$0xff] }
 0x82e   :  { %9170 = vmatprep.subr.bf16.mxu1 %v9169_v42  ;;  %v9181_v55 = vpack.c.bf16 %v7617_v54, %v7616_v53 }
 0x82f   :  { %8506 = vmatprep.mubr.msk.f32.mxu1 %vm748_vm4, %v1466_v47 }
 0x830   :  { %8507 = vmatmul.mubr.msk.f32.vlgmr.msra.gmra.mrb[20].mxu1 %vm748_vm4, %v1467_v48 }
 0x831   :  { %9172 = vmatpush3.bf16.msra.mxu1 %v9169_v42  ;;  %8533 = vmatprep.mubr.msk.f32.mxu1 %vm199_vm1, %v9976_v25 }
 0x832   :  { %9174 = vmatprep.subr.bf16.mxu1 %v9173_v49 }
 0x835   :  { %9176 = vmatpush3.bf16.msra.mxu1 %v9173_v49 }
 0x836   :  { %9178 = vmatprep.subr.bf16.mxu1 %v9177_v52 }
 0x838   :  { %8534 = vmatmul.mubr.msk.f32.vlgmr.msra.gmra.mrb[22].mxu1 %vm199_vm1, %v9993_v37 }
 0x839   :  { %8536 = vmatprep.mubr.msk.f32.mxu1 %vm199_vm1, %v9990_v35  ;;  %9180 = vmatpush3.bf16.msra.mxu1 %v9177_v52 }
 0x83a   :  { %9182 = vmatprep.subr.bf16.mxu1 %v9181_v55 }
 0x83c   :  { %8537 = vmatmul.mubr.msk.f32.gmra.mrb[24].mxu1 %vm199_vm1, %v9999_v40 }
 0x83d   :  { %9184 = vmatpush3.bf16.msra.mxu1 %v9181_v55  ;;  %8547 = vmatprep.mubr.msk.f32.mxu1 %vm199_vm1, %v9976_v25 }
 0x840   :  { %8548 = vmatmul.mubr.msk.f32.vlgmr.msra.gmra.mrb[26].mxu1 %vm199_vm1, %v9993_v37 }
 0x841   :  { %8550 = vmatprep.mubr.msk.f32.mxu1 %vm199_vm1, %v9990_v35 }
 0x844   :  { %8551 = vmatmul.mubr.msk.f32.gmra.mrb[28].mxu1 %vm199_vm1, %v9999_v40 }
 0x8ff   :  { %v8501_v60 = vpop.f32.mrb[18].mxu1 }
 0x900   :  { %v1540_v61 = vpop.f32.mrb[19].mxu1 }
 0x901   :  { %8511 = vmatprep.mubr.msk.f32.mxu0 %vm573_vm2, %v1540_v61 }
 0x902   :  { %8512 = vmatmul.mubr.msk.f32.vlgmr.msra.gmra.mrb[22].mxu0 %vm573_vm2, %v8501_v60 }
 0x903   :  { %v8508_v63 = vpop.f32.mrb[20].mxu1  ;;  %8518 = vmatpush3.msra.mxu0 %v955_v57 }
 0x904   :  { %v1621_v1 = vpop.f32.mrb[21].mxu1  ;;  %9186 = vmatprep.subr.bf16.mxu0 %v9185_v62 }
 0x905   :  { %8514 = vmatprep.mubr.msk.f32.mxu0 %vm573_vm2, %v1621_v1 }
 0x906   :  { %8515 = vmatmul.mubr.msk.f32.gmra.mrb[24].mxu0 %vm573_vm2, %v8508_v63 }
 0x907   :  { %8519 = vmatprep.mubr.msk.f32.mxu0 %vm573_vm2, %v10122_v15 }
 0x90a   :  { %8520 = vmatmul.mubr.msk.f32.vlgmr.msra.gmra.mrb[22].mxu0 %vm573_vm2, %v10120_v14 }
 0x90b   :  { %v8535_v6 = vpop.f32.mrb[22].mxu1  ;;  %8522 = vmatprep.mubr.msk.f32.mxu0 %vm573_vm2, %v10118_v13  ;;  %9188 = vmatpush3.bf16.msra.mxu0 %v9185_v62 }
 0x90c   :  { %v1905_v7 = vpop.f32.mrb[23].mxu1  ;;  %9190 = vmatprep.subr.bf16.mxu0 %v9189_v4  ;;  %v1911_v26 = vadd.f32 %v8535_v6, %v7609_v5 }
 0x90d   :  { %v1906_v8 = vadd.f32 %v7609_v5, %v1905_v7 }
 0x90e   :  { %8523 = vmatmul.mubr.msk.f32.gmra.mrb[24].mxu0 %vm573_vm2, %v10116_v12 }
 0x90f   :  { %v8538_v15 = vpop.f32.mrb[24].mxu1  ;;  %8571 = vmatprep.mubr.msk.f32.mxu1 %vm573_vm2, %v1906_v8  ;;  %9192 = vmatpush3.bf16.msra.mxu0 %v9189_v4 }
 0x910   :  { %v1915_v14 = vpop.f32.mrb[25].mxu1  ;;  %8561 = vmatprep.mubr.msk.f32.mxu0 %vm199_vm1, %v9976_v25  ;;  %v1921_v27 = vadd.f32 %v8538_v15, %v7609_v5  ;;  %v7651_v15 = vld [vmem:[%s11169_s1 + $0x60] sm:$0xff] }
 0x911   :  { %v1916_v11 = vadd.f32 %v7609_v5, %v1915_v14  ;;  %v7652_v14 = vld [vmem:[%s11169_s1 + $0x68] sm:$0xff] }
 0x912   :  { %8562 = vmatmul.mubr.msk.f32.vlgmr.msra.gmra.mrb[26].mxu0 %vm199_vm1, %v9993_v37 }
 0x913   :  { %v8549_v13 = vpop.f32.mrb[26].mxu1  ;;  %8564 = vmatprep.mubr.msk.f32.mxu0 %vm199_vm1, %v9990_v35 }
 0x914   :  { %v2009_v12 = vadd.f32 %v8549_v13, %v7619_v9  ;;  %v2003_v10 = vpop.f32.mrb[27].mxu1  ;;  %v7646_v13 = vld [vmem:[%s11141_s12 + $0x10] sm:$0xff] }
 0x915   :  { %v2004_v16 = vadd.f32 %v7619_v9, %v2003_v10 }
 0x916   :  { %8565 = vmatmul.mubr.msk.f32.gmra.mrb[28].mxu0 %vm199_vm1, %v9999_v40 }
 0x917   :  { %v9193_v17 = vpack.c.bf16 %v2009_v12, %v2004_v16  ;;  %v8552_v18 = vpop.f32.mrb[28].mxu1  ;;  %8578 = vmatprep.mubr.msk.f32.mxu0 %vm573_vm2, %v1916_v11 }
 0x918   :  { %v2019_v19 = vadd.f32 %v8552_v18, %v7619_v9  ;;  %v2013_v20 = vpop.f32.mrb[29].mxu1  ;;  %v7653_v18 = vld [vmem:[%s11169_s1 + $0x70] sm:$0xff] }
 0x919   :  { %v2014_v21 = vadd.f32 %v7619_v9, %v2013_v20  ;;  %9195 = vmatprep.subr.msk.bf16.mxu1 %vm10030_vm3, %v9193_v17  ;;  %v9213_v9 = vpack.c.bf16 %v7652_v14, %v7651_v15 }
 0x91a   :  { %9198 = vmatpush3.bf16.xpose.msk.msra.mxu1 %vm10030_vm3, %v9193_v17 }
 0x91b   :  { %v9199_v22 = vpack.c.bf16 %v2019_v19, %v2014_v21  ;;  %v7654_v19 = vld [vmem:[%s11169_s1 + $0x78] sm:$0xff] }
 0x91d   :  { %9201 = vmatprep.subr.msk.bf16.mxu0 %vm10030_vm3, %v9199_v22 }
 0x91e   :  { %9204 = vmatpush3.bf16.xpose.msk.msra.mxu0 %vm10030_vm3, %v9199_v22 }
 0x921   :  { %8572 = vmatmul.mubr.msk.f32.vlgmr.msra.gmra.mrb[30].mxu1 %vm573_vm2, %v1911_v26  ;;  %v9217_v26 = vpack.c.bf16 %v7654_v19, %v7653_v18 }
 0x925   :  { %8579 = vmatmul.mubr.msk.f32.vlgmr.msra.gmra.mrb[30].mxu0 %vm573_vm2, %v1921_v27 }
 0x9e5   :  { %v8563_v31 = vpop.f32.mrb[26].mxu0 }
 0x9e6   :  { %v2107_v32 = vadd.f32 %v8563_v31, %v7629_v30  ;;  %v2101_v33 = vpop.f32.mrb[27].mxu0  ;;  %v7672_v31 = vld [vmem:[%s11139_s10 + $0x68] sm:$0xff] }
 0x9e7   :  { %v2102_v34 = vadd.f32 %v7629_v30, %v2101_v33 }
 0x9e9   :  { %v9205_v36 = vpack.c.bf16 %v2107_v32, %v2102_v34  ;;  %v8566_v38 = vpop.f32.mrb[28].mxu0 }
 0x9ea   :  { %v2117_v39 = vadd.f32 %v8566_v38, %v7629_v30  ;;  %v2111_v41 = vpop.f32.mrb[29].mxu0  ;;  %v7673_v38 = vld [vmem:[%s11139_s10 + $0x70] sm:$0xff] }
 0x9eb   :  { %v2112_v42 = vadd.f32 %v7629_v30, %v2111_v41  ;;  %9206 = vmatprep.subr.bf16.mxu1 %v9205_v36  ;;  %v7671_v30 = vld [vmem:[%s11139_s10 + $0x60] sm:$0xff] }
 0x9ec   :  { %9208 = vmatpush3.bf16.msra.mxu1 %v9205_v36  ;;  %v9229_v36 = vpack.c.bf16 %v7672_v31, %v7671_v30 }
 0x9ed   :  { %v9209_v43 = vpack.c.bf16 %v2117_v39, %v2112_v42  ;;  %9214 = vmatprep.subr.bf16.mxu1 %v9213_v9  ;;  %v7674_v39 = vld [vmem:[%s11139_s10 + $0x78] sm:$0xff]  ;;  %v7661_v42 = vld [vmem:[%s11137_s8 + $0x60] sm:$0xff] }
 0x9ee   :  { %v9233_v41 = vpack.c.bf16 %v7674_v39, %v7673_v38 }
 0x9ef   :  { %9210 = vmatprep.subr.bf16.mxu0 %v9209_v43 }
 0x9f0   :  { %9212 = vmatpush3.bf16.msra.mxu0 %v9209_v43  ;;  %v7662_v43 = vld [vmem:[%s11137_s8 + $0x68] sm:$0xff] }
 0x9f1   :  { %8595 = vmatprep.subr.mxu0 %v7646_v13 }
 0x9f4   :  { %v8573_v44 = vpop.f32.mrb[30].mxu1 }
 0x9f5   :  { %v2198_v45 = vpop.f32.mrb[31].mxu1  ;;  %v2297_v46 = vsel %vm748_vm4, %v8573_v44, -inf }
 0x9f6   :  { %2298 = vmax.xlane.f32.xlu1 %v2297_v46  ;;  %v2294_v47 = vsel %vm748_vm4, %v2198_v45, -inf  ;;  %v7664_v46 = vld [vmem:[%s11137_s8 + $0x78] sm:$0xff] }
 0x9f7   :  { %2295 = vmax.xlane.f32.xlu0 %v2294_v47 }
 0x9f8   :  { %v8580_v48 = vpop.f32.mrb[30].mxu0 }
 0x9f9   :  { %v2285_v49 = vpop.f32.mrb[31].mxu0  ;;  %v2303_v50 = vsel %vm748_vm4, %v8580_v48, -inf }
 0x9fa   :  { %2304 = vmax.xlane.f32.xlu1 %v2303_v50  ;;  %v2300_v51 = vsel %vm748_vm4, %v2285_v49, -inf }
 0x9fb   :  { %2301 = vmax.xlane.f32.xlu0 %v2300_v51 }
 0xa83   :  { %v2299_v52 = vpop.xlane.xlu1 %2298 }
 0xa84   :  { %v2307_v53 = vsub.f32 %v8573_v44, %v2299_v52  ;;  %v2296_v54 = vpop.xlane.xlu0 %2295  ;;  %v9221_v44 = vpack.c.bf16 %v7662_v43, %v7661_v42  ;;  %v7656_v52 = vld [vmem:[%s11136_s7 + $0x3] ss:$0 sm:$0xff] }
 0xa85   :  { %v2306_v55 = vsub.f32 %v2198_v45, %v2296_v54  ;;  %v7663_v45 = vld [vmem:[%s11137_s8 + $0x70] sm:$0xff] }
 0xa86   :  { %v2312_v56 = vmul.f32 1.442695, %v2307_v53 }
 0xa87   :  { %v2310_v57 = vmul.f32 1.442695, %v2306_v55  ;;  %v2305_v58 = vpop.xlane.xlu1 %2304 }
 0xa88   :  { %9548 = vpow2.f32 %v2312_v56  ;;  %v2309_v59 = vsub.f32 %v8580_v48, %v2305_v58  ;;  %v2302_v60 = vpop.xlane.xlu0 %2301 }
 0xa89   :  { %9550 = vpow2.f32 %v2310_v57  ;;  %v2308_v61 = vsub.f32 %v2285_v49, %v2302_v60  ;;  %v9225_v49 = vpack.c.bf16 %v7664_v46, %v7663_v45 }
 0xa8a   :  { %v2316_v62 = vmul.f32 1.442695, %v2309_v59 }
 0xa8b   :  { %v2314_v63 = vmul.f32 1.442695, %v2308_v61  ;;  %v7676_v61 = vld [vmem:[%s11140_s11 + $0x3] ss:$0 sm:$0xff] }
 0xa8c   :  { %9552 = vpow2.f32 %v2316_v62 }
 0xa8d   :  { %9554 = vpow2.f32 %v2314_v63 }
 0xa92   :  { %v9549_v1 = vpop.eup %9548 }
 0xa93   :  { %v9551_v2 = vpop.eup %9550  ;;  %v2321_v3 = vsel %vm748_vm4, %v9549_v1, 0.0 }
 0xa94   :  { %2322 = vadd.xlane.f32.xlu1 %v2321_v3  ;;  %v2318_v4 = vsel %vm748_vm4, %v9551_v2, 0.0 }
 0xa95   :  { %2319 = vadd.xlane.f32.xlu0 %v2318_v4 }
 0xa96   :  { %v9553_v5 = vpop.eup %9552 }
 0xa97   :  { %v9555_v6 = vpop.eup %9554  ;;  %v2327_v7 = vsel %vm748_vm4, %v9553_v5, 0.0 }
 0xa98   :  { %2328 = vadd.xlane.f32.xlu1 %v2327_v7  ;;  %v2324_v8 = vsel %vm748_vm4, %v9555_v6, 0.0 }
 0xa99   :  { %2325 = vadd.xlane.f32.xlu0 %v2324_v8 }
 0xb21   :  { %v2323_v12 = vpop.xlane.xlu1 %2322 }
 0xb22   :  { %9556 = vrcp.f32 %v2323_v12  ;;  %v2320_v10 = vpop.xlane.xlu0 %2319 }
 0xb23   :  { %9558 = vrcp.f32 %v2320_v10 }
 0xb25   :  { %v2329_v11 = vpop.xlane.xlu1 %2328 }
 0xb26   :  { %9560 = vrcp.f32 %v2329_v11  ;;  %v2326_v16 = vpop.xlane.xlu0 %2325 }
 0xb27   :  { %9562 = vrcp.f32 %v2326_v16 }
 0xb2c   :  { %v9557_v17 = vpop.eup %9556 }
 0xb2d   :  { %v9559_v20 = vpop.eup %9558  ;;  %v2335_v22 = vmul.f32 %v9557_v17, %v9549_v1 }
 0xb2e   :  { %v2334_v21 = vmul.f32 %v9559_v20, %v9551_v2 }
 0xb30   :  { %v9561_v27 = vpop.eup %9560  ;;  %8585 = vmatprep.mubr.msk.f32.mxu1 %vm748_vm4, %v2334_v21 }
 0xb31   :  { %v9563_v32 = vpop.eup %9562  ;;  %8586 = vmatmul.mubr.msk.f32.vlgmr.msra.gmra.mrb[32].mxu1 %vm748_vm4, %v2335_v22  ;;  %v2337_v34 = vmul.f32 %v9561_v27, %v9553_v5 }
 0xb32   :  { %9216 = vmatpush3.bf16.msra.mxu1 %v9213_v9  ;;  %8611 = vmatprep.mubr.msk.f32.mxu1 %vm199_vm1, %v9976_v25  ;;  %v2336_v33 = vmul.f32 %v9563_v32, %v9555_v6  ;;  %v7666_v6 = vld [vmem:[%s11138_s9 + $0x3] ss:$0 sm:$0xff] }
 0xb33   :  { %9218 = vmatprep.subr.bf16.mxu1 %v9217_v26 }
 0xb34   :  { %8592 = vmatprep.mubr.msk.f32.mxu0 %vm748_vm4, %v2336_v33 }
 0xb35   :  { %8593 = vmatmul.mubr.msk.f32.vlgmr.msra.gmra.mrb[32].mxu0 %vm748_vm4, %v2337_v34 }
 0xb36   :  { %9220 = vmatpush3.bf16.msra.mxu1 %v9217_v26  ;;  %8596 = vmatpush3.msra.mxu0 %v7646_v13 }
 0xb37   :  { %9230 = vmatprep.subr.bf16.mxu1 %v9229_v36  ;;  %9222 = vmatprep.subr.bf16.mxu0 %v9221_v44 }
 0xb39   :  { %8612 = vmatmul.mubr.msk.f32.vlgmr.msra.gmra.mrb[34].mxu1 %vm199_vm1, %v9993_v37 }
 0xb3a   :  { %8614 = vmatprep.mubr.msk.f32.mxu1 %vm199_vm1, %v9990_v35  ;;  %9232 = vmatpush3.bf16.msra.mxu1 %v9229_v36 }
 0xb3b   :  { %9234 = vmatprep.subr.bf16.mxu1 %v9233_v41 }
 0xb3d   :  { %8615 = vmatmul.mubr.msk.f32.gmra.mrb[36].mxu1 %vm199_vm1, %v9999_v40 }
 0xb3e   :  { %9236 = vmatpush3.bf16.msra.mxu1 %v9233_v41  ;;  %8639 = vmatprep.mubr.msk.f32.mxu1 %vm199_vm1, %v9976_v25 }
 0xb41   :  { %8640 = vmatmul.mubr.msk.f32.vlgmr.msra.gmra.mrb[38].mxu1 %vm199_vm1, %v9993_v37 }
 0xb42   :  { %8642 = vmatprep.mubr.msk.f32.mxu1 %vm199_vm1, %v9990_v35 }
 0xb45   :  { %8643 = vmatmul.mubr.msk.f32.gmra.mrb[40].mxu1 %vm199_vm1, %v9999_v40 }
 0xc04   :  { %v8587_v47 = vpop.f32.mrb[32].mxu1 }
 0xc05   :  { %v2410_v48 = vpop.f32.mrb[33].mxu1 }
 0xc06   :  { %8597 = vmatprep.mubr.msk.f32.mxu0 %vm573_vm2, %v2410_v48 }
 0xc07   :  { %8598 = vmatmul.mubr.msk.f32.vlgmr.msra.gmra.mrb[22].mxu0 %vm573_vm2, %v8587_v47 }
 0xc08   :  { %v8594_v50 = vpop.f32.mrb[32].mxu0  ;;  %9224 = vmatpush3.bf16.msra.mxu0 %v9221_v44 }
 0xc09   :  { %v2491_v51 = vpop.f32.mrb[33].mxu0  ;;  %9226 = vmatprep.subr.bf16.mxu0 %v9225_v49 }
 0xc0a   :  { %8600 = vmatprep.mubr.msk.f32.mxu0 %vm573_vm2, %v2491_v51 }
 0xc0b   :  { %8601 = vmatmul.mubr.msk.f32.gmra.mrb[24].mxu0 %vm573_vm2, %v8594_v50 }
 0xc0c   :  { %v8613_v53 = vpop.f32.mrb[34].mxu1  ;;  %9228 = vmatpush3.bf16.msra.mxu0 %v9225_v49  ;;  %8625 = vmatprep.mubr.msk.f32.mxu0 %vm199_vm1, %v9976_v25 }
 0xc0d   :  { %v2688_v54 = vadd.f32 %v8613_v53, %v7656_v52  ;;  %v2682_v55 = vpop.f32.mrb[35].mxu1 }
 0xc0e   :  { %v2683_v59 = vadd.f32 %v7656_v52, %v2682_v55 }
 0xc0f   :  { %8626 = vmatmul.mubr.msk.f32.vlgmr.msra.gmra.mrb[34].mxu0 %vm199_vm1, %v9993_v37 }
 0xc10   :  { %v8616_v56 = vpop.f32.mrb[36].mxu1  ;;  %8628 = vmatprep.mubr.msk.f32.mxu0 %vm199_vm1, %v9990_v35 }
 0xc11   :  { %v2698_v57 = vadd.f32 %v8616_v56, %v7656_v52  ;;  %v2692_v58 = vpop.f32.mrb[37].mxu1 }
 0xc12   :  { %v2693_v60 = vadd.f32 %v7656_v52, %v2692_v58  ;;  %v7693_v52 = vld [vmem:[%s11141_s12 + $0x18] sm:$0xff] }
 0xc13   :  { %8629 = vmatmul.mubr.msk.f32.gmra.mrb[36].mxu0 %vm199_vm1, %v9999_v40 }
 0xc14   :  { %v8641_v25 = vpop.f32.mrb[38].mxu1  ;;  %8656 = vmatprep.mubr.msk.f32.mxu1 %vm573_vm2, %v2693_v60  ;;  %8649 = vmatprep.mubr.msk.f32.mxu0 %vm573_vm2, %v2683_v59 }
 0xc15   :  { %v2884_v37 = vadd.f32 %v8641_v25, %v7676_v61  ;;  %v2878_v62 = vpop.f32.mrb[39].mxu1 }
 0xc16   :  { %v2879_v63 = vadd.f32 %v7676_v61, %v2878_v62 }
 0xc18   :  { %v9249_v35 = vpack.c.bf16 %v2884_v37, %v2879_v63  ;;  %v8644_v1 = vpop.f32.mrb[40].mxu1 }
 0xc19   :  { %v2894_v2 = vadd.f32 %v8644_v1, %v7676_v61  ;;  %v2888_v3 = vpop.f32.mrb[41].mxu1 }
 0xc1a   :  { %v2889_v4 = vadd.f32 %v7676_v61, %v2888_v3 }
 0xc1c   :  { %v9253_v5 = vpack.c.bf16 %v2894_v2, %v2889_v4  ;;  %v7698_v4 = vld [vmem:[%s11142_s13] ss:$0 sm:$0xff] }
 0xce2   :  { %v8627_v7 = vpop.f32.mrb[34].mxu0 }
 0xce3   :  { %v2786_v40 = vadd.f32 %v8627_v7, %v7666_v6  ;;  %v2780_v8 = vpop.f32.mrb[35].mxu0 }
 0xce4   :  { %v2781_v15 = vadd.f32 %v7666_v6, %v2780_v8 }
 0xce6   :  { %v9237_v14 = vpack.c.bf16 %v2786_v40, %v2781_v15  ;;  %v8630_v9 = vpop.f32.mrb[36].mxu0 }
 0xce7   :  { %v2796_v13 = vadd.f32 %v8630_v9, %v7666_v6  ;;  %v2790_v12 = vpop.f32.mrb[37].mxu0 }
 0xce8   :  { %v2791_v10 = vadd.f32 %v7666_v6, %v2790_v12  ;;  %9239 = vmatprep.subr.msk.bf16.mxu0 %vm10030_vm3, %v9237_v14 }
 0xce9   :  { %9242 = vmatpush3.bf16.xpose.msk.msra.mxu0 %vm10030_vm3, %v9237_v14 }
 0xcea   :  { %v9243_v11 = vpack.c.bf16 %v2796_v13, %v2791_v10  ;;  %9250 = vmatprep.subr.bf16.mxu0 %v9249_v35 }
 0xcec   :  { %9245 = vmatprep.subr.msk.bf16.mxu1 %vm10030_vm3, %v9243_v11 }
 0xced   :  { %9248 = vmatpush3.bf16.xpose.msk.msra.mxu1 %vm10030_vm3, %v9243_v11 }
 0xcee   :  { %9254 = vmatprep.subr.bf16.mxu1 %v9253_v5 }
 0xcf0   :  { %8650 = vmatmul.mubr.msk.f32.vlgmr.msra.gmra.mrb[38].mxu0 %vm573_vm2, %v2688_v54 }
 0xcf1   :  { %9252 = vmatpush3.bf16.msra.mxu0 %v9249_v35 }
 0xcf2   :  { %8673 = vmatprep.subr.mxu0 %v7693_v52 }
 0xcf4   :  { %8657 = vmatmul.mubr.msk.f32.vlgmr.msra.gmra.mrb[42].mxu1 %vm573_vm2, %v2698_v57 }
 0xcf5   :  { %9256 = vmatpush3.bf16.msra.mxu1 %v9253_v5 }
 0xdc3   :  { %v8651_v16 = vpop.f32.mrb[38].mxu0 }
 0xdc4   :  { %v2975_v17 = vpop.f32.mrb[39].mxu0  ;;  %v3074_v18 = vsel %vm748_vm4, %v8651_v16, -inf }
 0xdc5   :  { %3075 = vmax.xlane.f32.xlu1 %v3074_v18  ;;  %v3071_v19 = vsel %vm748_vm4, %v2975_v17, -inf }
 0xdc6   :  { %3072 = vmax.xlane.f32.xlu0 %v3071_v19 }
 0xdc7   :  { %v8658_v20 = vpop.f32.mrb[42].mxu1 }
 0xdc8   :  { %v3062_v21 = vpop.f32.mrb[43].mxu1  ;;  %v3080_v22 = vsel %vm748_vm4, %v8658_v20, -inf }
 0xdc9   :  { %3081 = vmax.xlane.f32.xlu1 %v3080_v22  ;;  %v3077_v26 = vsel %vm748_vm4, %v3062_v21, -inf }
 0xdca   :  { %3078 = vmax.xlane.f32.xlu0 %v3077_v26 }
 0xe52   :  { %v3076_v27 = vpop.xlane.xlu1 %3075 }
 0xe53   :  { %v3084_v30 = vsub.f32 %v8651_v16, %v3076_v27  ;;  %v3073_v31 = vpop.xlane.xlu0 %3072 }
 0xe54   :  { %v3083_v32 = vsub.f32 %v2975_v17, %v3073_v31 }
 0xe55   :  { %v3089_v33 = vmul.f32 1.442695, %v3084_v30 }
 0xe56   :  { %v3087_v34 = vmul.f32 1.442695, %v3083_v32  ;;  %v3082_v36 = vpop.xlane.xlu1 %3081 }
 0xe57   :  { %9564 = vpow2.f32 %v3089_v33  ;;  %v3086_v38 = vsub.f32 %v8658_v20, %v3082_v36  ;;  %v3079_v39 = vpop.xlane.xlu0 %3078 }
 0xe58   :  { %9566 = vpow2.f32 %v3087_v34  ;;  %v3085_v41 = vsub.f32 %v3062_v21, %v3079_v39 }
 0xe59   :  { %v3093_v42 = vmul.f32 1.442695, %v3086_v38 }
 0xe5a   :  { %v3091_v43 = vmul.f32 1.442695, %v3085_v41 }
 0xe5b   :  { %9568 = vpow2.f32 %v3093_v42 }
 0xe5c   :  { %9570 = vpow2.f32 %v3091_v43  ;;  %v3469_v43 = vld [vmem:[%s11145_s16] sm:$0xff] }
 0xe61   :  { %v9565_v44 = vpop.eup %9564 }
 0xe62   :  { %v9567_v45 = vpop.eup %9566  ;;  %v3098_v46 = vsel %vm748_vm4, %v9565_v44, 0.0 }
 0xe63   :  { %3099 = vadd.xlane.f32.xlu1 %v3098_v46  ;;  %v3095_v47 = vsel %vm748_vm4, %v9567_v45, 0.0  ;;  %v3471_v46 = vld [vmem:[%s11145_s16 + $0x10] sm:$0xff] }
 0xe64   :  { %3096 = vadd.xlane.f32.xlu0 %v3095_v47  ;;  %v3472_v47 = vld [vmem:[%s11145_s16 + $0x18] sm:$0xff] }
 0xe65   :  { %v9569_v48 = vpop.eup %9568 }
 0xe66   :  { %v9571_v49 = vpop.eup %9570  ;;  %v3104_v50 = vsel %vm748_vm4, %v9569_v48, 0.0 }
 0xe67   :  { %3105 = vadd.xlane.f32.xlu1 %v3104_v50  ;;  %v3101_v51 = vsel %vm748_vm4, %v9571_v49, 0.0 }
 0xe68   :  { %3102 = vadd.xlane.f32.xlu0 %v3101_v51 }
 0xef0   :  { %v3100_v53 = vpop.xlane.xlu1 %3099 }
 0xef1   :  { %9572 = vrcp.f32 %v3100_v53  ;;  %v3097_v54 = vpop.xlane.xlu0 %3096 }
 0xef2   :  { %9574 = vrcp.f32 %v3097_v54 }
 0xef4   :  { %v3106_v55 = vpop.xlane.xlu1 %3105 }
 0xef5   :  { %9576 = vrcp.f32 %v3106_v55  ;;  %v3103_v56 = vpop.xlane.xlu0 %3102 }
 0xef6   :  { %9578 = vrcp.f32 %v3103_v56 }
 0xefb   :  { %v9573_v57 = vpop.eup %9572 }
 0xefc   :  { %v9575_v58 = vpop.eup %9574  ;;  %v3112_v60 = vmul.f32 %v9573_v57, %v9565_v44  ;;  %v3470_v44 = vld [vmem:[%s11145_s16 + $0x8] sm:$0xff] }
 0xefd   :  { %v3111_v59 = vmul.f32 %v9575_v58, %v9567_v45  ;;  %v9257_v45 = vpack.c.bf16 %v3470_v44, %v3469_v43 }
 0xeff   :  { %v9577_v61 = vpop.eup %9576  ;;  %8663 = vmatprep.mubr.msk.f32.mxu0 %vm748_vm4, %v3111_v59  ;;  %9258 = vmatprep.subr.bf16.mxu1 %v9257_v45 }
 0xf00   :  { %v9579_v25 = vpop.eup %9578  ;;  %8664 = vmatmul.mubr.msk.f32.vlgmr.msra.gmra.mrb[40].mxu0 %vm748_vm4, %v3112_v60  ;;  %v3114_v62 = vmul.f32 %v9577_v61, %v9569_v48  ;;  %v9261_v48 = vpack.c.bf16 %v3472_v47, %v3471_v46 }
 0xf01   :  { %v3113_v37 = vmul.f32 %v9579_v25, %v9571_v49  ;;  %8674 = vmatpush3.msra.mxu0 %v7693_v52  ;;  %v7699_v25 = vld [vmem:[%s11143_s14] ss:$0 sm:$0xff] }
 0xf03   :  { %8670 = vmatprep.mubr.msk.f32.mxu1 %vm748_vm4, %v3113_v37 }
 0xf04   :  { %8671 = vmatmul.mubr.msk.f32.vlgmr.msra.gmra.mrb[44].mxu1 %vm748_vm4, %v3114_v62 }
 0xf05   :  { %9260 = vmatpush3.bf16.msra.mxu1 %v9257_v45 }
 0xf06   :  { %9262 = vmatprep.subr.bf16.mxu1 %v9261_v48 }
 0xf09   :  { %9264 = vmatpush3.bf16.msra.mxu1 %v9261_v48 }
 0xfd3   :  { %v8665_v63 = vpop.f32.mrb[40].mxu0 }
 0xfd4   :  { %v3187_v35 = vpop.f32.mrb[41].mxu0 }
 0xfd5   :  { %8675 = vmatprep.mubr.msk.f32.mxu0 %vm573_vm2, %v3187_v35  ;;  %v7700_v35 = vld [vmem:[%s11144_s15] ss:$0 sm:$0xff] }
 0xfd6   :  { %8676 = vmatmul.mubr.msk.f32.vlgmr.msra.gmra.mrb[22].mxu0 %vm573_vm2, %v8665_v63 }
 0xfd7   :  { %v8672_v1 = vpop.f32.mrb[44].mxu1 }
 0xfd8   :  { %v3268_v2 = vpop.f32.mrb[45].mxu1 }
 0xfd9   :  { %8678 = vmatprep.mubr.msk.f32.mxu0 %vm573_vm2, %v3268_v2 }
 0xfda   :  { %8679 = vmatmul.mubr.msk.f32.gmra.mrb[24].mxu0 %vm573_vm2, %v8672_v1 }
0x10a9   :  { %v8677_v3 = vpop.f32.mrb[22].mxu0 }
0x10aa   :  { %v3381_v5 = vadd.f32 %v8677_v3, %v9901_v24  ;;  %v3357_v6 = vpop.f32.mrb[23].mxu0 }
0x10ab   :  { %v3380_v7 = vadd.f32 %v3357_v6, %v9899_v23 }
0x10ac   :  { %v10384_v40 = vadd.f32 %v7698_v4, %v3381_v5 }
0x10ad   :  { %v10386_v8 = vadd.f32 %v7698_v4, %v3380_v7  ;;  %v8680_v15 = vpop.f32.mrb[24].mxu0 }
0x10ae   :  { %v3383_v14 = vadd.f32 %v8680_v15, %v9907_v29  ;;  %v3367_v9 = vpop.f32.mrb[25].mxu0  ;;  %v3400_v13 = vsel %vm199_vm1, %v10384_v40, 0.0 }
0x10af   :  { %v3382_v12 = vadd.f32 %v3367_v9, %v9905_v28  ;;  %3401 = vadd.xlane.f32.xlu1 %v3400_v13  ;;  %v3397_v24 = vsel %vm199_vm1, %v10386_v8, 0.0 }
0x10b0   :  { %v10394_v10 = vadd.f32 %v7698_v4, %v3383_v14  ;;  %3398 = vadd.xlane.f32.xlu0 %v3397_v24  ;;  %v3685_v24 = vld [vmem:[%s11147_s18] sm:$0xff] }
0x10b1   :  { %v10396_v23 = vadd.f32 %v7698_v4, %v3382_v12 }
0x10b2   :  { %v3406_v11 = vsel %vm199_vm1, %v10394_v10, 0.0 }
0x10b3   :  { %3407 = vadd.xlane.f32.xlu1 %v3406_v11  ;;  %v3403_v29 = vsel %vm199_vm1, %v10396_v23, 0.0  ;;  %v3686_v11 = vld [vmem:[%s11147_s18 + $0x8] sm:$0xff] }
0x10b4   :  { %3404 = vadd.xlane.f32.xlu0 %v3403_v29  ;;  %v9265_v29 = vpack.c.bf16 %v3686_v11, %v3685_v24 }
0x10b6   :  { %9266 = vmatprep.subr.bf16.mxu0 %v9265_v29 }
0x10b7   :  { %9268 = vmatpush3.bf16.msra.mxu0 %v9265_v29 }
0x113c   :  { %v3402_v16 = vpop.xlane.xlu1 %3401 }
0x113d   :  { %v3410_v17 = vmul.f32 0.03125, %v3402_v16  ;;  %v3399_v28 = vpop.xlane.xlu0 %3398  ;;  %v3687_v16 = vld [vmem:[%s11147_s18 + $0x10] sm:$0xff] }
0x113e   :  { %v3409_v18 = vmul.f32 0.03125, %v3399_v28 }
0x113f   :  { %v3414_v19 = vsub.f32 %v10384_v40, %v3410_v17  ;;  %v3688_v17 = vld [vmem:[%s11147_s18 + $0x18] sm:$0xff] }
0x1140   :  { %v3413_v20 = vsub.f32 %v10386_v8, %v3409_v18  ;;  %v3408_v21 = vpop.xlane.xlu1 %3407  ;;  %v9269_v28 = vpack.c.bf16 %v3688_v17, %v3687_v16  ;;  %v3689_v18 = vld [vmem:[%s11147_s18 + $0x20] sm:$0xff] }
0x1141   :  { %v3412_v22 = vmul.f32 0.03125, %v3408_v21  ;;  %v3405_v26 = vpop.xlane.xlu0 %3404  ;;  %v3418_v27 = vmul.f32 %v3414_v19, %v3414_v19  ;;  %v3691_v21 = vld [vmem:[%s11147_s18 + $0x30] sm:$0xff] }
0x1142   :  { %v3411_v30 = vmul.f32 0.03125, %v3405_v26  ;;  %v3417_v31 = vmul.f32 %v3413_v20, %v3413_v20  ;;  %9270 = vmatprep.subr.bf16.mxu0 %v9269_v28 }
0x1143   :  { %v3416_v32 = vsub.f32 %v10394_v10, %v3412_v22  ;;  %v3424_v33 = vsel %vm199_vm1, %v3418_v27, 0.0  ;;  %9272 = vmatpush3.bf16.msra.mxu0 %v9269_v28  ;;  %v3692_v22 = vld [vmem:[%s11147_s18 + $0x38] sm:$0xff]  ;;  %v7701_v27 = vld [vmem:[%s11146_s17] ss:$0 sm:$0xff] }
0x1144   :  { %v3415_v34 = vsub.f32 %v10396_v23, %v3411_v30  ;;  %3425 = vadd.xlane.f32.xlu1 %v3424_v33  ;;  %v3421_v36 = vsel %vm199_vm1, %v3417_v31, 0.0  ;;  %v9277_v26 = vpack.c.bf16 %v3692_v22, %v3691_v21 }
0x1145   :  { %3422 = vadd.xlane.f32.xlu0 %v3421_v36  ;;  %v3420_v38 = vmul.f32 %v3416_v32, %v3416_v32 }
0x1146   :  { %v3419_v39 = vmul.f32 %v3415_v34, %v3415_v34 }
0x1147   :  { %v3430_v41 = vsel %vm199_vm1, %v3420_v38, 0.0 }
0x1148   :  { %3431 = vadd.xlane.f32.xlu1 %v3430_v41  ;;  %v3427_v42 = vsel %vm199_vm1, %v3419_v39, 0.0 }
0x1149   :  { %3428 = vadd.xlane.f32.xlu0 %v3427_v42 }
0x11d1   :  { %v3426_v49 = vpop.xlane.xlu1 %3425 }
0x11d2   :  { %v3434_v50 = vmul.f32 0.03125, %v3426_v49  ;;  %v3423_v51 = vpop.xlane.xlu0 %3422 }
0x11d3   :  { %v3433_v52 = vmul.f32 0.03125, %v3423_v51 }
0x11d4   :  { %v3438_v53 = vadd.f32 1e-05, %v3434_v50 }
0x11d5   :  { %v3437_v54 = vadd.f32 1e-05, %v3433_v52  ;;  %v3432_v55 = vpop.xlane.xlu1 %3431 }
0x11d6   :  { %9580 = vrsqrt.f32 %v3438_v53  ;;  %v3436_v56 = vmul.f32 0.03125, %v3432_v55  ;;  %v3429_v57 = vpop.xlane.xlu0 %3428 }
0x11d7   :  { %9582 = vrsqrt.f32 %v3437_v54  ;;  %v3435_v58 = vmul.f32 0.03125, %v3429_v57 }
0x11d8   :  { %v3440_v59 = vadd.f32 1e-05, %v3436_v56 }
0x11d9   :  { %v3439_v60 = vadd.f32 1e-05, %v3435_v58 }
0x11da   :  { %9584 = vrsqrt.f32 %v3440_v59 }
0x11db   :  { %9586 = vrsqrt.f32 %v3439_v60 }
0x11e0   :  { %v9581_v61 = vpop.eup %9580 }
0x11e1   :  { %v9583_v37 = vpop.eup %9582  ;;  %v3446_v62 = vmul.f32 %v9581_v61, %v3414_v19  ;;  %v3690_v19 = vld [vmem:[%s11147_s18 + $0x28] sm:$0xff] }
0x11e2   :  { %v3445_v63 = vmul.f32 %v9583_v37, %v3413_v20  ;;  %v9273_v20 = vpack.c.bf16 %v3690_v19, %v3689_v18 }
0x11e3   :  { %v3456_v1 = vmul.f32 %v7699_v25, %v3446_v62 }
0x11e4   :  { %v9585_v2 = vpop.eup %9584  ;;  %v3455_v3 = vmul.f32 %v7699_v25, %v3445_v63  ;;  %9274 = vmatprep.subr.bf16.mxu0 %v9273_v20 }
0x11e5   :  { %v9587_v4 = vpop.eup %9586  ;;  %v3448_v5 = vmul.f32 %v9585_v2, %v3416_v32  ;;  %v3466_v15 = vadd.f32 %v7700_v35, %v3456_v1  ;;  %9276 = vmatpush3.bf16.msra.mxu0 %v9273_v20 }
0x11e6   :  { %v3465_v6 = vadd.f32 %v7700_v35, %v3455_v3  ;;  %v3447_v7 = vmul.f32 %v9587_v4, %v3415_v34  ;;  %9278 = vmatprep.subr.bf16.mxu0 %v9277_v26 }
0x11e7   :  { %v3458_v14 = vmul.f32 %v7699_v25, %v3448_v5 }
0x11e8   :  { %8689 = vmatprep.mubr.msk.f32.mxu1 %vm199_vm1, %v3465_v6  ;;  %v3457_v9 = vmul.f32 %v7699_v25, %v3447_v7 }
0x11e9   :  { %8690 = vmatmul.mubr.msk.f32.vlgmr.msra.gmra.mrb[46].mxu1 %vm199_vm1, %v3466_v15  ;;  %v3468_v12 = vadd.f32 %v7700_v35, %v3458_v14  ;;  %9280 = vmatpush3.bf16.msra.mxu0 %v9277_v26 }
0x11ea   :  { %v3467_v13 = vadd.f32 %v7700_v35, %v3457_v9 }
0x11ec   :  { %8692 = vmatprep.mubr.msk.f32.mxu1 %vm199_vm1, %v3467_v13 }
0x11ed   :  { %8693 = vmatmul.mubr.msk.f32.gmra.mrb[48].mxu1 %vm199_vm1, %v3468_v12 }
0x12bc   :  { %v8691_v30 = vpop.f32.mrb[46].mxu1 }
0x12bd   :  { %v10459_v31 = vadd.f32 %v8691_v30, %v7701_v27  ;;  %v3558_v32 = vpop.f32.mrb[47].mxu1 }
0x12be   :  { %v10461_v33 = vadd.f32 %v7701_v27, %v3558_v32 }
0x12bf   :  { %v10464_v34 = vmul.f32 0.70710677, %v10459_v31 }
0x12c0   :  { %v10467_v36 = vmul.f32 0.70710677, %v10461_v33  ;;  %v8694_v38 = vpop.f32.mrb[48].mxu1 }
0x12c1   :  { %v3586_v39 = vand.u32 2147483647, %v10464_v34  ;;  %v10470_v41 = vadd.f32 %v8694_v38, %v7701_v27  ;;  %v3568_v42 = vpop.f32.mrb[49].mxu1  ;;  %vm3666_vm5 = vcmp.lt.f32.partialorder %v10464_v34, 0.0 }
0x12c2   :  { %v3585_v43 = vand.u32 2147483647, %v10467_v36  ;;  %v10473_v44 = vadd.f32 %v7701_v27, %v3568_v42  ;;  %vm3665_vm6 = vcmp.lt.f32.partialorder %v10467_v36, 0.0 }
0x12c3   :  { %v3590_v45 = vmul.f32 0.3275911, %v3586_v39  ;;  %v10476_v46 = vmul.f32 0.70710677, %v10470_v41  ;;  %v3642_v57 = vsub.f32 0.0, %v3586_v39 }
0x12c4   :  { %v3589_v47 = vmul.f32 0.3275911, %v3585_v43  ;;  %v10479_v48 = vmul.f32 0.70710677, %v10473_v44  ;;  %v3641_v58 = vsub.f32 0.0, %v3585_v43 }
0x12c5   :  { %v3594_v49 = vadd.f32 1.0, %v3590_v45  ;;  %v3588_v50 = vand.u32 2147483647, %v10476_v46  ;;  %v3646_v60 = vmul.f32 %v3642_v57, %v3586_v39  ;;  %vm3668_vm7 = vcmp.lt.f32.partialorder %v10476_v46, 0.0 }
0x12c6   :  { %v3593_v51 = vadd.f32 1.0, %v3589_v47  ;;  %v3587_v52 = vand.u32 2147483647, %v10479_v48  ;;  %v3645_v62 = vmul.f32 %v3641_v58, %v3585_v43  ;;  %vm3667_vm8 = vcmp.lt.f32.partialorder %v10479_v48, 0.0  ;;  %v7710_v48 = vld [vmem:[%s11148_s19] ss:$0 sm:$0xff] }
0x12c7   :  { %9588 = vrcp.f32 %v3594_v49  ;;  %v3592_v53 = vmul.f32 0.3275911, %v3588_v50  ;;  %v3644_v61 = vsub.f32 0.0, %v3588_v50  ;;  %v3651_v3 = vmul.f32 1.442695, %v3646_v60 }
0x12c8   :  { %9590 = vrcp.f32 %v3593_v51  ;;  %v3591_v54 = vmul.f32 0.3275911, %v3587_v52  ;;  %v3643_v63 = vsub.f32 0.0, %v3587_v52  ;;  %v3649_v15 = vmul.f32 1.442695, %v3645_v62 }
0x12c9   :  { %v3596_v55 = vadd.f32 1.0, %v3592_v53  ;;  %v3648_v5 = vmul.f32 %v3644_v61, %v3588_v50 }
0x12ca   :  { %v3595_v56 = vadd.f32 1.0, %v3591_v54  ;;  %v3647_v9 = vmul.f32 %v3643_v63, %v3587_v52 }
0x12cb   :  { %9592 = vrcp.f32 %v3596_v55  ;;  %v3655_v16 = vmul.f32 1.442695, %v3648_v5 }
0x12cc   :  { %9594 = vrcp.f32 %v3595_v56  ;;  %v3653_v19 = vmul.f32 1.442695, %v3647_v9 }
0x12cd   :  { %9596 = vpow2.f32 %v3651_v3 }
0x12ce   :  { %9598 = vpow2.f32 %v3649_v15 }
0x12cf   :  { %9600 = vpow2.f32 %v3655_v16 }
0x12d0   :  { %9602 = vpow2.f32 %v3653_v19 }
0x12d1   :  { %v9589_v59 = vpop.eup %9588 }
0x12d2   :  { %v9591_v25 = vpop.eup %9590  ;;  %v3606_v37 = vmul.f32 1.0614054, %v9589_v59 }
0x12d3   :  { %v3605_v35 = vmul.f32 1.0614054, %v9591_v25 }
0x12d4   :  { %v3610_v1 = vadd.f32 -1.4531521, %v3606_v37 }
0x12d5   :  { %v9593_v2 = vpop.eup %9592  ;;  %v3609_v4 = vadd.f32 -1.4531521, %v3605_v35 }
0x12d6   :  { %v9595_v6 = vpop.eup %9594  ;;  %v3614_v7 = vmul.f32 %v9589_v59, %v3610_v1  ;;  %v3608_v14 = vmul.f32 1.0614054, %v9593_v2 }
0x12d7   :  { %v3613_v13 = vmul.f32 %v9591_v25, %v3609_v4  ;;  %v3607_v12 = vmul.f32 1.0614054, %v9595_v6  ;;  %v9597_v52 = vpop.eup %9596 }
0x12d8   :  { %v3618_v24 = vadd.f32 1.4214138, %v3614_v7  ;;  %v3612_v11 = vadd.f32 -1.4531521, %v3608_v14  ;;  %v9599_v55 = vpop.eup %9598 }
0x12d9   :  { %v3617_v29 = vadd.f32 1.4214138, %v3613_v13  ;;  %v3611_v17 = vadd.f32 -1.4531521, %v3607_v12  ;;  %v9601_v62 = vpop.eup %9600  ;;  %v3577_v13 = vmul.f32 0.5, %v10461_v33  ;;  %v3580_v33 = vmul.f32 0.5, %v10470_v41 }
0x12da   :  { %v3622_v28 = vmul.f32 %v9589_v59, %v3618_v24  ;;  %v3616_v18 = vmul.f32 %v9593_v2, %v3612_v11  ;;  %v9603_v1 = vpop.eup %9602 }
0x12db   :  { %v3621_v20 = vmul.f32 %v9591_v25, %v3617_v29  ;;  %v3615_v21 = vmul.f32 %v9595_v6, %v3611_v17  ;;  %v3579_v17 = vmul.f32 0.5, %v10473_v44 }
0x12dc   :  { %v3626_v22 = vadd.f32 -0.28449672, %v3622_v28  ;;  %v3620_v26 = vadd.f32 1.4214138, %v3616_v18 }
0x12dd   :  { %v3625_v27 = vadd.f32 -0.28449672, %v3621_v20  ;;  %v3619_v30 = vadd.f32 1.4214138, %v3615_v21 }
0x12de   :  { %v3630_v32 = vmul.f32 %v9589_v59, %v3626_v22  ;;  %v3624_v38 = vmul.f32 %v9593_v2, %v3620_v26 }
0x12df   :  { %v3629_v39 = vmul.f32 %v9591_v25, %v3625_v27  ;;  %v3623_v42 = vmul.f32 %v9595_v6, %v3619_v30 }
0x12e0   :  { %v3634_v43 = vadd.f32 0.2548296, %v3630_v32  ;;  %v3628_v45 = vadd.f32 -0.28449672, %v3624_v38 }
0x12e1   :  { %v3633_v47 = vadd.f32 0.2548296, %v3629_v39  ;;  %v3627_v49 = vadd.f32 -0.28449672, %v3623_v42 }
0x12e2   :  { %v3638_v50 = vmul.f32 %v9589_v59, %v3634_v43  ;;  %v3632_v51 = vmul.f32 %v9593_v2, %v3628_v45 }
0x12e3   :  { %v3637_v53 = vmul.f32 %v9591_v25, %v3633_v47  ;;  %v3631_v54 = vmul.f32 %v9595_v6, %v3627_v49 }
0x12e4   :  { %v3658_v56 = vmul.f32 %v9597_v52, %v3638_v50  ;;  %v3636_v57 = vadd.f32 0.2548296, %v3632_v51 }
0x12e5   :  { %v3657_v58 = vmul.f32 %v9599_v55, %v3637_v53  ;;  %v3635_v60 = vadd.f32 0.2548296, %v3631_v54 }
0x12e6   :  { %v3662_v61 = vsub.f32 1.0, %v3658_v56  ;;  %v3640_v37 = vmul.f32 %v9593_v2, %v3636_v57 }
0x12e7   :  { %v3661_v63 = vsub.f32 1.0, %v3657_v58  ;;  %v3639_v35 = vmul.f32 %v9595_v6, %v3635_v60  ;;  %v3578_v6 = vmul.f32 0.5, %v10459_v31 }
0x12e8   :  { %v3670_v3 = vsub.f32 0.0, %v3662_v61  ;;  %v3660_v4 = vmul.f32 %v9601_v62, %v3640_v37 }
0x12e9   :  { %v3669_v59 = vsub.f32 0.0, %v3661_v63  ;;  %v3659_v5 = vmul.f32 %v9603_v1, %v3639_v35  ;;  %v7715_v35 = vld [vmem:[%s11169_s1 + $0x80] sm:$0xff]  ;;  %v7716_v1 = vld [vmem:[%s11169_s1 + $0x88] sm:$0xff] }
0x12ea   :  { %v3674_v7 = vsel %vm3666_vm5, %v3670_v3, %v3662_v61  ;;  %v3664_v25 = vsub.f32 1.0, %v3660_v4  ;;  %v7735_v3 = vld [vmem:[%s11139_s10 + $0x80] sm:$0xff]  ;;  %v9281_v4 = vpack.c.bf16 %v7716_v1, %v7715_v35 }
0x12eb   :  { %v3678_v15 = vadd.f32 1.0, %v3674_v7  ;;  %v3673_v14 = vsel %vm3665_vm6, %v3669_v59, %v3661_v63  ;;  %v3663_v9 = vsub.f32 1.0, %v3659_v5  ;;  %v7736_v59 = vld [vmem:[%s11139_s10 + $0x88] sm:$0xff]  ;;  %v7717_v7 = vld [vmem:[%s11169_s1 + $0x90] sm:$0xff] }
0x12ec   :  { %v3677_v2 = vadd.f32 1.0, %v3673_v14  ;;  %v3672_v12 = vsub.f32 0.0, %v3664_v25  ;;  %v9297_v5 = vpack.c.bf16 %v7736_v59, %v7735_v3  ;;  %9282 = vmatprep.subr.bf16.mxu1 %v9281_v4 }
0x12ed   :  { %v3671_v24 = vsub.f32 0.0, %v3663_v9  ;;  %v3682_v29 = vmul.f32 %v3678_v15, %v3578_v6  ;;  %9284 = vmatpush3.bf16.msra.mxu1 %v9281_v4  ;;  %v7737_v15 = vld [vmem:[%s11139_s10 + $0x90] sm:$0xff] }
0x12ee   :  { %v3681_v11 = vmul.f32 %v3677_v2, %v3577_v13  ;;  %v3676_v34 = vsel %vm3668_vm7, %v3672_v12, %v3664_v25  ;;  %9298 = vmatprep.subr.bf16.mxu0 %v9297_v5  ;;  %v7718_v25 = vld [vmem:[%s11169_s1 + $0x98] sm:$0xff]  ;;  %v7725_v2 = vld [vmem:[%s11137_s8 + $0x80] sm:$0xff]  ;;  %v7726_v12 = vld [vmem:[%s11137_s8 + $0x88] sm:$0xff] }
0x12ef   :  { %v3680_v16 = vadd.f32 1.0, %v3676_v34  ;;  %v3675_v36 = vsel %vm3667_vm8, %v3671_v24, %v3663_v9  ;;  %v9285_v14 = vpack.c.bf16 %v7718_v25, %v7717_v7  ;;  %v7738_v9 = vld [vmem:[%s11139_s10 + $0x98] sm:$0xff]  ;;  %v9289_v6 = vpack.c.bf16 %v7726_v12, %v7725_v2  ;;  %v7730_v7 = vld [vmem:[%s11138_s9 + $0x4] ss:$0 sm:$0xff] }
0x12f0   :  { %v3679_v28 = vadd.f32 1.0, %v3675_v36  ;;  %8711 = vmatprep.mubr.msk.f32.mxu0 %vm84_vm0, %v3681_v11  ;;  %v9301_v13 = vpack.c.bf16 %v7738_v9, %v7737_v15 }
0x12f1   :  { %8712 = vmatmul.mubr.msk.f32.vlgmr.msra.gmra.mrb[42].mxu0 %vm84_vm0, %v3682_v29  ;;  %v3684_v18 = vmul.f32 %v3680_v16, %v3580_v33  ;;  %9286 = vmatprep.subr.bf16.mxu1 %v9285_v14 }
0x12f2   :  { %v3683_v31 = vmul.f32 %v3679_v28, %v3579_v17  ;;  %9300 = vmatpush3.bf16.msra.mxu0 %v9297_v5  ;;  %9288 = vmatpush3.bf16.msra.mxu1 %v9285_v14 }
0x12f3   :  { %9302 = vmatprep.subr.bf16.mxu0 %v9301_v13  ;;  %9290 = vmatprep.subr.bf16.mxu1 %v9289_v6 }
0x12f4   :  { %8714 = vmatprep.mubr.msk.f32.mxu0 %vm84_vm0, %v3683_v31 }
0x12f5   :  { %8715 = vmatmul.mubr.msk.f32.gmra.mrb[44].mxu0 %vm84_vm0, %v3684_v18 }
0x12f6   :  { %9304 = vmatpush3.bf16.msra.mxu0 %v9301_v13 }
0x13c4   :  { %v8713_v46 = vpop.f32.mrb[42].mxu0 }
0x13c5   :  { %v3791_v44 = vadd.f32 %v8713_v46, %v10384_v40  ;;  %v3771_v19 = vpop.f32.mrb[43].mxu0 }
0x13c6   :  { %v3790_v20 = vadd.f32 %v3771_v19, %v10386_v8 }
0x13c7   :  { %v10500_v21 = vadd.f32 %v7710_v48, %v3791_v44  ;;  %v7713_v44 = vld [vmem:[%s11170_s2 + $0x1] ss:$0 sm:$0xff] }
0x13c8   :  { %v10502_v41 = vadd.f32 %v7710_v48, %v3790_v20  ;;  %v8716_v22 = vpop.f32.mrb[44].mxu0 }
0x13c9   :  { %v3793_v26 = vadd.f32 %v8716_v22, %v10394_v10  ;;  %v3781_v27 = vpop.f32.mrb[45].mxu0  ;;  %v3812_v30 = vsel %vm199_vm1, %v10500_v21, 0.0 }
0x13ca   :  { %v3792_v32 = vadd.f32 %v3781_v27, %v10396_v23  ;;  %3813 = vadd.xlane.f32.xlu1 %v3812_v30  ;;  %v3809_v40 = vsel %vm199_vm1, %v10502_v41, 0.0 }
0x13cb   :  { %v10510_v38 = vadd.f32 %v7710_v48, %v3793_v26  ;;  %3810 = vadd.xlane.f32.xlu0 %v3809_v40  ;;  %v7714_v26 = vld [vmem:[%s11171_s30 + $0x1] ss:$0 sm:$0xff]  ;;  %v7727_v40 = vld [vmem:[%s11137_s8 + $0x90] sm:$0xff] }
0x13cc   :  { %v10512_v8 = vadd.f32 %v7710_v48, %v3792_v32 }
0x13cd   :  { %v3818_v39 = vsel %vm199_vm1, %v10510_v38, 0.0 }
0x13ce   :  { %3819 = vadd.xlane.f32.xlu1 %v3818_v39  ;;  %v3815_v10 = vsel %vm199_vm1, %v10512_v8, 0.0  ;;  %v7728_v39 = vld [vmem:[%s11137_s8 + $0x98] sm:$0xff] }
0x13cf   :  { %3816 = vadd.xlane.f32.xlu0 %v3815_v10 }
0x1457   :  { %v3814_v42 = vpop.xlane.xlu1 %3813 }
0x1458   :  { %v3822_v43 = vmul.f32 0.03125, %v3814_v42  ;;  %v3811_v23 = vpop.xlane.xlu0 %3810 }
0x1459   :  { %v3821_v45 = vmul.f32 0.03125, %v3811_v23 }
0x145a   :  { %v10519_v47 = vsub.f32 %v10500_v21, %v3822_v43 }
0x145b   :  { %v10522_v49 = vsub.f32 %v10502_v41, %v3821_v45  ;;  %v3820_v50 = vpop.xlane.xlu1 %3819 }
0x145c   :  { %v3824_v51 = vmul.f32 0.03125, %v3820_v50  ;;  %v3817_v52 = vpop.xlane.xlu0 %3816  ;;  %v3830_v53 = vmul.f32 %v10519_v47, %v10519_v47 }
0x145d   :  { %v3823_v54 = vmul.f32 0.03125, %v3817_v52  ;;  %v3829_v55 = vmul.f32 %v10522_v49, %v10522_v49 }
0x145e   :  { %v10529_v56 = vsub.f32 %v10510_v38, %v3824_v51  ;;  %v3836_v57 = vsel %vm199_vm1, %v3830_v53, 0.0  ;;  %v7740_v53 = vld [vmem:[%s11140_s11 + $0x4] ss:$0 sm:$0xff] }
0x145f   :  { %v10533_v58 = vsub.f32 %v10512_v8, %v3823_v54  ;;  %3837 = vadd.xlane.f32.xlu1 %v3836_v57  ;;  %v3833_v60 = vsel %vm199_vm1, %v3829_v55, 0.0  ;;  %v7720_v54 = vld [vmem:[%s11136_s7 + $0x4] ss:$0 sm:$0xff] }
0x1460   :  { %3834 = vadd.xlane.f32.xlu0 %v3833_v60  ;;  %v3832_v61 = vmul.f32 %v10529_v56, %v10529_v56 }
0x1461   :  { %v3831_v37 = vmul.f32 %v10533_v58, %v10533_v58 }
0x1462   :  { %v3842_v62 = vsel %vm199_vm1, %v3832_v61, 0.0 }
0x1463   :  { %3843 = vadd.xlane.f32.xlu1 %v3842_v62  ;;  %v3839_v63 = vsel %vm199_vm1, %v3831_v37, 0.0 }
0x1464   :  { %3840 = vadd.xlane.f32.xlu0 %v3839_v63 }
0x14ec   :  { %v3838_v24 = vpop.xlane.xlu1 %3837 }
0x14ed   :  { %v3846_v11 = vmul.f32 0.03125, %v3838_v24  ;;  %v3835_v34 = vpop.xlane.xlu0 %3834 }
0x14ee   :  { %v3845_v29 = vmul.f32 0.03125, %v3835_v34 }
0x14ef   :  { %v3850_v16 = vadd.f32 1e-05, %v3846_v11 }
0x14f0   :  { %v3849_v36 = vadd.f32 1e-05, %v3845_v29  ;;  %v3844_v17 = vpop.xlane.xlu1 %3843 }
0x14f1   :  { %9604 = vrsqrt.f32 %v3850_v16  ;;  %v3848_v28 = vmul.f32 0.03125, %v3844_v17  ;;  %v3841_v33 = vpop.xlane.xlu0 %3840 }
0x14f2   :  { %9606 = vrsqrt.f32 %v3849_v36  ;;  %v3847_v31 = vmul.f32 0.03125, %v3841_v33 }
0x14f3   :  { %v3852_v18 = vadd.f32 1e-05, %v3848_v28 }
0x14f4   :  { %v3851_v46 = vadd.f32 1e-05, %v3847_v31 }
0x14f5   :  { %9608 = vrsqrt.f32 %v3852_v18 }
0x14f6   :  { %9610 = vrsqrt.f32 %v3851_v46 }
0x14fb   :  { %v9605_v48 = vpop.eup %9604 }
0x14fc   :  { %v9607_v19 = vpop.eup %9606  ;;  %v3858_v20 = vmul.f32 %v9605_v48, %v10519_v47 }
0x14fd   :  { %v3857_v22 = vmul.f32 %v9607_v19, %v10522_v49  ;;  %v9293_v49 = vpack.c.bf16 %v7728_v39, %v7727_v40 }
0x14fe   :  { %v3868_v27 = vmul.f32 %v7713_v44, %v3858_v20 }
0x14ff   :  { %v9609_v30 = vpop.eup %9608  ;;  %v3867_v32 = vmul.f32 %v7713_v44, %v3857_v22 }
0x1500   :  { %v9611_v10 = vpop.eup %9610  ;;  %v3860_v42 = vmul.f32 %v9609_v30, %v10529_v56  ;;  %v10590_v45 = vadd.f32 %v7714_v26, %v3868_v27 }
0x1501   :  { %v10587_v43 = vadd.f32 %v7714_v26, %v3867_v32  ;;  %v3859_v23 = vmul.f32 %v9611_v10, %v10533_v58 }
0x1502   :  { %v3870_v47 = vmul.f32 %v7713_v44, %v3860_v42 }
0x1503   :  { %v3869_v50 = vmul.f32 %v7713_v44, %v3859_v23  ;;  %8725 = vmatprep.mubr.msk.f32.mxu1 %vm199_vm1, %v10587_v43  ;;  %8753 = vmatprep.mubr.msk.f32.mxu0 %vm199_vm1, %v10587_v43 }
0x1504   :  { %8726 = vmatmul.mubr.msk.f32.vlgmr.msra.gmra.mrb[50].mxu1 %vm199_vm1, %v10590_v45  ;;  %8754 = vmatmul.mubr.msk.f32.vlgmr.msra.gmra.mrb[46].mxu0 %vm199_vm1, %v10590_v45  ;;  %v10602_v52 = vadd.f32 %v7714_v26, %v3870_v47 }
0x1505   :  { %v10600_v51 = vadd.f32 %v7714_v26, %v3869_v50  ;;  %9292 = vmatpush3.bf16.msra.mxu1 %v9289_v6 }
0x1506   :  { %9294 = vmatprep.subr.bf16.mxu1 %v9293_v49 }
0x1507   :  { %8728 = vmatprep.mubr.msk.f32.mxu1 %vm199_vm1, %v10600_v51  ;;  %8756 = vmatprep.mubr.msk.f32.mxu0 %vm199_vm1, %v10600_v51 }
0x1508   :  { %8729 = vmatmul.mubr.msk.f32.gmra.mrb[52].mxu1 %vm199_vm1, %v10602_v52  ;;  %8757 = vmatmul.mubr.msk.f32.gmra.mrb[48].mxu0 %vm199_vm1, %v10602_v52 }
0x1509   :  { %9296 = vmatpush3.bf16.msra.mxu1 %v9293_v49  ;;  %8739 = vmatprep.mubr.msk.f32.mxu1 %vm199_vm1, %v10587_v43 }
0x150c   :  { %8740 = vmatmul.mubr.msk.f32.vlgmr.msra.gmra.mrb[54].mxu1 %vm199_vm1, %v10590_v45 }
0x150d   :  { %8742 = vmatprep.mubr.msk.f32.mxu1 %vm199_vm1, %v10600_v51 }
0x1510   :  { %8743 = vmatmul.mubr.msk.f32.gmra.mrb[56].mxu1 %vm199_vm1, %v10602_v52 }
0x15d7   :  { %v8727_v55 = vpop.f32.mrb[50].mxu1  ;;  %v8755_v56 = vpop.f32.mrb[46].mxu0 }
0x15d8   :  { %v4174_v57 = vadd.f32 %v8755_v56, %v7740_v53  ;;  %v3972_v58 = vpop.f32.mrb[51].mxu1  ;;  %v4168_v60 = vpop.f32.mrb[47].mxu0  ;;  %v3978_v29 = vadd.f32 %v8727_v55, %v7720_v54 }
0x15d9   :  { %v3973_v61 = vadd.f32 %v7720_v54, %v3972_v58  ;;  %v4169_v37 = vadd.f32 %v7740_v53, %v4168_v60  ;;  %v7769_v58 = vld [vmem:[%s11137_s8 + $0xa8] sm:$0xff] }
0x15db   :  { %v9317_v62 = vpack.c.bf16 %v4174_v57, %v4169_v37  ;;  %v8730_v63 = vpop.f32.mrb[52].mxu1  ;;  %v8758_v35 = vpop.f32.mrb[48].mxu0  ;;  %8763 = vmatprep.mubr.msk.f32.mxu1 %vm573_vm2, %v3973_v61  ;;  %v7768_v57 = vld [vmem:[%s11137_s8 + $0xa0] sm:$0xff]  ;;  %v7759_v37 = vld [vmem:[%s11169_s1 + $0xa8] sm:$0xff] }
0x15dc   :  { %v4184_v1 = vadd.f32 %v8758_v35, %v7740_v53  ;;  %v3982_v3 = vpop.f32.mrb[53].mxu1  ;;  %v4178_v4 = vpop.f32.mrb[49].mxu0  ;;  %v3988_v16 = vadd.f32 %v8730_v63, %v7720_v54  ;;  %v9333_v60 = vpack.c.bf16 %v7769_v58, %v7768_v57  ;;  %v7758_v61 = vld [vmem:[%s11169_s1 + $0xa0] sm:$0xff] }
0x15dd   :  { %v3983_v59 = vadd.f32 %v7720_v54, %v3982_v3  ;;  %v4179_v5 = vadd.f32 %v7740_v53, %v4178_v4 }
0x15df   :  { %v9321_v25 = vpack.c.bf16 %v4184_v1, %v4179_v5  ;;  %v8741_v15 = vpop.f32.mrb[54].mxu1  ;;  %8770 = vmatprep.mubr.msk.f32.mxu0 %vm573_vm2, %v3983_v59  ;;  %v7770_v59 = vld [vmem:[%s11137_s8 + $0xb0] sm:$0xff]  ;;  %v7771_v5 = vld [vmem:[%s11137_s8 + $0xb8] sm:$0xff] }
0x15e0   :  { %v4076_v14 = vadd.f32 %v8741_v15, %v7730_v7  ;;  %v4070_v9 = vpop.f32.mrb[55].mxu1 }
0x15e1   :  { %v4071_v13 = vadd.f32 %v7730_v7, %v4070_v9 }
0x15e3   :  { %v9305_v2 = vpack.c.bf16 %v4076_v14, %v4071_v13  ;;  %v8744_v12 = vpop.f32.mrb[56].mxu1  ;;  %v9337_v14 = vpack.c.bf16 %v7771_v5, %v7770_v59  ;;  %v7760_v13 = vld [vmem:[%s11169_s1 + $0xb0] sm:$0xff] }
0x15e4   :  { %v4086_v6 = vadd.f32 %v8744_v12, %v7730_v7  ;;  %v4080_v24 = vpop.f32.mrb[57].mxu1 }
0x15e5   :  { %v4081_v11 = vadd.f32 %v7730_v7, %v4080_v24  ;;  %9307 = vmatprep.subr.msk.bf16.mxu1 %vm10030_vm3, %v9305_v2 }
0x15e6   :  { %9310 = vmatpush3.bf16.xpose.msk.msra.mxu1 %vm10030_vm3, %v9305_v2  ;;  %v7761_v2 = vld [vmem:[%s11169_s1 + $0xb8] sm:$0xff] }
0x15e7   :  { %v9311_v34 = vpack.c.bf16 %v4086_v6, %v4081_v11  ;;  %9318 = vmatprep.subr.bf16.mxu1 %v9317_v62  ;;  %v9329_v11 = vpack.c.bf16 %v7761_v2, %v7760_v13 }
0x15e9   :  { %9313 = vmatprep.subr.msk.bf16.mxu0 %vm10030_vm3, %v9311_v34 }
0x15ea   :  { %9316 = vmatpush3.bf16.xpose.msk.msra.mxu0 %vm10030_vm3, %v9311_v34  ;;  %v7778_v34 = vld [vmem:[%s11139_s10 + $0xa0] sm:$0xff] }
0x15eb   :  { %9322 = vmatprep.subr.bf16.mxu0 %v9321_v25 }
0x15ed   :  { %8764 = vmatmul.mubr.msk.f32.vlgmr.msra.gmra.mrb[58].mxu1 %vm573_vm2, %v3978_v29  ;;  %v7779_v29 = vld [vmem:[%s11139_s10 + $0xa8] sm:$0xff] }
0x15ee   :  { %9320 = vmatpush3.bf16.msra.mxu1 %v9317_v62  ;;  %v9325_v62 = vpack.c.bf16 %v7759_v37, %v7758_v61 }
0x15f0   :  { %9326 = vmatprep.subr.bf16.mxu1 %v9325_v62 }
0x15f1   :  { %8771 = vmatmul.mubr.msk.f32.vlgmr.msra.gmra.mrb[50].mxu0 %vm573_vm2, %v3988_v16  ;;  %v9341_v16 = vpack.c.bf16 %v7779_v29, %v7778_v34 }
0x15f2   :  { %9324 = vmatpush3.bf16.msra.mxu0 %v9321_v25 }
0x15f3   :  { %9334 = vmatprep.subr.bf16.mxu0 %v9333_v60 }
0x16c0   :  { %v8765_v36 = vpop.f32.mrb[58].mxu1 }
0x16c1   :  { %v4265_v17 = vpop.f32.mrb[59].mxu1  ;;  %v4364_v46 = vsel %vm748_vm4, %v8765_v36, -inf }
0x16c2   :  { %v4361_v48 = vsel %vm748_vm4, %v4265_v17, -inf }
0x16c4   :  { %v8772_v28 = vpop.f32.mrb[50].mxu0 }
0x16c5   :  { %v4352_v33 = vpop.f32.mrb[51].mxu0  ;;  %v4370_v31 = vsel %vm748_vm4, %v8772_v28, -inf }
0x16c6   :  { %4371 = vmax.xlane.f32.xlu1 %v4370_v31  ;;  %v4367_v18 = vsel %vm748_vm4, %v4352_v33, -inf }
0x16c7   :  { %4368 = vmax.xlane.f32.xlu0 %v4367_v18 }
0x16ca   :  { %4365 = vmax.xlane.f32.xlu1 %v4364_v46 }
0x16cb   :  { %4362 = vmax.xlane.f32.xlu0 %v4361_v48  ;;  %v7773_v48 = vld [vmem:[%s11138_s9 + $0x5] ss:$0 sm:$0xff] }
0x1753   :  { %v4372_v44 = vpop.xlane.xlu1 %4371 }
0x1754   :  { %v4376_v19 = vsub.f32 %v8772_v28, %v4372_v44  ;;  %v4369_v20 = vpop.xlane.xlu0 %4368 }
0x1755   :  { %v4375_v22 = vsub.f32 %v4352_v33, %v4369_v20 }
0x1756   :  { %v4383_v26 = vmul.f32 1.442695, %v4376_v19 }
0x1757   :  { %v4381_v27 = vmul.f32 1.442695, %v4375_v22  ;;  %v4366_v30 = vpop.xlane.xlu1 %4365 }
0x1758   :  { %9612 = vpow2.f32 %v4383_v26  ;;  %v4374_v32 = vsub.f32 %v8765_v36, %v4366_v30  ;;  %v4363_v40 = vpop.xlane.xlu0 %4362  ;;  %v7780_v36 = vld [vmem:[%s11139_s10 + $0xb0] sm:$0xff]  ;;  %v7763_v26 = vld [vmem:[%s11136_s7 + $0x5] ss:$0 sm:$0xff] }
0x1759   :  { %9614 = vpow2.f32 %v4381_v27  ;;  %v4373_v39 = vsub.f32 %v4265_v17, %v4363_v40  ;;  %v7781_v17 = vld [vmem:[%s11139_s10 + $0xb8] sm:$0xff] }
0x175a   :  { %v4379_v10 = vmul.f32 1.442695, %v4374_v32  ;;  %v9345_v28 = vpack.c.bf16 %v7781_v17, %v7780_v36 }
0x175b   :  { %v4377_v42 = vmul.f32 1.442695, %v4373_v39 }
0x175c   :  { %9616 = vpow2.f32 %v4379_v10 }
0x175d   :  { %9618 = vpow2.f32 %v4377_v42 }
0x1762   :  { %v9613_v23 = vpop.eup %9612 }
0x1763   :  { %v9615_v47 = vpop.eup %9614  ;;  %v4394_v49 = vsel %vm748_vm4, %v9613_v23, 0.0 }
0x1764   :  { %4395 = vadd.xlane.f32.xlu1 %v4394_v49  ;;  %v4391_v50 = vsel %vm748_vm4, %v9615_v47, 0.0 }
0x1765   :  { %4392 = vadd.xlane.f32.xlu0 %v4391_v50 }
0x1766   :  { %v9617_v53 = vpop.eup %9616 }
0x1767   :  { %v9619_v54 = vpop.eup %9618  ;;  %v4388_v55 = vsel %vm748_vm4, %v9617_v53, 0.0 }
0x1768   :  { %4389 = vadd.xlane.f32.xlu1 %v4388_v55  ;;  %v4385_v56 = vsel %vm748_vm4, %v9619_v54, 0.0 }
0x1769   :  { %4386 = vadd.xlane.f32.xlu0 %v4385_v56 }
0x17f1   :  { %v4396_v63 = vpop.xlane.xlu1 %4395 }
0x17f2   :  { %9620 = vrcp.f32 %v4396_v63  ;;  %v4393_v35 = vpop.xlane.xlu0 %4392 }
0x17f3   :  { %9622 = vrcp.f32 %v4393_v35 }
0x17f5   :  { %v4390_v1 = vpop.xlane.xlu1 %4389 }
0x17f6   :  { %9624 = vrcp.f32 %v4390_v1  ;;  %v4387_v3 = vpop.xlane.xlu0 %4386 }
0x17f7   :  { %9626 = vrcp.f32 %v4387_v3 }
0x17fc   :  { %v9621_v4 = vpop.eup %9620 }
0x17fd   :  { %v9623_v7 = vpop.eup %9622  ;;  %v4404_v15 = vmul.f32 %v9621_v4, %v9613_v23 }
0x17fe   :  { %v4403_v25 = vmul.f32 %v9623_v7, %v9615_v47 }
0x1800   :  { %v9625_v9 = vpop.eup %9624  ;;  %8784 = vmatprep.mubr.msk.f32.mxu0 %vm748_vm4, %v4403_v25 }
0x1801   :  { %v9627_v12 = vpop.eup %9626  ;;  %8785 = vmatmul.mubr.msk.f32.vlgmr.msra.gmra.mrb[52].mxu0 %vm748_vm4, %v4404_v15  ;;  %v4402_v24 = vmul.f32 %v9625_v9, %v9617_v53 }
0x1802   :  { %9336 = vmatpush3.bf16.msra.mxu0 %v9333_v60  ;;  %8809 = vmatprep.mubr.msk.f32.mxu0 %vm199_vm1, %v10587_v43  ;;  %v4401_v6 = vmul.f32 %v9627_v12, %v9619_v54  ;;  %v7783_v54 = vld [vmem:[%s11140_s11 + $0x5] ss:$0 sm:$0xff] }
0x1803   :  { %9338 = vmatprep.subr.bf16.mxu0 %v9337_v14 }
0x1804   :  { %8777 = vmatprep.mubr.msk.f32.mxu1 %vm748_vm4, %v4401_v6 }
0x1805   :  { %8778 = vmatmul.mubr.msk.f32.vlgmr.msra.gmra.mrb[60].mxu1 %vm748_vm4, %v4402_v24 }
0x1806   :  { %9328 = vmatpush3.bf16.msra.mxu1 %v9325_v62  ;;  %9340 = vmatpush3.bf16.msra.mxu0 %v9337_v14 }
0x1807   :  { %8795 = vmatprep.mubr.msk.f32.mxu1 %vm199_vm1, %v10587_v43  ;;  %9330 = vmatprep.subr.bf16.mxu1 %v9329_v11 }
0x1809   :  { %8810 = vmatmul.mubr.msk.f32.vlgmr.msra.gmra.mrb[54].mxu0 %vm199_vm1, %v10590_v45 }
0x180a   :  { %9332 = vmatpush3.bf16.msra.mxu1 %v9329_v11  ;;  %8812 = vmatprep.mubr.msk.f32.mxu0 %vm199_vm1, %v10600_v51 }
0x180b   :  { %9342 = vmatprep.subr.bf16.mxu1 %v9341_v16 }
0x180d   :  { %8796 = vmatmul.mubr.msk.f32.vlgmr.msra.gmra.mrb[62].mxu1 %vm199_vm1, %v10590_v45  ;;  %8813 = vmatmul.mubr.msk.f32.gmra.mrb[56].mxu0 %vm199_vm1, %v10602_v52 }
0x180e   :  { %8798 = vmatprep.mubr.msk.f32.mxu1 %vm199_vm1, %v10600_v51  ;;  %9344 = vmatpush3.bf16.msra.mxu1 %v9341_v16 }
0x180f   :  { %9346 = vmatprep.subr.bf16.mxu1 %v9345_v28 }
0x1811   :  { %8799 = vmatmul.mubr.msk.f32.gmra.mrb[64].mxu1 %vm199_vm1, %v10602_v52 }
0x1812   :  { %9348 = vmatpush3.bf16.msra.mxu1 %v9345_v28  ;;  %8823 = vmatprep.mubr.msk.f32.mxu1 %vm199_vm1, %v10587_v43 }
0x1815   :  { %8824 = vmatmul.mubr.msk.f32.vlgmr.msra.gmra.mrb[66].mxu1 %vm199_vm1, %v10590_v45 }
0x1816   :  { %8826 = vmatprep.mubr.msk.f32.mxu1 %vm199_vm1, %v10600_v51 }
0x1819   :  { %8827 = vmatmul.mubr.msk.f32.gmra.mrb[68].mxu1 %vm199_vm1, %v10602_v52 }
0x18d4   :  { %v10713_v33 = vpop.f32.mrb[52].mxu0 }
0x18d5   :  { %v10715_v31 = vpop.f32.mrb[53].mxu0 }
0x18d8   :  { %v10717_v18 = vpop.f32.mrb[60].mxu1 }
0x18d9   :  { %v10719_v46 = vpop.f32.mrb[61].mxu1 }
0x18dc   :  { %v8811_v44 = vpop.f32.mrb[54].mxu0 }
0x18dd   :  { %v4752_v19 = vadd.f32 %v8811_v44, %v7773_v48  ;;  %v4746_v20 = vpop.f32.mrb[55].mxu0 }
0x18de   :  { %v4747_v22 = vadd.f32 %v7773_v48, %v4746_v20 }
0x18e0   :  { %v9349_v27 = vpack.c.bf16 %v4752_v19, %v4747_v22  ;;  %v8797_v30 = vpop.f32.mrb[62].mxu1  ;;  %v8814_v32 = vpop.f32.mrb[56].mxu0 }
0x18e1   :  { %v4762_v40 = vadd.f32 %v8814_v32, %v7773_v48  ;;  %v4648_v39 = vpop.f32.mrb[63].mxu1  ;;  %v4756_v10 = vpop.f32.mrb[57].mxu0  ;;  %v4654_v55 = vadd.f32 %v8797_v30, %v7763_v26 }
0x18e2   :  { %v4649_v42 = vadd.f32 %v7763_v26, %v4648_v39  ;;  %v4757_v23 = vadd.f32 %v7773_v48, %v4756_v10  ;;  %9351 = vmatprep.subr.msk.bf16.mxu0 %vm10030_vm3, %v9349_v27 }
0x18e3   :  { %9354 = vmatpush3.bf16.xpose.msk.msra.mxu0 %vm10030_vm3, %v9349_v27 }
0x18e4   :  { %v9355_v47 = vpack.c.bf16 %v4762_v40, %v4757_v23  ;;  %v8800_v49 = vpop.f32.mrb[64].mxu1  ;;  %8833 = vmatprep.mubr.msk.f32.mxu0 %vm573_vm2, %v4649_v42  ;;  %v7809_v23 = vld [vmem:[%s11169_s1 + $0xc0] sm:$0xff] }
0x18e5   :  { %v4658_v50 = vpop.f32.mrb[65].mxu1  ;;  %v4664_v61 = vadd.f32 %v8800_v49, %v7763_v26 }
0x18e6   :  { %v4659_v53 = vadd.f32 %v7763_v26, %v4658_v50  ;;  %9357 = vmatprep.subr.msk.bf16.mxu1 %vm10030_vm3, %v9355_v47 }
0x18e7   :  { %9360 = vmatpush3.bf16.xpose.msk.msra.mxu1 %vm10030_vm3, %v9355_v47  ;;  %v7810_v47 = vld [vmem:[%s11169_s1 + $0xc8] sm:$0xff] }
0x18e8   :  { %v8825_v56 = vpop.f32.mrb[66].mxu1  ;;  %8840 = vmatprep.mubr.msk.f32.mxu1 %vm573_vm2, %v4659_v53 }
0x18e9   :  { %v4850_v57 = vadd.f32 %v8825_v56, %v7783_v54  ;;  %v4844_v58 = vpop.f32.mrb[67].mxu1  ;;  %v7811_v56 = vld [vmem:[%s11169_s1 + $0xd0] sm:$0xff] }
0x18ea   :  { %v4845_v60 = vadd.f32 %v7783_v54, %v4844_v58  ;;  %8834 = vmatmul.mubr.msk.f32.vlgmr.msra.gmra.mrb[58].mxu0 %vm573_vm2, %v4654_v55 }
0x18ec   :  { %v9361_v37 = vpack.c.bf16 %v4850_v57, %v4845_v60  ;;  %v8828_v62 = vpop.f32.mrb[68].mxu1  ;;  %v7812_v57 = vld [vmem:[%s11169_s1 + $0xd8] sm:$0xff] }
0x18ed   :  { %v4860_v63 = vadd.f32 %v8828_v62, %v7783_v54  ;;  %v4854_v35 = vpop.f32.mrb[69].mxu1  ;;  %v7819_v62 = vld [vmem:[%s11137_s8 + $0xc0] sm:$0xff] }
0x18ee   :  { %v4855_v1 = vadd.f32 %v7783_v54, %v4854_v35  ;;  %8841 = vmatmul.mubr.msk.f32.vlgmr.msra.gmra.mrb[70].mxu1 %vm573_vm2, %v4664_v61  ;;  %9362 = vmatprep.subr.bf16.mxu0 %v9361_v37  ;;  %v9369_v54 = vpack.c.bf16 %v7810_v47, %v7809_v23 }
0x18ef   :  { %9364 = vmatpush3.bf16.msra.mxu0 %v9361_v37  ;;  %v9373_v37 = vpack.c.bf16 %v7812_v57, %v7811_v56 }
0x18f0   :  { %v10742_v3 = vpack.c.bf16 %v4860_v63, %v4855_v1  ;;  %v7820_v63 = vld [vmem:[%s11137_s8 + $0xc8] sm:$0xff]  ;;  %v7821_v1 = vld [vmem:[%s11137_s8 + $0xd0] sm:$0xff] }
0x18f1   :  { %v9377_v35 = vpack.c.bf16 %v7820_v63, %v7819_v62 }
0x18f2   :  { %9366 = vmatprep.subr.bf16.mxu0 %v10742_v3 }
0x19bd   :  { %v8835_v4 = vpop.f32.mrb[58].mxu0 }
0x19be   :  { %v4941_v59 = vpop.f32.mrb[59].mxu0  ;;  %v5040_v5 = vsel %vm748_vm4, %v8835_v4, -inf }
0x19bf   :  { %5041 = vmax.xlane.f32.xlu1 %v5040_v5  ;;  %v5037_v7 = vsel %vm748_vm4, %v4941_v59, -inf  ;;  %v7757_v5 = vld [vmem:[%s11141_s12 + $0x20] sm:$0xff] }
0x19c0   :  { %5038 = vmax.xlane.f32.xlu0 %v5037_v7  ;;  %v7829_v7 = vld [vmem:[%s11139_s10 + $0xc0] sm:$0xff] }
0x19c1   :  { %v8842_v25 = vpop.f32.mrb[70].mxu1 }
0x19c2   :  { %v5028_v15 = vpop.f32.mrb[71].mxu1  ;;  %v5046_v14 = vsel %vm748_vm4, %v8842_v25, -inf }
0x19c3   :  { %5047 = vmax.xlane.f32.xlu1 %v5046_v14  ;;  %v5043_v9 = vsel %vm748_vm4, %v5028_v15, -inf }
0x19c4   :  { %5044 = vmax.xlane.f32.xlu0 %v5043_v9 }
0x1a4c   :  { %v5042_v13 = vpop.xlane.xlu1 %5041 }
0x1a4d   :  { %v5050_v2 = vsub.f32 %v8835_v4, %v5042_v13  ;;  %v5039_v12 = vpop.xlane.xlu0 %5038 }
0x1a4e   :  { %v5049_v6 = vsub.f32 %v4941_v59, %v5039_v12  ;;  %v7800_v59 = vld [vmem:[%s11141_s12 + $0x28] sm:$0xff]  ;;  %v7831_v12 = vld [vmem:[%s11139_s10 + $0xd0] sm:$0xff] }
0x1a4f   :  { %v5055_v24 = vmul.f32 1.442695, %v5050_v2  ;;  %8857 = vmatprep.subr.mxu1 %v7800_v59 }
0x1a50   :  { %v5053_v11 = vmul.f32 1.442695, %v5049_v6  ;;  %v5048_v34 = vpop.xlane.xlu1 %5047  ;;  %8858 = vmatpush3.msra.mxu1 %v7800_v59  ;;  %v7832_v6 = vld [vmem:[%s11139_s10 + $0xd8] sm:$0xff] }
0x1a51   :  { %9628 = vpow2.f32 %v5055_v24  ;;  %v5052_v29 = vsub.f32 %v8842_v25, %v5048_v34  ;;  %v5045_v16 = vpop.xlane.xlu0 %5044  ;;  %8865 = vmatprep.subr.mxu1 %v7757_v5  ;;  %v7830_v25 = vld [vmem:[%s11139_s10 + $0xc8] sm:$0xff]  ;;  %v9389_v24 = vpack.c.bf16 %v7832_v6, %v7831_v12 }
0x1a52   :  { %9630 = vpow2.f32 %v5053_v11  ;;  %v5051_v36 = vsub.f32 %v5028_v15, %v5045_v16  ;;  %v9385_v9 = vpack.c.bf16 %v7830_v25, %v7829_v7  ;;  %v7814_v11 = vld [vmem:[%s11136_s7 + $0x6] ss:$0 sm:$0xff] }
0x1a53   :  { %v5059_v17 = vmul.f32 1.442695, %v5052_v29 }
0x1a54   :  { %v5057_v28 = vmul.f32 1.442695, %v5051_v36  ;;  %v7824_v36 = vld [vmem:[%s11138_s9 + $0x6] ss:$0 sm:$0xff] }
0x1a55   :  { %9632 = vpow2.f32 %v5059_v17 }
0x1a56   :  { %9634 = vpow2.f32 %v5057_v28 }
0x1a5b   :  { %v9629_v48 = vpop.eup %9628 }
0x1a5c   :  { %v9631_v44 = vpop.eup %9630  ;;  %v5064_v19 = vsel %vm748_vm4, %v9629_v48, 0.0 }
0x1a5d   :  { %5065 = vadd.xlane.f32.xlu1 %v5064_v19  ;;  %v5061_v20 = vsel %vm748_vm4, %v9631_v44, 0.0 }
0x1a5e   :  { %5062 = vadd.xlane.f32.xlu0 %v5061_v20 }
0x1a5f   :  { %v9633_v22 = vpop.eup %9632 }
0x1a60   :  { %v9635_v26 = vpop.eup %9634  ;;  %v5070_v27 = vsel %vm748_vm4, %v9633_v22, 0.0 }
0x1a61   :  { %5071 = vadd.xlane.f32.xlu1 %v5070_v27  ;;  %v5067_v30 = vsel %vm748_vm4, %v9635_v26, 0.0 }
0x1a62   :  { %5068 = vadd.xlane.f32.xlu0 %v5067_v30 }
0x1aea   :  { %v5066_v32 = vpop.xlane.xlu1 %5065 }
0x1aeb   :  { %9636 = vrcp.f32 %v5066_v32  ;;  %v5063_v40 = vpop.xlane.xlu0 %5062 }
0x1aec   :  { %9638 = vrcp.f32 %v5063_v40  ;;  %v7834_v40 = vld [vmem:[%s11140_s11 + $0x6] ss:$0 sm:$0xff] }
0x1aee   :  { %v5072_v39 = vpop.xlane.xlu1 %5071 }
0x1aef   :  { %9640 = vrcp.f32 %v5072_v39  ;;  %v5069_v10 = vpop.xlane.xlu0 %5068 }
0x1af0   :  { %9642 = vrcp.f32 %v5069_v10 }
0x1af5   :  { %v9637_v42 = vpop.eup %9636 }
0x1af6   :  { %v9639_v49 = vpop.eup %9638  ;;  %v5078_v53 = vmul.f32 %v9637_v42, %v9629_v48 }
0x1af7   :  { %v5077_v50 = vmul.f32 %v9639_v49, %v9631_v44 }
0x1af9   :  { %v9641_v55 = vpop.eup %9640  ;;  %8847 = vmatprep.mubr.msk.f32.mxu0 %vm748_vm4, %v5077_v50 }
0x1afa   :  { %v9643_v58 = vpop.eup %9642  ;;  %8848 = vmatmul.mubr.msk.f32.vlgmr.msra.gmra.mrb[60].mxu0 %vm748_vm4, %v5078_v53  ;;  %v5080_v61 = vmul.f32 %v9641_v55, %v9633_v22 }
0x1afb   :  { %9368 = vmatpush3.bf16.msra.mxu0 %v10742_v3  ;;  %v5079_v60 = vmul.f32 %v9643_v58, %v9635_v26  ;;  %v7822_v3 = vld [vmem:[%s11137_s8 + $0xd8] sm:$0xff] }
0x1afc   :  { %9370 = vmatprep.subr.bf16.mxu0 %v9369_v54  ;;  %v9381_v4 = vpack.c.bf16 %v7822_v3, %v7821_v1 }
0x1afd   :  { %8854 = vmatprep.mubr.msk.f32.mxu0 %vm748_vm4, %v5079_v60 }
0x1afe   :  { %8855 = vmatmul.mubr.msk.f32.vlgmr.msra.gmra.mrb[62].mxu0 %vm748_vm4, %v5080_v61 }
0x1aff   :  { %9372 = vmatpush3.bf16.msra.mxu0 %v9369_v54  ;;  %8881 = vmatprep.mubr.msk.f32.mxu0 %vm199_vm1, %v10587_v43 }
0x1b00   :  { %9374 = vmatprep.subr.bf16.mxu0 %v9373_v37 }
0x1b03   :  { %9376 = vmatpush3.bf16.msra.mxu0 %v9373_v37 }
0x1b04   :  { %9378 = vmatprep.subr.bf16.mxu0 %v9377_v35 }
0x1b06   :  { %8882 = vmatmul.mubr.msk.f32.vlgmr.msra.gmra.mrb[64].mxu0 %vm199_vm1, %v10590_v45 }
0x1b07   :  { %8884 = vmatprep.mubr.msk.f32.mxu0 %vm199_vm1, %v10600_v51  ;;  %9380 = vmatpush3.bf16.msra.mxu0 %v9377_v35 }
0x1b08   :  { %9382 = vmatprep.subr.bf16.mxu0 %v9381_v4 }
0x1b0a   :  { %8885 = vmatmul.mubr.msk.f32.gmra.mrb[66].mxu0 %vm199_vm1, %v10602_v52 }
0x1b0b   :  { %9384 = vmatpush3.bf16.msra.mxu0 %v9381_v4  ;;  %8895 = vmatprep.mubr.msk.f32.mxu0 %vm199_vm1, %v10587_v43 }
0x1b0e   :  { %8896 = vmatmul.mubr.msk.f32.vlgmr.msra.gmra.mrb[68].mxu0 %vm199_vm1, %v10590_v45 }
0x1b0f   :  { %8898 = vmatprep.mubr.msk.f32.mxu0 %vm199_vm1, %v10600_v51 }
0x1b12   :  { %8899 = vmatmul.mubr.msk.f32.gmra.mrb[70].mxu0 %vm199_vm1, %v10602_v52 }
0x1bcd   :  { %v8849_v15 = vpop.f32.mrb[60].mxu0 }
0x1bce   :  { %v5153_v14 = vpop.f32.mrb[61].mxu0 }
0x1bcf   :  { %8859 = vmatprep.mubr.msk.f32.mxu1 %vm573_vm2, %v5153_v14 }
0x1bd0   :  { %8860 = vmatmul.mubr.msk.f32.vlgmr.msra.gmra.mrb[72].mxu1 %vm573_vm2, %v8849_v15 }
0x1bd1   :  { %v8856_v13 = vpop.f32.mrb[62].mxu0  ;;  %8866 = vmatpush3.msra.mxu1 %v7757_v5 }
0x1bd2   :  { %v5234_v2 = vpop.f32.mrb[63].mxu0  ;;  %9386 = vmatprep.subr.bf16.mxu1 %v9385_v9 }
0x1bd3   :  { %8862 = vmatprep.mubr.msk.f32.mxu1 %vm573_vm2, %v5234_v2 }
0x1bd4   :  { %8863 = vmatmul.mubr.msk.f32.gmra.mrb[74].mxu1 %vm573_vm2, %v8856_v13 }
0x1bd5   :  { %8867 = vmatprep.mubr.msk.f32.mxu1 %vm573_vm2, %v10719_v46 }
0x1bd8   :  { %8868 = vmatmul.mubr.msk.f32.vlgmr.msra.gmra.mrb[72].mxu1 %vm573_vm2, %v10717_v18 }
0x1bd9   :  { %v8883_v34 = vpop.f32.mrb[64].mxu0  ;;  %8870 = vmatprep.mubr.msk.f32.mxu1 %vm573_vm2, %v10715_v31  ;;  %9388 = vmatpush3.bf16.msra.mxu1 %v9385_v9 }
0x1bda   :  { %v5518_v29 = vpop.f32.mrb[65].mxu0  ;;  %9390 = vmatprep.subr.bf16.mxu1 %v9389_v24  ;;  %v5524_v30 = vadd.f32 %v8883_v34, %v7814_v11 }
0x1bdb   :  { %v5519_v16 = vadd.f32 %v7814_v11, %v5518_v29 }
0x1bdc   :  { %8871 = vmatmul.mubr.msk.f32.gmra.mrb[74].mxu1 %vm573_vm2, %v10713_v33 }
0x1bdd   :  { %v8886_v46 = vpop.f32.mrb[66].mxu0  ;;  %8919 = vmatprep.mubr.msk.f32.mxu0 %vm573_vm2, %v5519_v16  ;;  %9392 = vmatpush3.bf16.msra.mxu1 %v9389_v24 }
0x1bde   :  { %v5528_v18 = vpop.f32.mrb[67].mxu0  ;;  %8909 = vmatprep.mubr.msk.f32.mxu1 %vm199_vm1, %v10587_v43  ;;  %v5534_v32 = vadd.f32 %v8886_v46, %v7814_v11  ;;  %v7856_v46 = vld [vmem:[%s11169_s1 + $0xe0] sm:$0xff] }
0x1bdf   :  { %v5529_v28 = vadd.f32 %v7814_v11, %v5528_v18  ;;  %v7857_v18 = vld [vmem:[%s11169_s1 + $0xe8] sm:$0xff] }
0x1be0   :  { %8910 = vmatmul.mubr.msk.f32.vlgmr.msra.gmra.mrb[76].mxu1 %vm199_vm1, %v10590_v45 }
0x1be1   :  { %v8897_v31 = vpop.f32.mrb[68].mxu0  ;;  %8912 = vmatprep.mubr.msk.f32.mxu1 %vm199_vm1, %v10600_v51 }
0x1be2   :  { %v5622_v33 = vadd.f32 %v8897_v31, %v7824_v36  ;;  %v5616_v17 = vpop.f32.mrb[69].mxu0  ;;  %v7851_v31 = vld [vmem:[%s11141_s12 + $0x30] sm:$0xff] }
0x1be3   :  { %v5617_v48 = vadd.f32 %v7824_v36, %v5616_v17 }
0x1be4   :  { %8913 = vmatmul.mubr.msk.f32.gmra.mrb[78].mxu1 %vm199_vm1, %v10602_v52 }
0x1be5   :  { %v9393_v44 = vpack.c.bf16 %v5622_v33, %v5617_v48  ;;  %v8900_v19 = vpop.f32.mrb[70].mxu0  ;;  %8926 = vmatprep.mubr.msk.f32.mxu1 %vm573_vm2, %v5529_v28 }
0x1be6   :  { %v5632_v20 = vadd.f32 %v8900_v19, %v7824_v36  ;;  %v5626_v22 = vpop.f32.mrb[71].mxu0  ;;  %v7858_v19 = vld [vmem:[%s11169_s1 + $0xf0] sm:$0xff] }
0x1be7   :  { %v5627_v26 = vadd.f32 %v7824_v36, %v5626_v22  ;;  %9395 = vmatprep.subr.msk.bf16.mxu0 %vm10030_vm3, %v9393_v44  ;;  %v9413_v36 = vpack.c.bf16 %v7857_v18, %v7856_v46 }
0x1be8   :  { %9398 = vmatpush3.bf16.xpose.msk.msra.mxu0 %vm10030_vm3, %v9393_v44 }
0x1be9   :  { %v9399_v27 = vpack.c.bf16 %v5632_v20, %v5627_v26  ;;  %v7859_v20 = vld [vmem:[%s11169_s1 + $0xf8] sm:$0xff] }
0x1beb   :  { %9401 = vmatprep.subr.msk.bf16.mxu1 %vm10030_vm3, %v9399_v27 }
0x1bec   :  { %9404 = vmatpush3.bf16.xpose.msk.msra.mxu1 %vm10030_vm3, %v9399_v27 }
0x1bef   :  { %8920 = vmatmul.mubr.msk.f32.vlgmr.msra.gmra.mrb[72].mxu0 %vm573_vm2, %v5524_v30  ;;  %v9417_v30 = vpack.c.bf16 %v7859_v20, %v7858_v19 }
0x1bf3   :  { %8927 = vmatmul.mubr.msk.f32.vlgmr.msra.gmra.mrb[80].mxu1 %vm573_vm2, %v5534_v32 }
0x1cb3   :  { %v8911_v39 = vpop.f32.mrb[76].mxu1 }
0x1cb4   :  { %v5720_v10 = vadd.f32 %v8911_v39, %v7834_v40  ;;  %v5714_v42 = vpop.f32.mrb[77].mxu1  ;;  %v7877_v39 = vld [vmem:[%s11139_s10 + $0xe8] sm:$0xff] }
0x1cb5   :  { %v5715_v23 = vadd.f32 %v7834_v40, %v5714_v42 }
0x1cb7   :  { %v9405_v47 = vpack.c.bf16 %v5720_v10, %v5715_v23  ;;  %v8914_v49 = vpop.f32.mrb[78].mxu1 }
0x1cb8   :  { %v5730_v50 = vadd.f32 %v8914_v49, %v7834_v40  ;;  %v5724_v53 = vpop.f32.mrb[79].mxu1  ;;  %v7878_v49 = vld [vmem:[%s11139_s10 + $0xf0] sm:$0xff] }
0x1cb9   :  { %v5725_v54 = vadd.f32 %v7834_v40, %v5724_v53  ;;  %9406 = vmatprep.subr.bf16.mxu0 %v9405_v47  ;;  %v7876_v40 = vld [vmem:[%s11139_s10 + $0xe0] sm:$0xff] }
0x1cba   :  { %9408 = vmatpush3.bf16.msra.mxu0 %v9405_v47  ;;  %v9429_v47 = vpack.c.bf16 %v7877_v39, %v7876_v40 }
0x1cbb   :  { %v9409_v55 = vpack.c.bf16 %v5730_v50, %v5725_v54  ;;  %9414 = vmatprep.subr.bf16.mxu0 %v9413_v36  ;;  %v7879_v50 = vld [vmem:[%s11139_s10 + $0xf8] sm:$0xff]  ;;  %v7866_v54 = vld [vmem:[%s11137_s8 + $0xe0] sm:$0xff] }
0x1cbc   :  { %v9433_v53 = vpack.c.bf16 %v7879_v50, %v7878_v49 }
0x1cbd   :  { %9410 = vmatprep.subr.bf16.mxu1 %v9409_v55 }
0x1cbe   :  { %9412 = vmatpush3.bf16.msra.mxu1 %v9409_v55  ;;  %v7867_v55 = vld [vmem:[%s11137_s8 + $0xe8] sm:$0xff] }
0x1cbf   :  { %8943 = vmatprep.subr.mxu1 %v7851_v31 }
0x1cc2   :  { %v8921_v56 = vpop.f32.mrb[72].mxu0 }
0x1cc3   :  { %v5811_v57 = vpop.f32.mrb[73].mxu0  ;;  %v5910_v58 = vsel %vm748_vm4, %v8921_v56, -inf }
0x1cc4   :  { %5911 = vmax.xlane.f32.xlu1 %v5910_v58  ;;  %v5907_v60 = vsel %vm748_vm4, %v5811_v57, -inf  ;;  %v7869_v58 = vld [vmem:[%s11137_s8 + $0xf8] sm:$0xff] }
0x1cc5   :  { %5908 = vmax.xlane.f32.xlu0 %v5907_v60 }
0x1cc6   :  { %v8928_v61 = vpop.f32.mrb[80].mxu1 }
0x1cc7   :  { %v5898_v37 = vpop.f32.mrb[81].mxu1  ;;  %v5916_v62 = vsel %vm748_vm4, %v8928_v61, -inf }
0x1cc8   :  { %5917 = vmax.xlane.f32.xlu1 %v5916_v62  ;;  %v5913_v63 = vsel %vm748_vm4, %v5898_v37, -inf }
0x1cc9   :  { %5914 = vmax.xlane.f32.xlu0 %v5913_v63 }
0x1d51   :  { %v5912_v35 = vpop.xlane.xlu1 %5911 }
0x1d52   :  { %v5920_v1 = vsub.f32 %v8921_v56, %v5912_v35  ;;  %v5909_v3 = vpop.xlane.xlu0 %5908  ;;  %v9421_v56 = vpack.c.bf16 %v7867_v55, %v7866_v54  ;;  %v7861_v35 = vld [vmem:[%s11136_s7 + $0x7] ss:$0 sm:$0xff] }
0x1d53   :  { %v5919_v4 = vsub.f32 %v5811_v57, %v5909_v3  ;;  %v7868_v57 = vld [vmem:[%s11137_s8 + $0xf0] sm:$0xff] }
0x1d54   :  { %v5925_v59 = vmul.f32 1.442695, %v5920_v1 }
0x1d55   :  { %v5923_v5 = vmul.f32 1.442695, %v5919_v4  ;;  %v5918_v7 = vpop.xlane.xlu1 %5917 }
0x1d56   :  { %9644 = vpow2.f32 %v5925_v59  ;;  %v5922_v25 = vsub.f32 %v8928_v61, %v5918_v7  ;;  %v5915_v15 = vpop.xlane.xlu0 %5914 }
0x1d57   :  { %9646 = vpow2.f32 %v5923_v5  ;;  %v5921_v14 = vsub.f32 %v5898_v37, %v5915_v15  ;;  %v9425_v37 = vpack.c.bf16 %v7869_v58, %v7868_v57 }
0x1d58   :  { %v5929_v9 = vmul.f32 1.442695, %v5922_v25 }
0x1d59   :  { %v5927_v13 = vmul.f32 1.442695, %v5921_v14  ;;  %v7881_v14 = vld [vmem:[%s11140_s11 + $0x7] ss:$0 sm:$0xff] }
0x1d5a   :  { %9648 = vpow2.f32 %v5929_v9 }
0x1d5b   :  { %9650 = vpow2.f32 %v5927_v13 }
0x1d60   :  { %v9645_v2 = vpop.eup %9644 }
0x1d61   :  { %v9647_v12 = vpop.eup %9646  ;;  %v5934_v6 = vsel %vm748_vm4, %v9645_v2, 0.0 }
0x1d62   :  { %5935 = vadd.xlane.f32.xlu1 %v5934_v6  ;;  %v5931_v24 = vsel %vm748_vm4, %v9647_v12, 0.0 }
0x1d63   :  { %5932 = vadd.xlane.f32.xlu0 %v5931_v24 }
0x1d64   :  { %v9649_v11 = vpop.eup %9648 }
0x1d65   :  { %v9651_v34 = vpop.eup %9650  ;;  %v5940_v29 = vsel %vm748_vm4, %v9649_v11, 0.0 }
0x1d66   :  { %5941 = vadd.xlane.f32.xlu1 %v5940_v29  ;;  %v5937_v16 = vsel %vm748_vm4, %v9651_v34, 0.0 }
0x1d67   :  { %5938 = vadd.xlane.f32.xlu0 %v5937_v16 }
0x1def   :  { %v5936_v33 = vpop.xlane.xlu1 %5935 }
0x1df0   :  { %9652 = vrcp.f32 %v5936_v33  ;;  %v5933_v17 = vpop.xlane.xlu0 %5932 }
0x1df1   :  { %9654 = vrcp.f32 %v5933_v17 }
0x1df3   :  { %v5942_v28 = vpop.xlane.xlu1 %5941 }
0x1df4   :  { %9656 = vrcp.f32 %v5942_v28  ;;  %v5939_v48 = vpop.xlane.xlu0 %5938 }
0x1df5   :  { %9658 = vrcp.f32 %v5939_v48 }
0x1dfa   :  { %v9653_v44 = vpop.eup %9652 }
0x1dfb   :  { %v9655_v22 = vpop.eup %9654  ;;  %v5948_v27 = vmul.f32 %v9653_v44, %v9645_v2 }
0x1dfc   :  { %v5947_v26 = vmul.f32 %v9655_v22, %v9647_v12 }
0x1dfe   :  { %v9657_v32 = vpop.eup %9656  ;;  %8933 = vmatprep.mubr.msk.f32.mxu0 %vm748_vm4, %v5947_v26 }
0x1dff   :  { %v9659_v10 = vpop.eup %9658  ;;  %8934 = vmatmul.mubr.msk.f32.vlgmr.msra.gmra.mrb[74].mxu0 %vm748_vm4, %v5948_v27  ;;  %v5950_v23 = vmul.f32 %v9657_v32, %v9649_v11 }
0x1e00   :  { %9416 = vmatpush3.bf16.msra.mxu0 %v9413_v36  ;;  %8959 = vmatprep.mubr.msk.f32.mxu0 %vm199_vm1, %v10587_v43  ;;  %v5949_v42 = vmul.f32 %v9659_v10, %v9651_v34  ;;  %v7871_v34 = vld [vmem:[%s11138_s9 + $0x7] ss:$0 sm:$0xff] }
0x1e01   :  { %9418 = vmatprep.subr.bf16.mxu0 %v9417_v30 }
0x1e02   :  { %8940 = vmatprep.mubr.msk.f32.mxu1 %vm748_vm4, %v5949_v42 }
0x1e03   :  { %8941 = vmatmul.mubr.msk.f32.vlgmr.msra.gmra.mrb[82].mxu1 %vm748_vm4, %v5950_v23 }
0x1e04   :  { %9420 = vmatpush3.bf16.msra.mxu0 %v9417_v30  ;;  %8944 = vmatpush3.msra.mxu1 %v7851_v31 }
0x1e05   :  { %9430 = vmatprep.subr.bf16.mxu0 %v9429_v47  ;;  %9422 = vmatprep.subr.bf16.mxu1 %v9421_v56 }
0x1e07   :  { %8960 = vmatmul.mubr.msk.f32.vlgmr.msra.gmra.mrb[76].mxu0 %vm199_vm1, %v10590_v45 }
0x1e08   :  { %8962 = vmatprep.mubr.msk.f32.mxu0 %vm199_vm1, %v10600_v51  ;;  %9432 = vmatpush3.bf16.msra.mxu0 %v9429_v47 }
0x1e09   :  { %9434 = vmatprep.subr.bf16.mxu0 %v9433_v53 }
0x1e0b   :  { %8963 = vmatmul.mubr.msk.f32.gmra.mrb[78].mxu0 %vm199_vm1, %v10602_v52 }
0x1e0c   :  { %9436 = vmatpush3.bf16.msra.mxu0 %v9433_v53  ;;  %8987 = vmatprep.mubr.msk.f32.mxu0 %vm199_vm1, %v10587_v43 }
0x1e0f   :  { %8988 = vmatmul.mubr.msk.f32.vlgmr.msra.gmra.mrb[80].mxu0 %vm199_vm1, %v10590_v45 }
0x1e10   :  { %8990 = vmatprep.mubr.msk.f32.mxu0 %vm199_vm1, %v10600_v51 }
0x1e13   :  { %8991 = vmatmul.mubr.msk.f32.gmra.mrb[82].mxu0 %vm199_vm1, %v10602_v52 }
0x1ed2   :  { %v8935_v60 = vpop.f32.mrb[74].mxu0 }
0x1ed3   :  { %v6023_v61 = vpop.f32.mrb[75].mxu0 }
0x1ed4   :  { %8945 = vmatprep.mubr.msk.f32.mxu1 %vm573_vm2, %v6023_v61 }
0x1ed5   :  { %8946 = vmatmul.mubr.msk.f32.vlgmr.msra.gmra.mrb[72].mxu1 %vm573_vm2, %v8935_v60 }
0x1ed6   :  { %v8942_v62 = vpop.f32.mrb[82].mxu1  ;;  %9424 = vmatpush3.bf16.msra.mxu1 %v9421_v56 }
0x1ed7   :  { %v6104_v63 = vpop.f32.mrb[83].mxu1  ;;  %9426 = vmatprep.subr.bf16.mxu1 %v9425_v37 }
0x1ed8   :  { %8948 = vmatprep.mubr.msk.f32.mxu1 %vm573_vm2, %v6104_v63  ;;  %v7898_v63 = vld [vmem:[%s11141_s12 + $0x38] sm:$0xff] }
0x1ed9   :  { %8949 = vmatmul.mubr.msk.f32.gmra.mrb[74].mxu1 %vm573_vm2, %v8942_v62 }
0x1eda   :  { %v8961_v1 = vpop.f32.mrb[76].mxu0  ;;  %9428 = vmatpush3.bf16.msra.mxu1 %v9425_v37  ;;  %8973 = vmatprep.mubr.msk.f32.mxu1 %vm199_vm1, %v10587_v43 }
0x1edb   :  { %v6301_v3 = vadd.f32 %v8961_v1, %v7861_v35  ;;  %v6295_v4 = vpop.f32.mrb[77].mxu0 }
0x1edc   :  { %v6296_v25 = vadd.f32 %v7861_v35, %v6295_v4 }
0x1edd   :  { %8974 = vmatmul.mubr.msk.f32.vlgmr.msra.gmra.mrb[84].mxu1 %vm199_vm1, %v10590_v45 }
0x1ede   :  { %v8964_v59 = vpop.f32.mrb[78].mxu0  ;;  %8976 = vmatprep.mubr.msk.f32.mxu1 %vm199_vm1, %v10600_v51 }
0x1edf   :  { %v6311_v5 = vadd.f32 %v8964_v59, %v7861_v35  ;;  %v6305_v7 = vpop.f32.mrb[79].mxu0 }
0x1ee0   :  { %v6306_v15 = vadd.f32 %v7861_v35, %v6305_v7 }
0x1ee1   :  { %8977 = vmatmul.mubr.msk.f32.gmra.mrb[86].mxu1 %vm199_vm1, %v10602_v52 }
0x1ee2   :  { %v8989_v43 = vpop.f32.mrb[80].mxu0  ;;  %9004 = vmatprep.mubr.msk.f32.mxu0 %vm573_vm2, %v6306_v15  ;;  %8997 = vmatprep.mubr.msk.f32.mxu1 %vm573_vm2, %v6296_v25 }
0x1ee3   :  { %v6497_v45 = vadd.f32 %v8989_v43, %v7881_v14  ;;  %v6491_v9 = vpop.f32.mrb[81].mxu0 }
0x1ee4   :  { %v6492_v13 = vadd.f32 %v7881_v14, %v6491_v9 }
0x1ee6   :  { %v9449_v51 = vpack.c.bf16 %v6497_v45, %v6492_v13  ;;  %v8992_v2 = vpop.f32.mrb[82].mxu0 }
0x1ee7   :  { %v6507_v12 = vadd.f32 %v8992_v2, %v7881_v14  ;;  %v6501_v6 = vpop.f32.mrb[83].mxu0 }
0x1ee8   :  { %v6502_v24 = vadd.f32 %v7881_v14, %v6501_v6  ;;  %v7904_v6 = vld [vmem:[%s11142_s13 + $0x1] ss:$0 sm:$0xff] }
0x1eea   :  { %v9453_v11 = vpack.c.bf16 %v6507_v12, %v6502_v24 }
0x1fb0   :  { %v8975_v29 = vpop.f32.mrb[84].mxu1 }
0x1fb1   :  { %v6399_v52 = vadd.f32 %v8975_v29, %v7871_v34  ;;  %v6393_v16 = vpop.f32.mrb[85].mxu1 }
0x1fb2   :  { %v6394_v46 = vadd.f32 %v7871_v34, %v6393_v16 }
0x1fb4   :  { %v9437_v18 = vpack.c.bf16 %v6399_v52, %v6394_v46  ;;  %v8978_v36 = vpop.f32.mrb[86].mxu1 }
0x1fb5   :  { %v6409_v31 = vadd.f32 %v8978_v36, %v7871_v34  ;;  %v6403_v33 = vpop.f32.mrb[87].mxu1 }
0x1fb6   :  { %v6404_v17 = vadd.f32 %v7871_v34, %v6403_v33  ;;  %9439 = vmatprep.subr.msk.bf16.mxu1 %vm10030_vm3, %v9437_v18 }
0x1fb7   :  { %9442 = vmatpush3.bf16.xpose.msk.msra.mxu1 %vm10030_vm3, %v9437_v18 }
0x1fb8   :  { %v9443_v28 = vpack.c.bf16 %v6409_v31, %v6404_v17  ;;  %9450 = vmatprep.subr.bf16.mxu1 %v9449_v51 }
0x1fba   :  { %9445 = vmatprep.subr.msk.bf16.mxu0 %vm10030_vm3, %v9443_v28 }
0x1fbb   :  { %9448 = vmatpush3.bf16.xpose.msk.msra.mxu0 %vm10030_vm3, %v9443_v28 }
0x1fbc   :  { %9454 = vmatprep.subr.bf16.mxu0 %v9453_v11 }
0x1fbe   :  { %8998 = vmatmul.mubr.msk.f32.vlgmr.msra.gmra.mrb[88].mxu1 %vm573_vm2, %v6301_v3 }
0x1fbf   :  { %9452 = vmatpush3.bf16.msra.mxu1 %v9449_v51 }
0x1fc0   :  { %9021 = vmatprep.subr.mxu1 %v7898_v63 }
0x1fc2   :  { %9005 = vmatmul.mubr.msk.f32.vlgmr.msra.gmra.mrb[84].mxu0 %vm573_vm2, %v6311_v5 }
0x1fc3   :  { %9456 = vmatpush3.bf16.msra.mxu0 %v9453_v11 }
0x2091   :  { %v8999_v48 = vpop.f32.mrb[88].mxu1 }
0x2092   :  { %v6588_v44 = vpop.f32.mrb[89].mxu1  ;;  %v6687_v19 = vsel %vm748_vm4, %v8999_v48, -inf }
0x2093   :  { %6688 = vmax.xlane.f32.xlu1 %v6687_v19  ;;  %v6684_v20 = vsel %vm748_vm4, %v6588_v44, -inf }
0x2094   :  { %6685 = vmax.xlane.f32.xlu0 %v6684_v20 }
0x2095   :  { %v9006_v22 = vpop.f32.mrb[84].mxu0 }
0x2096   :  { %v6675_v26 = vpop.f32.mrb[85].mxu0  ;;  %v6693_v0 = vsel %vm748_vm4, %v9006_v22, -inf }
0x2097   :  { %6694 = vmax.xlane.f32.xlu1 %v6693_v0  ;;  %v6690_v27 = vsel %vm748_vm4, %v6675_v26, -inf }
0x2098   :  { %6691 = vmax.xlane.f32.xlu0 %v6690_v27 }
0x2120   :  { %v6689_v30 = vpop.xlane.xlu1 %6688 }
0x2121   :  { %v6697_v32 = vsub.f32 %v8999_v48, %v6689_v30  ;;  %v6686_v40 = vpop.xlane.xlu0 %6685 }
0x2122   :  { %v6696_v39 = vsub.f32 %v6588_v44, %v6686_v40 }
0x2123   :  { %v6702_v10 = vmul.f32 1.442695, %v6697_v32 }
0x2124   :  { %v6700_v42 = vmul.f32 1.442695, %v6696_v39  ;;  %v6695_v23 = vpop.xlane.xlu1 %6694 }
0x2125   :  { %9660 = vpow2.f32 %v6702_v10  ;;  %v6699_v47 = vsub.f32 %v9006_v22, %v6695_v23  ;;  %v6692_v49 = vpop.xlane.xlu0 %6691 }
0x2126   :  { %9662 = vpow2.f32 %v6700_v42  ;;  %v6698_v50 = vsub.f32 %v6675_v26, %v6692_v49 }
0x2127   :  { %v6706_v53 = vmul.f32 1.442695, %v6699_v47 }
0x2128   :  { %v6704_v54 = vmul.f32 1.442695, %v6698_v50 }
0x2129   :  { %9664 = vpow2.f32 %v6706_v53  ;;  %v7909_v53 = vld [vmem:[%s11145_s16 + $0x20] sm:$0xff] }
0x212a   :  { %9666 = vpow2.f32 %v6704_v54  ;;  %v7910_v54 = vld [vmem:[%s11145_s16 + $0x28] sm:$0xff] }
0x212f   :  { %v9661_v55 = vpop.eup %9660 }
0x2130   :  { %v9663_v56 = vpop.eup %9662  ;;  %v6711_v57 = vsel %vm748_vm4, %v9661_v55, 0.0 }
0x2131   :  { %6712 = vadd.xlane.f32.xlu1 %v6711_v57  ;;  %v6708_v58 = vsel %vm748_vm4, %v9663_v56, 0.0  ;;  %v7912_v57 = vld [vmem:[%s11145_s16 + $0x38] sm:$0xff] }
0x2132   :  { %6709 = vadd.xlane.f32.xlu0 %v6708_v58 }
0x2133   :  { %v9665_v60 = vpop.eup %9664 }
0x2134   :  { %v9667_v61 = vpop.eup %9666  ;;  %v6717_v37 = vsel %vm748_vm4, %v9665_v60, 0.0 }
0x2135   :  { %6718 = vadd.xlane.f32.xlu1 %v6717_v37  ;;  %v6714_v62 = vsel %vm748_vm4, %v9667_v61, 0.0 }
0x2136   :  { %6715 = vadd.xlane.f32.xlu0 %v6714_v62 }
0x21be   :  { %v6713_v35 = vpop.xlane.xlu1 %6712 }
0x21bf   :  { %9668 = vrcp.f32 %v6713_v35  ;;  %v6710_v1 = vpop.xlane.xlu0 %6709 }
0x21c0   :  { %9670 = vrcp.f32 %v6710_v1 }
0x21c2   :  { %v6719_v3 = vpop.xlane.xlu1 %6718 }
0x21c3   :  { %9672 = vrcp.f32 %v6719_v3  ;;  %v6716_v4 = vpop.xlane.xlu0 %6715 }
0x21c4   :  { %9674 = vrcp.f32 %v6716_v4 }
0x21c9   :  { %v9669_v59 = vpop.eup %9668 }
0x21ca   :  { %v9671_v5 = vpop.eup %9670  ;;  %v6725_v25 = vmul.f32 %v9669_v59, %v9661_v55  ;;  %v9457_v55 = vpack.c.bf16 %v7910_v54, %v7909_v53 }
0x21cb   :  { %v6724_v7 = vmul.f32 %v9671_v5, %v9663_v56  ;;  %v7911_v56 = vld [vmem:[%s11145_s16 + $0x30] sm:$0xff]  ;;  %s9732_s16 = smov [#allocation2]  }
0x21cc   :  { %9458 = vmatprep.subr.bf16.mxu0 %v9457_v55  ;;  %v9461_v58 = vpack.c.bf16 %v7912_v57, %v7911_v56 }
0x21cd   :  { %v9673_v15 = vpop.eup %9672  ;;  %9011 = vmatprep.mubr.msk.f32.mxu1 %vm748_vm4, %v6724_v7 }
0x21ce   :  { %v9675_v14 = vpop.eup %9674  ;;  %9012 = vmatmul.mubr.msk.f32.vlgmr.msra.gmra.mrb[90].mxu1 %vm748_vm4, %v6725_v25  ;;  %v6727_v45 = vmul.f32 %v9673_v15, %v9665_v60  ;;  %v7907_v15 = vld [vmem:[%s11143_s14 + $0x1] ss:$0 sm:$0xff] }
0x21cf   :  { %v6726_v43 = vmul.f32 %v9675_v14, %v9667_v61  ;;  %9022 = vmatpush3.msra.mxu1 %v7898_v63 }
0x21d1   :  { %9018 = vmatprep.mubr.msk.f32.mxu0 %vm748_vm4, %v6726_v43 }
0x21d2   :  { %9019 = vmatmul.mubr.msk.f32.vlgmr.msra.gmra.mrb[86].mxu0 %vm748_vm4, %v6727_v45 }
0x21d3   :  { %9460 = vmatpush3.bf16.msra.mxu0 %v9457_v55 }
0x21d4   :  { %9462 = vmatprep.subr.bf16.mxu0 %v9461_v58 }
0x21d7   :  { %9464 = vmatpush3.bf16.msra.mxu0 %v9461_v58 }
0x22a1   :  { %v9013_v9 = vpop.f32.mrb[90].mxu1 }
0x22a2   :  { %v6800_v13 = vpop.f32.mrb[91].mxu1 }
0x22a3   :  { %9023 = vmatprep.mubr.msk.f32.mxu1 %vm573_vm2, %v6800_v13 }
0x22a4   :  { %9024 = vmatmul.mubr.msk.f32.vlgmr.msra.gmra.mrb[72].mxu1 %vm573_vm2, %v9013_v9  ;;  %v7908_v9 = vld [vmem:[%s11144_s15 + $0x1] ss:$0 sm:$0xff] }
0x22a5   :  { %v9020_v51 = vpop.f32.mrb[86].mxu0 }
0x22a6   :  { %v6881_v2 = vpop.f32.mrb[87].mxu0 }
0x22a7   :  { %9026 = vmatprep.mubr.msk.f32.mxu1 %vm573_vm2, %v6881_v2 }
0x22a8   :  { %9027 = vmatmul.mubr.msk.f32.gmra.mrb[74].mxu1 %vm573_vm2, %v9020_v51 }
0x2377   :  { %v9025_v12 = vpop.f32.mrb[72].mxu1 }
0x2378   :  { %v6994_v24 = vadd.f32 %v9025_v12, %v10500_v21  ;;  %v6970_v11 = vpop.f32.mrb[73].mxu1 }
0x2379   :  { %v6993_v34 = vadd.f32 %v6970_v11, %v10502_v41 }
0x237a   :  { %v10981_v29 = vadd.f32 %v7904_v6, %v6994_v24 }
0x237b   :  { %v10983_v52 = vadd.f32 %v7904_v6, %v6993_v34  ;;  %v9028_v16 = vpop.f32.mrb[74].mxu1 }
0x237c   :  { %v6996_v46 = vadd.f32 %v9028_v16, %v10510_v38  ;;  %v6980_v18 = vpop.f32.mrb[75].mxu1  ;;  %v7016_v36 = vsel %vm199_vm1, %v10981_v29, 0.0 }
0x237d   :  { %v6995_v31 = vadd.f32 %v6980_v18, %v10512_v8  ;;  %7017 = vadd.xlane.f32.xlu1 %v7016_v36  ;;  %v7013_v21 = vsel %vm199_vm1, %v10983_v52, 0.0 }
0x237e   :  { %v10991_v33 = vadd.f32 %v7904_v6, %v6996_v46  ;;  %7014 = vadd.xlane.f32.xlu0 %v7013_v21  ;;  %v7920_v21 = vld [vmem:[%s11147_s18 + $0x48] sm:$0xff] }
0x237f   :  { %v10993_v41 = vadd.f32 %v7904_v6, %v6995_v31  ;;  %v7919_v31 = vld [vmem:[%s11147_s18 + $0x40] sm:$0xff] }
0x2380   :  { %v7022_v17 = vsel %vm199_vm1, %v10991_v33, 0.0 }
0x2381   :  { %7023 = vadd.xlane.f32.xlu1 %v7022_v17  ;;  %v7019_v38 = vsel %vm199_vm1, %v10993_v41, 0.0  ;;  %v9465_v17 = vpack.c.bf16 %v7920_v21, %v7919_v31 }
0x2382   :  { %7020 = vadd.xlane.f32.xlu0 %v7019_v38  ;;  %v7921_v38 = vld [vmem:[%s11147_s18 + $0x50] sm:$0xff] }
0x2383   :  { %9466 = vmatprep.subr.bf16.mxu1 %v9465_v17 }
0x2384   :  { %9468 = vmatpush3.bf16.msra.mxu1 %v9465_v17 }
0x240a   :  { %v7018_v28 = vpop.xlane.xlu1 %7017 }
0x240b   :  { %v7026_v48 = vmul.f32 0.03125, %v7018_v28  ;;  %v7015_v8 = vpop.xlane.xlu0 %7014  ;;  %v7922_v28 = vld [vmem:[%s11147_s18 + $0x58] sm:$0xff] }
0x240c   :  { %v7025_v44 = vmul.f32 0.03125, %v7015_v8  ;;  %v7923_v8 = vld [vmem:[%s11147_s18 + $0x60] sm:$0xff] }
0x240d   :  { %v7030_v19 = vsub.f32 %v10981_v29, %v7026_v48  ;;  %v9469_v48 = vpack.c.bf16 %v7922_v28, %v7921_v38 }
0x240e   :  { %v7029_v20 = vsub.f32 %v10983_v52, %v7025_v44  ;;  %v7024_v22 = vpop.xlane.xlu1 %7023  ;;  %v7924_v44 = vld [vmem:[%s11147_s18 + $0x68] sm:$0xff] }
0x240f   :  { %v7028_v26 = vmul.f32 0.03125, %v7024_v22  ;;  %v7021_v0 = vpop.xlane.xlu0 %7020  ;;  %v7034_v27 = vmul.f32 %v7030_v19, %v7030_v19  ;;  %9470 = vmatprep.subr.bf16.mxu1 %v9469_v48  ;;  %v7926_v22 = vld [vmem:[%s11147_s18 + $0x78] sm:$0xff] }
0x2410   :  { %v7027_v30 = vmul.f32 0.03125, %v7021_v0  ;;  %v7033_v32 = vmul.f32 %v7029_v20, %v7029_v20  ;;  %9472 = vmatpush3.bf16.msra.mxu1 %v9469_v48  ;;  %v7914_v0 = vld [vmem:[%s11146_s17 + $0x1] ss:$0 sm:$0xff] }
0x2411   :  { %v7032_v40 = vsub.f32 %v10991_v33, %v7028_v26  ;;  %v7040_v39 = vsel %vm199_vm1, %v7034_v27, 0.0 }
0x2412   :  { %v7031_v10 = vsub.f32 %v10993_v41, %v7027_v30  ;;  %7041 = vadd.xlane.f32.xlu1 %v7040_v39  ;;  %v7037_v42 = vsel %vm199_vm1, %v7033_v32, 0.0 }
0x2413   :  { %7038 = vadd.xlane.f32.xlu0 %v7037_v42  ;;  %v7036_v23 = vmul.f32 %v7032_v40, %v7032_v40 }
0x2414   :  { %v7035_v47 = vmul.f32 %v7031_v10, %v7031_v10 }
0x2415   :  { %v7046_v49 = vsel %vm199_vm1, %v7036_v23, 0.0 }
0x2416   :  { %7047 = vadd.xlane.f32.xlu1 %v7046_v49  ;;  %v7043_v50 = vsel %vm199_vm1, %v7035_v47, 0.0 }
0x2417   :  { %7044 = vadd.xlane.f32.xlu0 %v7043_v50 }
0x249f   :  { %v7042_v60 = vpop.xlane.xlu1 %7041 }
0x24a0   :  { %v7050_v61 = vmul.f32 0.03125, %v7042_v60  ;;  %v7039_v37 = vpop.xlane.xlu0 %7038 }
0x24a1   :  { %v7049_v62 = vmul.f32 0.03125, %v7039_v37 }
0x24a2   :  { %v7054_v63 = vadd.f32 1e-05, %v7050_v61 }
0x24a3   :  { %v7053_v35 = vadd.f32 1e-05, %v7049_v62  ;;  %v7048_v1 = vpop.xlane.xlu1 %7047 }
0x24a4   :  { %9676 = vrsqrt.f32 %v7054_v63  ;;  %v7052_v3 = vmul.f32 0.03125, %v7048_v1  ;;  %v7045_v4 = vpop.xlane.xlu0 %7044 }
0x24a5   :  { %9678 = vrsqrt.f32 %v7053_v35  ;;  %v7051_v59 = vmul.f32 0.03125, %v7045_v4 }
0x24a6   :  { %v7056_v5 = vadd.f32 1e-05, %v7052_v3 }
0x24a7   :  { %v7055_v7 = vadd.f32 1e-05, %v7051_v59 }
0x24a8   :  { %9680 = vrsqrt.f32 %v7056_v5 }
0x24a9   :  { %9682 = vrsqrt.f32 %v7055_v7 }
0x24ae   :  { %v9677_v25 = vpop.eup %9676 }
0x24af   :  { %v9679_v14 = vpop.eup %9678  ;;  %v7062_v43 = vmul.f32 %v9677_v25, %v7030_v19  ;;  %v9473_v19 = vpack.c.bf16 %v7924_v44, %v7923_v8 }
0x24b0   :  { %v7061_v45 = vmul.f32 %v9679_v14, %v7029_v20  ;;  %v7925_v20 = vld [vmem:[%s11147_s18 + $0x70] sm:$0xff] }
0x24b1   :  { %v7072_v13 = vmul.f32 %v7907_v15, %v7062_v43  ;;  %9474 = vmatprep.subr.bf16.mxu1 %v9473_v19  ;;  %v9477_v26 = vpack.c.bf16 %v7926_v22, %v7925_v20 }
0x24b2   :  { %v9681_v51 = vpop.eup %9680  ;;  %v7071_v2 = vmul.f32 %v7907_v15, %v7061_v45  ;;  %9476 = vmatpush3.bf16.msra.mxu1 %v9473_v19 }
0x24b3   :  { %v9683_v12 = vpop.eup %9682  ;;  %v7064_v6 = vmul.f32 %v9681_v51, %v7032_v40  ;;  %v7082_v34 = vadd.f32 %v7908_v9, %v7072_v13  ;;  %9478 = vmatprep.subr.bf16.mxu1 %v9477_v26 }
0x24b4   :  { %v7081_v24 = vadd.f32 %v7908_v9, %v7071_v2  ;;  %v7063_v11 = vmul.f32 %v9683_v12, %v7031_v10 }
0x24b5   :  { %v7074_v16 = vmul.f32 %v7907_v15, %v7064_v6 }
0x24b6   :  { %9037 = vmatprep.mubr.msk.f32.mxu0 %vm199_vm1, %v7081_v24  ;;  %v7073_v46 = vmul.f32 %v7907_v15, %v7063_v11  ;;  %9480 = vmatpush3.bf16.msra.mxu1 %v9477_v26 }
0x24b7   :  { %9038 = vmatmul.mubr.msk.f32.vlgmr.msra.gmra.mrb[88].mxu0 %vm199_vm1, %v7082_v34  ;;  %v7084_v36 = vadd.f32 %v7908_v9, %v7074_v16 }
0x24b8   :  { %v7083_v18 = vadd.f32 %v7908_v9, %v7073_v46 }
0x24ba   :  { %9040 = vmatprep.mubr.msk.f32.mxu0 %vm199_vm1, %v7083_v18 }
0x24bb   :  { %9041 = vmatmul.mubr.msk.f32.gmra.mrb[90].mxu0 %vm199_vm1, %v7084_v36 }
0x258a   :  { %v9039_v27 = vpop.f32.mrb[88].mxu0 }
0x258b   :  { %v11056_v30 = vadd.f32 %v9039_v27, %v7914_v0  ;;  %v7176_v32 = vpop.f32.mrb[89].mxu0 }
0x258c   :  { %v11058_v40 = vadd.f32 %v7914_v0, %v7176_v32 }
0x258d   :  { %v11061_v39 = vmul.f32 0.70710677, %v11056_v30 }
0x258e   :  { %v11064_v10 = vmul.f32 0.70710677, %v11058_v40  ;;  %v9042_v42 = vpop.f32.mrb[90].mxu0 }
0x258f   :  { %v7204_v23 = vand.u32 2147483647, %v11061_v39  ;;  %v11067_v47 = vadd.f32 %v9042_v42, %v7914_v0  ;;  %v7186_v49 = vpop.f32.mrb[91].mxu0  ;;  %vm7284_vm9 = vcmp.lt.f32.partialorder %v11061_v39, 0.0 }
0x2590   :  { %v7203_v50 = vand.u32 2147483647, %v11064_v10  ;;  %v11070_v53 = vadd.f32 %v7914_v0, %v7186_v49  ;;  %vm7283_vm10 = vcmp.lt.f32.partialorder %v11064_v10, 0.0 }
0x2591   :  { %v7208_v54 = vmul.f32 0.3275911, %v7204_v23  ;;  %v11073_v55 = vmul.f32 0.70710677, %v11067_v47  ;;  %v7260_v3 = vsub.f32 0.0, %v7204_v23 }
0x2592   :  { %v7207_v56 = vmul.f32 0.3275911, %v7203_v50  ;;  %v11076_v57 = vmul.f32 0.70710677, %v11070_v53  ;;  %v7259_v4 = vsub.f32 0.0, %v7203_v50 }
0x2593   :  { %v7212_v58 = vadd.f32 1.0, %v7208_v54  ;;  %v7206_v60 = vand.u32 2147483647, %v11073_v55  ;;  %v7264_v5 = vmul.f32 %v7260_v3, %v7204_v23  ;;  %vm7286_vm11 = vcmp.lt.f32.partialorder %v11073_v55, 0.0 }
0x2594   :  { %v7211_v61 = vadd.f32 1.0, %v7207_v56  ;;  %v7205_v37 = vand.u32 2147483647, %v11076_v57  ;;  %v7263_v14 = vmul.f32 %v7259_v4, %v7203_v50  ;;  %vm7285_vm12 = vcmp.lt.f32.partialorder %v11076_v57, 0.0  ;;  %v7932_v57 = vld [vmem:[%s11148_s19 + $0x1] ss:$0 sm:$0xff] }
0x2595   :  { %9684 = vrcp.f32 %v7212_v58  ;;  %v7210_v62 = vmul.f32 0.3275911, %v7206_v60  ;;  %v7262_v7 = vsub.f32 0.0, %v7206_v60  ;;  %v7269_v51 = vmul.f32 1.442695, %v7264_v5 }
0x2596   :  { %9686 = vrcp.f32 %v7211_v61  ;;  %v7209_v63 = vmul.f32 0.3275911, %v7205_v37  ;;  %v7261_v43 = vsub.f32 0.0, %v7205_v37  ;;  %v7267_v11 = vmul.f32 1.442695, %v7263_v14 }
0x2597   :  { %v7214_v35 = vadd.f32 1.0, %v7210_v62  ;;  %v7266_v12 = vmul.f32 %v7262_v7, %v7206_v60 }
0x2598   :  { %v7213_v1 = vadd.f32 1.0, %v7209_v63  ;;  %v7265_v16 = vmul.f32 %v7261_v43, %v7205_v37 }
0x2599   :  { %9688 = vrcp.f32 %v7214_v35  ;;  %v7273_v17 = vmul.f32 1.442695, %v7266_v12 }
0x259a   :  { %9690 = vrcp.f32 %v7213_v1  ;;  %v7271_v8 = vmul.f32 1.442695, %v7265_v16  ;;  %v7195_v16 = vmul.f32 0.5, %v11058_v40  ;;  %v7198_v40 = vmul.f32 0.5, %v11067_v47 }
0x259b   :  { %9692 = vpow2.f32 %v7269_v51 }
0x259c   :  { %9694 = vpow2.f32 %v7267_v11 }
0x259d   :  { %9696 = vpow2.f32 %v7273_v17  ;;  %v7197_v17 = vmul.f32 0.5, %v11070_v53 }
0x259e   :  { %9698 = vpow2.f32 %v7271_v8 }
0x259f   :  { %v9685_v59 = vpop.eup %9684 }
0x25a0   :  { %v9687_v25 = vpop.eup %9686  ;;  %v7224_v15 = vmul.f32 1.0614054, %v9685_v59 }
0x25a1   :  { %v7223_v45 = vmul.f32 1.0614054, %v9687_v25 }
0x25a2   :  { %v7228_v9 = vadd.f32 -1.4531521, %v7224_v15 }
0x25a3   :  { %v9689_v13 = vpop.eup %9688  ;;  %v7227_v2 = vadd.f32 -1.4531521, %v7223_v45 }
0x25a4   :  { %v9691_v6 = vpop.eup %9690  ;;  %v7232_v24 = vmul.f32 %v9685_v59, %v7228_v9  ;;  %v7226_v34 = vmul.f32 1.0614054, %v9689_v13 }
0x25a5   :  { %v7231_v46 = vmul.f32 %v9687_v25, %v7227_v2  ;;  %v7225_v18 = vmul.f32 1.0614054, %v9691_v6  ;;  %v9693_v61 = vpop.eup %9692 }
0x25a6   :  { %v7236_v36 = vadd.f32 1.4214138, %v7232_v24  ;;  %v7230_v31 = vadd.f32 -1.4531521, %v7226_v34  ;;  %v9695_v63 = vpop.eup %9694 }
0x25a7   :  { %v7235_v21 = vadd.f32 1.4214138, %v7231_v46  ;;  %v7229_v38 = vadd.f32 -1.4531521, %v7225_v18  ;;  %v9697_v15 = vpop.eup %9696 }
0x25a8   :  { %v7240_v28 = vmul.f32 %v9685_v59, %v7236_v36  ;;  %v7234_v48 = vmul.f32 %v9689_v13, %v7230_v31  ;;  %v9699_v45 = vpop.eup %9698 }
0x25a9   :  { %v7239_v44 = vmul.f32 %v9687_v25, %v7235_v21  ;;  %v7233_v19 = vmul.f32 %v9691_v6, %v7229_v38 }
0x25aa   :  { %v7244_v20 = vadd.f32 -0.28449672, %v7240_v28  ;;  %v7238_v22 = vadd.f32 1.4214138, %v7234_v48 }
0x25ab   :  { %v7243_v26 = vadd.f32 -0.28449672, %v7239_v44  ;;  %v7237_v0 = vadd.f32 1.4214138, %v7233_v19 }
0x25ac   :  { %v7248_v27 = vmul.f32 %v9685_v59, %v7244_v20  ;;  %v7242_v32 = vmul.f32 %v9689_v13, %v7238_v22 }
0x25ad   :  { %v7247_v42 = vmul.f32 %v9687_v25, %v7243_v26  ;;  %v7241_v23 = vmul.f32 %v9691_v6, %v7237_v0 }
0x25ae   :  { %v7252_v49 = vadd.f32 0.2548296, %v7248_v27  ;;  %v7246_v50 = vadd.f32 -0.28449672, %v7242_v32 }
0x25af   :  { %v7251_v54 = vadd.f32 0.2548296, %v7247_v42  ;;  %v7245_v56 = vadd.f32 -0.28449672, %v7241_v23 }
0x25b0   :  { %v7256_v58 = vmul.f32 %v9685_v59, %v7252_v49  ;;  %v7250_v60 = vmul.f32 %v9689_v13, %v7246_v50 }
0x25b1   :  { %v7255_v37 = vmul.f32 %v9687_v25, %v7251_v54  ;;  %v7249_v62 = vmul.f32 %v9691_v6, %v7245_v56 }
0x25b2   :  { %v7276_v35 = vmul.f32 %v9693_v61, %v7256_v58  ;;  %v7254_v1 = vadd.f32 0.2548296, %v7250_v60 }
0x25b3   :  { %v7275_v3 = vmul.f32 %v9695_v63, %v7255_v37  ;;  %v7253_v4 = vadd.f32 0.2548296, %v7249_v62 }
0x25b4   :  { %v7280_v5 = vsub.f32 1.0, %v7276_v35  ;;  %v7258_v7 = vmul.f32 %v9689_v13, %v7254_v1 }
0x25b5   :  { %v7279_v14 = vsub.f32 1.0, %v7275_v3  ;;  %v7257_v43 = vmul.f32 %v9691_v6, %v7253_v4  ;;  %v7196_v6 = vmul.f32 0.5, %v11056_v30 }
0x25b6   :  { %v7288_v9 = vsub.f32 0.0, %v7280_v5  ;;  %v7278_v51 = vmul.f32 %v9697_v15, %v7258_v7 }
0x25b7   :  { %v7287_v59 = vsub.f32 0.0, %v7279_v14  ;;  %v7277_v2 = vmul.f32 %v9699_v45, %v7257_v43 }
0x25b8   :  { %v7292_v12 = vsel %vm7284_vm9, %v7288_v9, %v7280_v5  ;;  %v7282_v25 = vsub.f32 1.0, %v7278_v51 }
0x25b9   :  { %v7296_v24 = vadd.f32 1.0, %v7292_v12  ;;  %v7291_v11 = vsel %vm7283_vm10, %v7287_v59, %v7279_v14  ;;  %v7281_v34 = vsub.f32 1.0, %v7277_v2 }
0x25ba   :  { %v7295_v13 = vadd.f32 1.0, %v7291_v11  ;;  %v7290_v46 = vsub.f32 0.0, %v7282_v25 }
0x25bb   :  { %v7289_v18 = vsub.f32 0.0, %v7281_v34  ;;  %v7300_v31 = vmul.f32 %v7296_v24, %v7196_v6 }
0x25bc   :  { %v7299_v36 = vmul.f32 %v7295_v13, %v7195_v16  ;;  %v7294_v39 = vsel %vm7286_vm11, %v7290_v46, %v7282_v25  ;;  %v7933_v13 = vld [vmem:[%s11149_s20] ss:$0 sm:$0xff]  ;;  %s7508_s20 = sshll.u32 %s9732_s16, 4  ;;  %s7509_s20 = int_to_ptr.vmem [resolvable:$true] %s7508_s20 }
0x25bd   :  { %v7298_v21 = vadd.f32 1.0, %v7294_v39  ;;  %v7293_v10 = vsel %vm7285_vm12, %v7289_v18, %v7281_v34  ;;  %v7934_v18 = vld [vmem:[%s11150_s21] ss:$0 sm:$0xff]  ;;  %s9708_s21 = scalar_lea.vmem %s7509_s20, 512  ;;  %p9713_p1 = scmp.lt.s32.totalorder %s7509_s20, %s7509_s20 }
0x25be   :  { %v7297_v38 = vadd.f32 1.0, %v7293_v10  ;;  %9059 = vmatprep.mubr.msk.f32.mxu1 %vm84_vm0, %v7299_v36  ;;  %p9709_p0 = scmp.ne.s32.totalorder %s7509_s20, %s9708_s21  ;;  %p9714_p2 = scmp.lt.s32.totalorder %s9708_s21, %s9708_s21 }
0x25bf   :  { %9060 = vmatmul.mubr.msk.f32.vlgmr.msra.gmra.mrb[92].mxu1 %vm84_vm0, %v7300_v31  ;;  %v7302_v28 = vmul.f32 %v7298_v21, %v7198_v40 }
0x25c0   :  { %v7301_v30 = vmul.f32 %v7297_v38, %v7197_v17  ;;  %p9715_p3 = por %p9714_p2, %p9713_p1 }
0x25c2   :  { %9062 = vmatprep.mubr.msk.f32.mxu1 %vm84_vm0, %v7301_v30  ;;  %p9716_p4 = pnand %p9715_p3, %p9709_p0 }
0x25c3   :  { %9063 = vmatmul.mubr.msk.f32.gmra.mrb[94].mxu1 %vm84_vm0, %v7302_v28 }
0x2692   :  { %v9061_v55 = vpop.f32.mrb[92].mxu1 }
0x2693   :  { %v7410_v53 = vadd.f32 %v9061_v55, %v10981_v29  ;;  %v7390_v48 = vpop.f32.mrb[93].mxu1 }
0x2694   :  { %v7409_v8 = vadd.f32 %v7390_v48, %v10983_v52 }
0x2695   :  { %v7422_v44 = vadd.f32 %v7932_v57, %v7410_v53 }
0x2696   :  { %v9064_v47 = vpop.f32.mrb[94].mxu1  ;;  %v7421_v19 = vadd.f32 %v7932_v57, %v7409_v8 }
0x2697   :  { %v7412_v20 = vadd.f32 %v9064_v47, %v10991_v33  ;;  %v7400_v22 = vpop.f32.mrb[95].mxu1  ;;  %v7430_v26 = vsel %vm199_vm1, %v7422_v44, 0.0 }
0x2698   :  { %v7411_v0 = vadd.f32 %v7400_v22, %v10993_v41  ;;  %7431 = vadd.xlane.f32.xlu1 %v7430_v26  ;;  %v7427_v27 = vsel %vm199_vm1, %v7421_v19, 0.0 }
0x2699   :  { %v7424_v32 = vadd.f32 %v7932_v57, %v7412_v20  ;;  %7428 = vadd.xlane.f32.xlu0 %v7427_v27 }
0x269a   :  { %v7423_v42 = vadd.f32 %v7932_v57, %v7411_v0 }
0x269b   :  { %v7436_v29 = vsel %vm199_vm1, %v7424_v32, 0.0 }
0x269c   :  { %7437 = vadd.xlane.f32.xlu1 %v7436_v29  ;;  %v7433_v52 = vsel %vm199_vm1, %v7423_v42, 0.0 }
0x269d   :  { %7434 = vadd.xlane.f32.xlu0 %v7433_v52 }
0x2725   :  { %v7432_v23 = vpop.xlane.xlu1 %7431 }
0x2726   :  { %v7440_v49 = vmul.f32 0.03125, %v7432_v23  ;;  %v7429_v33 = vpop.xlane.xlu0 %7428 }
0x2727   :  { %v7439_v50 = vmul.f32 0.03125, %v7429_v33 }
0x2728   :  { %v7444_v54 = vsub.f32 %v7422_v44, %v7440_v49 }
0x2729   :  { %v7443_v56 = vsub.f32 %v7421_v19, %v7439_v50  ;;  %v7438_v58 = vpop.xlane.xlu1 %7437 }
0x272a   :  { %v7442_v41 = vmul.f32 0.03125, %v7438_v58  ;;  %v7435_v60 = vpop.xlane.xlu0 %7434  ;;  %v7448_v61 = vmul.f32 %v7444_v54, %v7444_v54 }
0x272b   :  { %v7441_v37 = vmul.f32 0.03125, %v7435_v60  ;;  %v7447_v62 = vmul.f32 %v7443_v56, %v7443_v56 }
0x272c   :  { %v7446_v63 = vsub.f32 %v7424_v32, %v7442_v41  ;;  %v7454_v35 = vsel %vm199_vm1, %v7448_v61, 0.0 }
0x272d   :  { %v7445_v1 = vsub.f32 %v7423_v42, %v7441_v37  ;;  %7455 = vadd.xlane.f32.xlu1 %v7454_v35  ;;  %v7451_v3 = vsel %vm199_vm1, %v7447_v62, 0.0 }
0x272e   :  { %7452 = vadd.xlane.f32.xlu0 %v7451_v3  ;;  %v7450_v4 = vmul.f32 %v7446_v63, %v7446_v63 }
0x272f   :  { %v7449_v5 = vmul.f32 %v7445_v1, %v7445_v1 }
0x2730   :  { %v7460_v7 = vsel %vm199_vm1, %v7450_v4, 0.0 }
0x2731   :  { %7461 = vadd.xlane.f32.xlu1 %v7460_v7  ;;  %v7457_v15 = vsel %vm199_vm1, %v7449_v5, 0.0 }
0x2732   :  { %7458 = vadd.xlane.f32.xlu0 %v7457_v15 }
0x27ba   :  { %v7456_v14 = vpop.xlane.xlu1 %7455 }
0x27bb   :  { %v7464_v43 = vmul.f32 0.03125, %v7456_v14  ;;  %v7453_v45 = vpop.xlane.xlu0 %7452 }
0x27bc   :  { %v7463_v9 = vmul.f32 0.03125, %v7453_v45 }
0x27bd   :  { %v7468_v51 = vadd.f32 1e-05, %v7464_v43 }
0x27be   :  { %v7467_v59 = vadd.f32 1e-05, %v7463_v9  ;;  %v7462_v2 = vpop.xlane.xlu1 %7461 }
0x27bf   :  { %9700 = vrsqrt.f32 %v7468_v51  ;;  %v7466_v12 = vmul.f32 0.03125, %v7462_v2  ;;  %v7459_v25 = vpop.xlane.xlu0 %7458 }
0x27c0   :  { %9702 = vrsqrt.f32 %v7467_v59  ;;  %v7465_v24 = vmul.f32 0.03125, %v7459_v25 }
0x27c1   :  { %v7470_v11 = vadd.f32 1e-05, %v7466_v12 }
0x27c2   :  { %v7469_v34 = vadd.f32 1e-05, %v7465_v24 }
0x27c3   :  { %9704 = vrsqrt.f32 %v7470_v11 }
0x27c4   :  { %9706 = vrsqrt.f32 %v7469_v34 }
0x27c9   :  { %v9701_v16 = vpop.eup %9700 }
0x27ca   :  { %v9703_v46 = vpop.eup %9702  ;;  %v7476_v6 = vmul.f32 %v9701_v16, %v7444_v54 }
0x27cb   :  { %v7475_v36 = vmul.f32 %v9703_v46, %v7443_v56 }
0x27cc   :  { %v7486_v39 = vmul.f32 %v7933_v13, %v7476_v6 }
0x27cd   :  { %v9705_v31 = vpop.eup %9704  ;;  %v7485_v21 = vmul.f32 %v7933_v13, %v7475_v36 }
0x27ce   :  { %v9707_v10 = vpop.eup %9706  ;;  %v7496_v17 = vadd.f32 %v7934_v18, %v7486_v39  ;;  %v7478_v38 = vmul.f32 %v9705_v31, %v7446_v63 }
0x27cf   :  { %v7495_v40 = vadd.f32 %v7934_v18, %v7485_v21  ;;  %v7477_v30 = vmul.f32 %v9707_v10, %v7445_v1 }
0x27d0   :  { %7500 = vst.msk [vmem:[#allocation2 + $0x8] sm:$0xff] %vm199_vm1, %v7496_v17  ;;  %v7488_v28 = vmul.f32 %v7933_v13, %v7478_v38 }
0x27d1   :  { %7499 = vst.msk [vmem:[#allocation2] sm:$0xff] %vm199_vm1, %v7495_v40  ;;  %v7487_v55 = vmul.f32 %v7933_v13, %v7477_v30 }
0x27d2   :  { %v7498_v57 = vadd.f32 %v7934_v18, %v7488_v28 }
0x27d3   :  { %v7497_v53 = vadd.f32 %v7934_v18, %v7487_v55 }
0x27d4   :  { %7502 = vst.msk [vmem:[#allocation2 + $0x18] sm:$0xff] %vm199_vm1, %v7498_v57 }
0x27d5   :  { %7501 = vst.msk [vmem:[#allocation2 + $0x10] sm:$0xff] %vm199_vm1, %v7497_v53 }
0x27d6   :  { %9719 = shalt.err (!%p9716_p4)
}
0x27d7   :  { %s9720_s25 = scalar_lea.hbm %s11151_s22, 512 }
0x27d8   :  { %p9721_p5 = scmp.ne.s32.totalorder %s11151_s22, %s9720_s25  ;;  %p9724_p6 = scmp.lt.u32.totalorder %s9720_s25, %s11151_s22 }
0x27da   :  { %p9726_p7 = pnand %p9724_p6, %p9721_p5 }
0x27dc   :  { %9729 = shalt.err (!%p9726_p7)
}
0x27dd   :  { %s9733_s28 = smov 128   ;;  %s9734_s7 = smov 8  }
0x27de   :  { %7514 = dma.vmem_to_hbm [thread:$0]  %s7509_s20, 512, %s11151_s22, [#allocation3], %s9733_s28, %s9733_s28, %s9734_s7  }
0x27df   :  { %9730 = dma.done.wait [#allocation3], 512  }
0x27e0   :  { %9731 = vsyncadd [#allocation3], 4294966784 }
0x27e1   :  { %7518 = vsyncpa [#allocation3], 1 }

</bundles_post_ra>
